<compile_context>
chip_gen: v6e
topology: v6e:2x2x1
jax: 0.10.0
libtpu: 0.0.40
codegen_flags: <defaults>
</compile_context>

<pallas_src>
import functools

import jax
import jax.numpy as jnp
from jax.experimental import pallas as pl
from jax.experimental.pallas import tpu as pltpu


# -----------------------------------------------------------------------------
# Packed-weight blob layout (all section starts are multiples of 8 rows)
# -----------------------------------------------------------------------------
def _blob_layout(D):
    assert D % 8 == 0, "packing offsets assume D is a multiple of 8"
    header = ["act_w4c", "act_w4q", "act_w4mlu",
              "goal_w4c", "goal_w4q", "goal_w4mlu",
              "b_o1", "b_o2", "b_p1", "w_p2"]
    off = {name: 8 * i for i, name in enumerate(header)}
    base = 8 * len(header)
    off["act_prj"] = base                  # (4D, D)
    off["goal_prj"] = base + 4 * D         # (4D, D)
    off["w_o1"] = base + 8 * D             # (4D, 2D)
    off["w_o2"] = base + 12 * D            # (2D, D)
    off["w_p1"] = base + 14 * D            # (D, D/2)
    off["_rows"] = base + 15 * D
    return off


def pack_params(raw, D):
    """One-time weight packing (outside the jitted per-call path)."""
    off = _blob_layout(D)
    blob = jnp.zeros((off["_rows"], 2 * D), jnp.float32)
    for name in ["act_w4c", "act_w4q", "act_w4mlu", "goal_w4c", "goal_w4q",
                 "goal_w4mlu", "b_o1", "b_o2", "b_p1", "w_p2",
                 "act_prj", "goal_prj", "w_o1", "w_o2", "w_p1"]:
        a = raw[name].astype(jnp.float32)
        r0 = off[name]
        blob = blob.at[r0:r0 + a.shape[0], 0:a.shape[1]].set(a)
    sbias = jnp.stack([raw["act_bias"], raw["goal_bias"], raw["b_p2"]]).astype(jnp.float32)
    return {"wblob": blob, "sbias": sbias}


# -----------------------------------------------------------------------------
# The single fused QNetwork forward kernel (gridless, fully VMEM-resident)
# -----------------------------------------------------------------------------
def _qnetwork_kernel(B, La, Lg, Ln,
                     act_ref, goal_ref, node_ref, mask_ref, wb_ref, sc_ref,
                     o_ref):
    f32 = jnp.float32
    D = act_ref.shape[-1]
    D2 = D // 2
    off = _blob_layout(D)

    def w(name, rows, cols):
        r0 = off[name]
        return wb_ref[r0:r0 + rows, 0:cols]

    act = act_ref[...]                      # (B*La, D)  batch-flattened
    goal = goal_ref[...]                    # (B*Lg, D)
    node = node_ref[...]                    # (B*Ln, D)

    # lane-dense flat masks; column forms derived with tiny in-kernel transposes
    am = mask_ref[0:1, 0:B * La]            # (1, B*La)
    gm = mask_ref[8:9, 0:B * Lg]            # (1, B*Lg)
    nm = mask_ref[16:17, 0:B * Ln]          # (1, B*Ln)
    am_c = am.T                             # (B*La, 1)
    gm_c = gm.T
    nm_c = nm.T

    # ---- compile-time block structure (supports the batch flattening) --------
    def block_diag(Lc, Lq):
        ri = jax.lax.broadcasted_iota(jnp.int32, (B * Lc, B * Lq), 0)
        ci = jax.lax.broadcasted_iota(jnp.int32, (B * Lc, B * Lq), 1)
        m = None
        for b in range(B):
            t = ((ri >= b * Lc) & (ri < (b + 1) * Lc) &
                 (ci >= b * Lq) & (ci < (b + 1) * Lq))
            m = t if m is None else (m | t)
        return m.astype(f32)

    def seg_pool(m_row, L):
        # (B, B*L): row b holds batch-b's mask values over its own segment.
        r = jax.lax.broadcasted_iota(jnp.int32, (B, B * L), 0)
        c = jax.lax.broadcasted_iota(jnp.int32, (B, B * L), 1)
        return ((c >= r * L) & (c < (r + 1) * L)).astype(f32) * m_row

    bd_an = block_diag(La, Ln)
    bd_na = block_diag(Ln, La)
    bd_gn = block_diag(Lg, Ln)
    bd_ng = block_diag(Ln, Lg)

    # pooling matrices + masked-mean inverse denominators (node's are hoisted
    # and shared by both node-as-context directions).
    P_a = seg_pool(am, La)
    P_g = seg_pool(gm, Lg)
    P_n = seg_pool(nm, Ln)
    inv_den_a = pl.reciprocal(jnp.sum(P_a, axis=-1, keepdims=True) + 1e-6, approx=True)
    inv_den_g = pl.reciprocal(jnp.sum(P_g, axis=-1, keepdims=True) + 1e-6, approx=True)
    inv_den_n = pl.reciprocal(jnp.sum(P_n, axis=-1, keepdims=True) + 1e-6, approx=True)

    def attend_pool(G, C, Q, qmask, cmask, P, inv_den, w4c, w4q, bias, prj):
        """masked_mean(CQAttention(C,Q) @ Wprj, cm) for one direction (flattened)."""
        # trilinear similarity; the matmul part G = (C*w4mlu)@Q^T is shared per pair
        s0 = jnp.sum(C * w4c, axis=-1, keepdims=True)                    # (Nc, 1)
        s1 = jnp.sum(Q * w4q, axis=-1, keepdims=True).T                  # (1, Nq)
        S = jnp.clip(s0 + s1 + G + bias, -15.0, 15.0)  # GATA masked_softmax clamp

        # masked softmax over the query axis (lanes); cross-batch entries are 0
        x1 = S * qmask
        e1 = jnp.exp(x1 - jnp.max(x1, axis=-1, keepdims=True)) * qmask
        S1 = e1 * pl.reciprocal(jnp.sum(e1, axis=-1, keepdims=True) + 1e-6, approx=True)
        # masked softmax over the context axis (sublanes)
        x2 = S * cmask
        e2 = jnp.exp(x2 - jnp.max(x2, axis=0, keepdims=True)) * cmask
        S2 = e2 * pl.reciprocal(jnp.sum(e2, axis=0, keepdims=True) + 1e-6, approx=True)

        A = jnp.dot(S1, Q, preferred_element_type=f32)                   # (Nc, D)
        SS = jnp.einsum("lm,km->lk", S1, S2, preferred_element_type=f32)  # (Nc, Nc)
        Bm = jnp.dot(SS, C, preferred_element_type=f32)                  # (Nc, D)

        # bias-free Linear(4D->D) on cat([C, A, C*A, C*Bm]) decomposed into four
        # weight-sliced matmuls, then mask-weighted segment pooling (masked mean).
        Z = (jnp.dot(C,      wb_ref[prj + 0 * D:prj + 1 * D, 0:D], preferred_element_type=f32)
             + jnp.dot(A,      wb_ref[prj + 1 * D:prj + 2 * D, 0:D], preferred_element_type=f32)
             + jnp.dot(C * A,  wb_ref[prj + 2 * D:prj + 3 * D, 0:D], preferred_element_type=f32)
             + jnp.dot(C * Bm, wb_ref[prj + 3 * D:prj + 4 * D, 0:D], preferred_element_type=f32))
        return jnp.dot(P, Z, preferred_element_type=f32) * inv_den       # (B, D)

    # ---- action <-> node pair (shared q_values_action_attention weights) -----
    a_w4c = w("act_w4c", 1, D)
    a_w4q = w("act_w4q", 1, D)
    a_w4mlu = w("act_w4mlu", 1, D)
    bias_a = sc_ref[0]
    G_an = jnp.einsum("ld,md->lm", act * a_w4mlu, node, preferred_element_type=f32)
    G_na = G_an.T      # shared-w4mlu transpose reuse: reverse direction, no 2nd matmul
    ave_h_ag = attend_pool(G_an, act, node, bd_an * nm, bd_an * am_c,
                           P_a, inv_den_a, a_w4c, a_w4q, bias_a, off["act_prj"])
    ave_h_ga = attend_pool(G_na, node, act, bd_na * am, bd_na * nm_c,
                           P_n, inv_den_n, a_w4c, a_w4q, bias_a, off["act_prj"])

    # ---- goal <-> node pair (shared q_values_goal_attention weights) ---------
    g_w4c = w("goal_w4c", 1, D)
    g_w4q = w("goal_w4q", 1, D)
    g_w4mlu = w("goal_w4mlu", 1, D)
    bias_g = sc_ref[1]
    G_gn = jnp.einsum("ld,md->lm", goal * g_w4mlu, node, preferred_element_type=f32)
    G_ng = G_gn.T
    ave_h_lg = attend_pool(G_gn, goal, node, bd_gn * nm, bd_gn * gm_c,
                           P_g, inv_den_g, g_w4c, g_w4q, bias_g, off["goal_prj"])
    ave_h_gl = attend_pool(G_ng, node, goal, bd_ng * gm, bd_ng * nm_c,
                           P_n, inv_den_n, g_w4c, g_w4q, bias_g, off["goal_prj"])

    # ---- MLP head: cat([gl, lg, ga, ag]) @ W_o1 decomposed (no lane concat) ---
    o1 = off["w_o1"]
    h = (jnp.dot(ave_h_gl, wb_ref[o1 + 0 * D:o1 + 1 * D, 0:2 * D], preferred_element_type=f32)
         + jnp.dot(ave_h_lg, wb_ref[o1 + 1 * D:o1 + 2 * D, 0:2 * D], preferred_element_type=f32)
         + jnp.dot(ave_h_ga, wb_ref[o1 + 2 * D:o1 + 3 * D, 0:2 * D], preferred_element_type=f32)
         + jnp.dot(ave_h_ag, wb_ref[o1 + 3 * D:o1 + 4 * D, 0:2 * D], preferred_element_type=f32)
         + w("b_o1", 1, 2 * D))
    h = jnp.tanh(h)                                                        # (B, 2D)
    h = jnp.tanh(jnp.dot(h, w("w_o2", 2 * D, D), preferred_element_type=f32)
                 + w("b_o2", 1, D))                                        # (B, D)
    h = jnp.tanh(jnp.dot(h, w("w_p1", D, D2), preferred_element_type=f32)
                 + w("b_p1", 1, D2))                                       # (B, D/2)
    # final D/2 -> 1 predictor as a VPU reduction (no width-1 MXU matmul)
    o_ref[...] = jnp.sum(h * w("w_p2", 1, D2), axis=-1, keepdims=True) + sc_ref[2]


# -----------------------------------------------------------------------------
# Wrapper: ONE pallas_call with 6 inputs (3 activations, 1 mask blob, 1 weight
# blob, 1 SMEM scalar triple), everything resident in VMEM.
# -----------------------------------------------------------------------------
@jax.jit
def qnetwork_forward(params, action_seq, a_mask, goal_seq, goal_mask,
                     node_enc, node_mask):
    B, La, D = action_seq.shape
    Lg = goal_seq.shape[1]
    Ln = node_enc.shape[1]
    Lmax = max(La, Lg, Ln)
    f32 = jnp.float32

    act_flat = action_seq.astype(f32).reshape(B * La, D)
    goal_flat = goal_seq.astype(f32).reshape(B * Lg, D)
    node_flat = node_enc.astype(f32).reshape(B * Ln, D)

    # one lane-dense mask blob; rows 0/8/16 so in-kernel slices stay 8-aligned
    mask_blob = jnp.zeros((24, B * Lmax), f32)
    mask_blob = mask_blob.at[0, 0:B * La].set(a_mask.astype(f32).reshape(-1))
    mask_blob = mask_blob.at[8, 0:B * Lg].set(goal_mask.astype(f32).reshape(-1))
    mask_blob = mask_blob.at[16, 0:B * Ln].set(node_mask.astype(f32).reshape(-1))

    kernel = functools.partial(_qnetwork_kernel, B, La, Lg, Ln)
    vmem = pl.BlockSpec(memory_space=pltpu.MemorySpace.VMEM)
    smem = pl.BlockSpec(memory_space=pltpu.MemorySpace.SMEM)

    pred = pl.pallas_call(
        kernel,
        out_shape=jax.ShapeDtypeStruct((B, 1), f32),
        in_specs=[vmem, vmem, vmem, vmem, vmem, smem],
        out_specs=vmem,
    )(act_flat, goal_flat, node_flat, mask_blob, params["wblob"], params["sbias"])

    return pred[:, 0], a_mask


# -----------------------------------------------------------------------------
# Parameters (deterministic, synthetic) + pure-JAX reference for validation
# -----------------------------------------------------------------------------
def init_raw_params(key, D):
    ks = jax.random.split(key, 16)
    s = 0.1

    def n(k, shape):
        return jax.random.normal(k, shape, dtype=jnp.float32) * s

    return {
        "act_w4c": n(ks[0], (1, D)), "act_w4q": n(ks[1], (1, D)), "act_w4mlu": n(ks[2], (1, D)),
        "act_bias": jnp.zeros((), jnp.float32),
        "goal_w4c": n(ks[3], (1, D)), "goal_w4q": n(ks[4], (1, D)), "goal_w4mlu": n(ks[5], (1, D)),
        "goal_bias": jnp.zeros((), jnp.float32),
        "act_prj": n(ks[6], (4 * D, D)), "goal_prj": n(ks[7], (4 * D, D)),
        "w_o1": n(ks[8], (4 * D, 2 * D)), "b_o1": n(ks[9], (1, 2 * D)),
        "w_o2": n(ks[10], (2 * D, D)), "b_o2": n(ks[11], (1, D)),
        "w_p1": n(ks[12], (D, D // 2)), "b_p1": n(ks[13], (1, D // 2)),
        "w_p2": n(ks[14], (1, D // 2)), "b_p2": jnp.zeros((), jnp.float32),
    }


def _ref_masked_softmax(x, m, axis):
    x = jnp.clip(x, -15.0, 15.0) * m
    e = jnp.exp(x - jnp.max(x, axis=axis, keepdims=True)) * m
    return e / (jnp.sum(e, axis=axis, keepdims=True) + 1e-6)


def _ref_cq_attention(C, Q, cmask, qmask, w4c, w4q, w4mlu, bias):
    s0 = jnp.sum(C * w4c, -1, keepdims=True)
    s1 = jnp.sum(Q * w4q, -1)[:, None, :]
    s2 = jnp.einsum("bld,bmd->blm", C * w4mlu, Q)
    S = s0 + s1 + s2 + bias
    S1 = _ref_masked_softmax(S, qmask[:, None, :], axis=2)
    S2 = _ref_masked_softmax(S, cmask[:, :, None], axis=1)
    A = jnp.einsum("blm,bmd->bld", S1, Q)
    SS = jnp.einsum("blm,bkm->blk", S1, S2)
    Bm = jnp.einsum("blk,bkd->bld", SS, C)
    return jnp.concatenate([C, A, C * A, C * Bm], axis=-1)


def _ref_masked_mean(x, m):
    return jnp.sum(x * m[:, :, None], axis=1) / (jnp.sum(m, axis=-1, keepdims=True) + 1e-6)


def reference_forward(p, action_seq, a_mask, goal_seq, goal_mask, node_enc, node_mask):
    h_ag = _ref_cq_attention(action_seq, node_enc, a_mask, node_mask,
                             p["act_w4c"], p["act_w4q"], p["act_w4mlu"], p["act_bias"])
    h_ga = _ref_cq_attention(node_enc, action_seq, node_mask, a_mask,
                             p["act_w4c"], p["act_w4q"], p["act_w4mlu"], p["act_bias"])
    ave_h_ag = _ref_masked_mean(h_ag @ p["act_prj"], a_mask)
    ave_h_ga = _ref_masked_mean(h_ga @ p["act_prj"], node_mask)
    h_lg = _ref_cq_attention(goal_seq, node_enc, goal_mask, node_mask,
                             p["goal_w4c"], p["goal_w4q"], p["goal_w4mlu"], p["goal_bias"])
    h_gl = _ref_cq_attention(node_enc, goal_seq, node_mask, goal_mask,
                             p["goal_w4c"], p["goal_w4q"], p["goal_w4mlu"], p["goal_bias"])
    ave_h_lg = _ref_masked_mean(h_lg @ p["goal_prj"], goal_mask)
    ave_h_gl = _ref_masked_mean(h_gl @ p["goal_prj"], node_mask)
    x = jnp.concatenate([ave_h_gl, ave_h_lg, ave_h_ga, ave_h_ag], axis=-1)
    x = jnp.tanh(x @ p["w_o1"] + p["b_o1"])
    x = jnp.tanh(x @ p["w_o2"] + p["b_o2"])
    x = jnp.tanh(x @ p["w_p1"] + p["b_p1"])
    return (x @ p["w_p2"].T + p["b_p2"])[:, 0]


# -----------------------------------------------------------------------------
if __name__ == "__main__":
    B = 2           # batch
    D = 32          # block_hidden_dim
    L_ACT = 8       # action sequence length
    L_GOAL = 6      # goal sequence length
    L_NODE = 10     # number of graph nodes

    key = jax.random.PRNGKey(0)
    k_params, k_a, k_g, k_n = jax.random.split(key, 4)

    raw_params = init_raw_params(k_params, D)
    params = pack_params(raw_params, D)      # one-time packing, outside jit path

    action_seq = jax.random.normal(k_a, (B, L_ACT, D), dtype=jnp.float32)
    goal_seq = jax.random.normal(k_g, (B, L_GOAL, D), dtype=jnp.float32)
    node_enc = jax.random.normal(k_n, (B, L_NODE, D), dtype=jnp.float32)

    # 0/1 padding masks (some trailing positions masked out)
    a_mask = jnp.concatenate(
        [jnp.ones((B, 6), jnp.float32), jnp.zeros((B, L_ACT - 6), jnp.float32)], axis=1)
    goal_mask = jnp.concatenate(
        [jnp.ones((B, 5), jnp.float32), jnp.zeros((B, L_GOAL - 5), jnp.float32)], axis=1)
    node_mask = jnp.concatenate(
        [jnp.ones((B, 8), jnp.float32), jnp.zeros((B, L_NODE - 8), jnp.float32)], axis=1)

    q_values, out_mask = qnetwork_forward(
        params, action_seq, a_mask, goal_seq, goal_mask, node_enc, node_mask)
    jax.block_until_ready((q_values, out_mask))

    assert q_values.shape == (B,)
    assert out_mask.shape == (B, L_ACT)
    assert bool(jnp.all(jnp.isfinite(q_values)))

    # pure-JAX reference check (approx reciprocals => loose tolerance)
    with jax.default_matmul_precision("highest"):
        q_ref = reference_forward(raw_params, action_seq, a_mask, goal_seq,
                                  goal_mask, node_enc, node_mask)
    max_err = float(jnp.max(jnp.abs(q_values - q_ref)))
    assert max_err < 5e-3, f"mismatch vs reference: {max_err}"

    print("KERNEL_OK")
</pallas_src>

<mosaic_0001>
module attributes {stable_mosaic.version = 11 : i64} {
  func.func @_qnetwork_kernel(%arg0: memref<16x32xf32, #tpu.memory_space<vmem>>, %arg1: memref<12x32xf32, #tpu.memory_space<vmem>>, %arg2: memref<20x32xf32, #tpu.memory_space<vmem>>, %arg3: memref<24x20xf32, #tpu.memory_space<vmem>>, %arg4: memref<560x64xf32, #tpu.memory_space<vmem>>, %arg5: memref<3xf32, #tpu.memory_space<smem>>, %arg6: memref<2x1xf32, #tpu.memory_space<vmem>>) attributes {dimension_semantics = [], scalar_prefetch = 0 : i64, scratch_operands = 0 : i64, tpu.core_type = #tpu.core_type<tc>} {
    %c0 = arith.constant 0 : index
    %c0_0 = arith.constant 0 : index
    %0 = vector.load %arg0[%c0, %c0_0] : memref<16x32xf32, #tpu.memory_space<vmem>>, vector<16x32xf32>
    %c0_1 = arith.constant 0 : index
    %c0_2 = arith.constant 0 : index
    %1 = vector.load %arg1[%c0_1, %c0_2] : memref<12x32xf32, #tpu.memory_space<vmem>>, vector<12x32xf32>
    %c0_3 = arith.constant 0 : index
    %c0_4 = arith.constant 0 : index
    %2 = vector.load %arg2[%c0_3, %c0_4] : memref<20x32xf32, #tpu.memory_space<vmem>>, vector<20x32xf32>
    %c0_5 = arith.constant 0 : index
    %c0_6 = arith.constant 0 : index
    %3 = vector.load %arg3[%c0_5, %c0_6] : memref<24x20xf32, #tpu.memory_space<vmem>>, vector<1x16xf32>
    %c8 = arith.constant 8 : index
    %c0_7 = arith.constant 0 : index
    %4 = vector.load %arg3[%c8, %c0_7] : memref<24x20xf32, #tpu.memory_space<vmem>>, vector<1x12xf32>
    %c16 = arith.constant 16 : index
    %c0_8 = arith.constant 0 : index
    %5 = vector.load %arg3[%c16, %c0_8] : memref<24x20xf32, #tpu.memory_space<vmem>>, vector<1x20xf32>
    %6 = tpu.transpose %3, [1, 0] : vector<1x16xf32> -> vector<16x1xf32>
    %7 = tpu.transpose %4, [1, 0] : vector<1x12xf32> -> vector<12x1xf32>
    %8 = tpu.transpose %5, [1, 0] : vector<1x20xf32> -> vector<20x1xf32>
    %9 = tpu.iota {dimensions = array<i32: 0>} : vector<16x20xi32>
    %10 = tpu.iota {dimensions = array<i32: 1>} : vector<16x20xi32>
    %c0_i32 = arith.constant 0 : i32
    %11 = vector.broadcast %c0_i32 : i32 to vector<16x20xi32>
    %12 = arith.cmpi sge, %9, %11 : vector<16x20xi32>
    %c8_i32 = arith.constant 8 : i32
    %13 = vector.broadcast %c8_i32 : i32 to vector<16x20xi32>
    %14 = arith.cmpi slt, %9, %13 : vector<16x20xi32>
    %15 = arith.andi %12, %14 : vector<16x20xi1>
    %c0_i32_9 = arith.constant 0 : i32
    %16 = vector.broadcast %c0_i32_9 : i32 to vector<16x20xi32>
    %17 = arith.cmpi sge, %10, %16 : vector<16x20xi32>
    %18 = arith.andi %15, %17 : vector<16x20xi1>
    %c10_i32 = arith.constant 10 : i32
    %19 = vector.broadcast %c10_i32 : i32 to vector<16x20xi32>
    %20 = arith.cmpi slt, %10, %19 : vector<16x20xi32>
    %21 = arith.andi %18, %20 : vector<16x20xi1>
    %c8_i32_10 = arith.constant 8 : i32
    %22 = vector.broadcast %c8_i32_10 : i32 to vector<16x20xi32>
    %23 = arith.cmpi sge, %9, %22 : vector<16x20xi32>
    %c16_i32 = arith.constant 16 : i32
    %24 = vector.broadcast %c16_i32 : i32 to vector<16x20xi32>
    %25 = arith.cmpi slt, %9, %24 : vector<16x20xi32>
    %26 = arith.andi %23, %25 : vector<16x20xi1>
    %c10_i32_11 = arith.constant 10 : i32
    %27 = vector.broadcast %c10_i32_11 : i32 to vector<16x20xi32>
    %28 = arith.cmpi sge, %10, %27 : vector<16x20xi32>
    %29 = arith.andi %26, %28 : vector<16x20xi1>
    %c20_i32 = arith.constant 20 : i32
    %30 = vector.broadcast %c20_i32 : i32 to vector<16x20xi32>
    %31 = arith.cmpi slt, %10, %30 : vector<16x20xi32>
    %32 = arith.andi %29, %31 : vector<16x20xi1>
    %33 = arith.ori %21, %32 : vector<16x20xi1>
    %34 = arith.extui %33 : vector<16x20xi1> to vector<16x20xi32>
    %35 = arith.sitofp %34 : vector<16x20xi32> to vector<16x20xf32>
    %36 = tpu.iota {dimensions = array<i32: 0>} : vector<20x16xi32>
    %37 = tpu.iota {dimensions = array<i32: 1>} : vector<20x16xi32>
    %c0_i32_12 = arith.constant 0 : i32
    %38 = vector.broadcast %c0_i32_12 : i32 to vector<20x16xi32>
    %39 = arith.cmpi sge, %36, %38 : vector<20x16xi32>
    %c10_i32_13 = arith.constant 10 : i32
    %40 = vector.broadcast %c10_i32_13 : i32 to vector<20x16xi32>
    %41 = arith.cmpi slt, %36, %40 : vector<20x16xi32>
    %42 = arith.andi %39, %41 : vector<20x16xi1>
    %c0_i32_14 = arith.constant 0 : i32
    %43 = vector.broadcast %c0_i32_14 : i32 to vector<20x16xi32>
    %44 = arith.cmpi sge, %37, %43 : vector<20x16xi32>
    %45 = arith.andi %42, %44 : vector<20x16xi1>
    %c8_i32_15 = arith.constant 8 : i32
    %46 = vector.broadcast %c8_i32_15 : i32 to vector<20x16xi32>
    %47 = arith.cmpi slt, %37, %46 : vector<20x16xi32>
    %48 = arith.andi %45, %47 : vector<20x16xi1>
    %c10_i32_16 = arith.constant 10 : i32
    %49 = vector.broadcast %c10_i32_16 : i32 to vector<20x16xi32>
    %50 = arith.cmpi sge, %36, %49 : vector<20x16xi32>
    %c20_i32_17 = arith.constant 20 : i32
    %51 = vector.broadcast %c20_i32_17 : i32 to vector<20x16xi32>
    %52 = arith.cmpi slt, %36, %51 : vector<20x16xi32>
    %53 = arith.andi %50, %52 : vector<20x16xi1>
    %c8_i32_18 = arith.constant 8 : i32
    %54 = vector.broadcast %c8_i32_18 : i32 to vector<20x16xi32>
    %55 = arith.cmpi sge, %37, %54 : vector<20x16xi32>
    %56 = arith.andi %53, %55 : vector<20x16xi1>
    %c16_i32_19 = arith.constant 16 : i32
    %57 = vector.broadcast %c16_i32_19 : i32 to vector<20x16xi32>
    %58 = arith.cmpi slt, %37, %57 : vector<20x16xi32>
    %59 = arith.andi %56, %58 : vector<20x16xi1>
    %60 = arith.ori %48, %59 : vector<20x16xi1>
    %61 = arith.extui %60 : vector<20x16xi1> to vector<20x16xi32>
    %62 = arith.sitofp %61 : vector<20x16xi32> to vector<20x16xf32>
    %63 = tpu.iota {dimensions = array<i32: 0>} : vector<12x20xi32>
    %64 = tpu.iota {dimensions = array<i32: 1>} : vector<12x20xi32>
    %c0_i32_20 = arith.constant 0 : i32
    %65 = vector.broadcast %c0_i32_20 : i32 to vector<12x20xi32>
    %66 = arith.cmpi sge, %63, %65 : vector<12x20xi32>
    %c6_i32 = arith.constant 6 : i32
    %67 = vector.broadcast %c6_i32 : i32 to vector<12x20xi32>
    %68 = arith.cmpi slt, %63, %67 : vector<12x20xi32>
    %69 = arith.andi %66, %68 : vector<12x20xi1>
    %c0_i32_21 = arith.constant 0 : i32
    %70 = vector.broadcast %c0_i32_21 : i32 to vector<12x20xi32>
    %71 = arith.cmpi sge, %64, %70 : vector<12x20xi32>
    %72 = arith.andi %69, %71 : vector<12x20xi1>
    %c10_i32_22 = arith.constant 10 : i32
    %73 = vector.broadcast %c10_i32_22 : i32 to vector<12x20xi32>
    %74 = arith.cmpi slt, %64, %73 : vector<12x20xi32>
    %75 = arith.andi %72, %74 : vector<12x20xi1>
    %c6_i32_23 = arith.constant 6 : i32
    %76 = vector.broadcast %c6_i32_23 : i32 to vector<12x20xi32>
    %77 = arith.cmpi sge, %63, %76 : vector<12x20xi32>
    %c12_i32 = arith.constant 12 : i32
    %78 = vector.broadcast %c12_i32 : i32 to vector<12x20xi32>
    %79 = arith.cmpi slt, %63, %78 : vector<12x20xi32>
    %80 = arith.andi %77, %79 : vector<12x20xi1>
    %c10_i32_24 = arith.constant 10 : i32
    %81 = vector.broadcast %c10_i32_24 : i32 to vector<12x20xi32>
    %82 = arith.cmpi sge, %64, %81 : vector<12x20xi32>
    %83 = arith.andi %80, %82 : vector<12x20xi1>
    %c20_i32_25 = arith.constant 20 : i32
    %84 = vector.broadcast %c20_i32_25 : i32 to vector<12x20xi32>
    %85 = arith.cmpi slt, %64, %84 : vector<12x20xi32>
    %86 = arith.andi %83, %85 : vector<12x20xi1>
    %87 = arith.ori %75, %86 : vector<12x20xi1>
    %88 = arith.extui %87 : vector<12x20xi1> to vector<12x20xi32>
    %89 = arith.sitofp %88 : vector<12x20xi32> to vector<12x20xf32>
    %90 = tpu.iota {dimensions = array<i32: 0>} : vector<20x12xi32>
    %91 = tpu.iota {dimensions = array<i32: 1>} : vector<20x12xi32>
    %c0_i32_26 = arith.constant 0 : i32
    %92 = vector.broadcast %c0_i32_26 : i32 to vector<20x12xi32>
    %93 = arith.cmpi sge, %90, %92 : vector<20x12xi32>
    %c10_i32_27 = arith.constant 10 : i32
    %94 = vector.broadcast %c10_i32_27 : i32 to vector<20x12xi32>
    %95 = arith.cmpi slt, %90, %94 : vector<20x12xi32>
    %96 = arith.andi %93, %95 : vector<20x12xi1>
    %c0_i32_28 = arith.constant 0 : i32
    %97 = vector.broadcast %c0_i32_28 : i32 to vector<20x12xi32>
    %98 = arith.cmpi sge, %91, %97 : vector<20x12xi32>
    %99 = arith.andi %96, %98 : vector<20x12xi1>
    %c6_i32_29 = arith.constant 6 : i32
    %100 = vector.broadcast %c6_i32_29 : i32 to vector<20x12xi32>
    %101 = arith.cmpi slt, %91, %100 : vector<20x12xi32>
    %102 = arith.andi %99, %101 : vector<20x12xi1>
    %c10_i32_30 = arith.constant 10 : i32
    %103 = vector.broadcast %c10_i32_30 : i32 to vector<20x12xi32>
    %104 = arith.cmpi sge, %90, %103 : vector<20x12xi32>
    %c20_i32_31 = arith.constant 20 : i32
    %105 = vector.broadcast %c20_i32_31 : i32 to vector<20x12xi32>
    %106 = arith.cmpi slt, %90, %105 : vector<20x12xi32>
    %107 = arith.andi %104, %106 : vector<20x12xi1>
    %c6_i32_32 = arith.constant 6 : i32
    %108 = vector.broadcast %c6_i32_32 : i32 to vector<20x12xi32>
    %109 = arith.cmpi sge, %91, %108 : vector<20x12xi32>
    %110 = arith.andi %107, %109 : vector<20x12xi1>
    %c12_i32_33 = arith.constant 12 : i32
    %111 = vector.broadcast %c12_i32_33 : i32 to vector<20x12xi32>
    %112 = arith.cmpi slt, %91, %111 : vector<20x12xi32>
    %113 = arith.andi %110, %112 : vector<20x12xi1>
    %114 = arith.ori %102, %113 : vector<20x12xi1>
    %115 = arith.extui %114 : vector<20x12xi1> to vector<20x12xi32>
    %116 = arith.sitofp %115 : vector<20x12xi32> to vector<20x12xf32>
    %117 = tpu.iota {dimensions = array<i32: 0>} : vector<2x16xi32>
    %118 = tpu.iota {dimensions = array<i32: 1>} : vector<2x16xi32>
    %c8_i32_34 = arith.constant 8 : i32
    %119 = vector.broadcast %c8_i32_34 : i32 to vector<2x16xi32>
    %120 = arith.muli %117, %119 : vector<2x16xi32>
    %121 = arith.cmpi sge, %118, %120 : vector<2x16xi32>
    %c1_i32 = arith.constant 1 : i32
    %122 = vector.broadcast %c1_i32 : i32 to vector<2x16xi32>
    %123 = arith.addi %117, %122 : vector<2x16xi32>
    %c8_i32_35 = arith.constant 8 : i32
    %124 = vector.broadcast %c8_i32_35 : i32 to vector<2x16xi32>
    %125 = arith.muli %123, %124 : vector<2x16xi32>
    %126 = arith.cmpi slt, %118, %125 : vector<2x16xi32>
    %127 = arith.andi %121, %126 : vector<2x16xi1>
    %128 = arith.extui %127 : vector<2x16xi1> to vector<2x16xi32>
    %129 = arith.sitofp %128 : vector<2x16xi32> to vector<2x16xf32>
    %130 = vector.broadcast %3 : vector<1x16xf32> to vector<2x16xf32>
    %131 = arith.mulf %129, %130 : vector<2x16xf32>
    %132 = tpu.iota {dimensions = array<i32: 0>} : vector<2x12xi32>
    %133 = tpu.iota {dimensions = array<i32: 1>} : vector<2x12xi32>
    %c6_i32_36 = arith.constant 6 : i32
    %134 = vector.broadcast %c6_i32_36 : i32 to vector<2x12xi32>
    %135 = arith.muli %132, %134 : vector<2x12xi32>
    %136 = arith.cmpi sge, %133, %135 : vector<2x12xi32>
    %c1_i32_37 = arith.constant 1 : i32
    %137 = vector.broadcast %c1_i32_37 : i32 to vector<2x12xi32>
    %138 = arith.addi %132, %137 : vector<2x12xi32>
    %c6_i32_38 = arith.constant 6 : i32
    %139 = vector.broadcast %c6_i32_38 : i32 to vector<2x12xi32>
    %140 = arith.muli %138, %139 : vector<2x12xi32>
    %141 = arith.cmpi slt, %133, %140 : vector<2x12xi32>
    %142 = arith.andi %136, %141 : vector<2x12xi1>
    %143 = arith.extui %142 : vector<2x12xi1> to vector<2x12xi32>
    %144 = arith.sitofp %143 : vector<2x12xi32> to vector<2x12xf32>
    %145 = vector.broadcast %4 : vector<1x12xf32> to vector<2x12xf32>
    %146 = arith.mulf %144, %145 : vector<2x12xf32>
    %147 = tpu.iota {dimensions = array<i32: 0>} : vector<2x20xi32>
    %148 = tpu.iota {dimensions = array<i32: 1>} : vector<2x20xi32>
    %c10_i32_39 = arith.constant 10 : i32
    %149 = vector.broadcast %c10_i32_39 : i32 to vector<2x20xi32>
    %150 = arith.muli %147, %149 : vector<2x20xi32>
    %151 = arith.cmpi sge, %148, %150 : vector<2x20xi32>
    %c1_i32_40 = arith.constant 1 : i32
    %152 = vector.broadcast %c1_i32_40 : i32 to vector<2x20xi32>
    %153 = arith.addi %147, %152 : vector<2x20xi32>
    %c10_i32_41 = arith.constant 10 : i32
    %154 = vector.broadcast %c10_i32_41 : i32 to vector<2x20xi32>
    %155 = arith.muli %153, %154 : vector<2x20xi32>
    %156 = arith.cmpi slt, %148, %155 : vector<2x20xi32>
    %157 = arith.andi %151, %156 : vector<2x20xi1>
    %158 = arith.extui %157 : vector<2x20xi1> to vector<2x20xi32>
    %159 = arith.sitofp %158 : vector<2x20xi32> to vector<2x20xf32>
    %160 = vector.broadcast %5 : vector<1x20xf32> to vector<2x20xf32>
    %161 = arith.mulf %159, %160 : vector<2x20xf32>
    %cst = arith.constant dense<0.000000e+00> : vector<2xf32>
    %162 = vector.multi_reduction <add>, %131, %cst [1] : vector<2x16xf32> to vector<2xf32>
    %163 = vector.shape_cast %162 : vector<2xf32> to vector<2x1xf32>
    %cst_42 = arith.constant 9.99999997E-7 : f32
    %164 = vector.broadcast %cst_42 : f32 to vector<2x1xf32>
    %165 = arith.addf %163, %164 : vector<2x1xf32>
    %166 = tpu.reciprocal %165 {approx = true} : vector<2x1xf32> -> vector<2x1xf32>
    %cst_43 = arith.constant dense<0.000000e+00> : vector<2xf32>
    %167 = vector.multi_reduction <add>, %146, %cst_43 [1] : vector<2x12xf32> to vector<2xf32>
    %168 = vector.shape_cast %167 : vector<2xf32> to vector<2x1xf32>
    %cst_44 = arith.constant 9.99999997E-7 : f32
    %169 = vector.broadcast %cst_44 : f32 to vector<2x1xf32>
    %170 = arith.addf %168, %169 : vector<2x1xf32>
    %171 = tpu.reciprocal %170 {approx = true} : vector<2x1xf32> -> vector<2x1xf32>
    %cst_45 = arith.constant dense<0.000000e+00> : vector<2xf32>
    %172 = vector.multi_reduction <add>, %161, %cst_45 [1] : vector<2x20xf32> to vector<2xf32>
    %173 = vector.shape_cast %172 : vector<2xf32> to vector<2x1xf32>
    %cst_46 = arith.constant 9.99999997E-7 : f32
    %174 = vector.broadcast %cst_46 : f32 to vector<2x1xf32>
    %175 = arith.addf %173, %174 : vector<2x1xf32>
    %176 = tpu.reciprocal %175 {approx = true} : vector<2x1xf32> -> vector<2x1xf32>
    %c0_47 = arith.constant 0 : index
    %c0_48 = arith.constant 0 : index
    %177 = vector.load %arg4[%c0_47, %c0_48] : memref<560x64xf32, #tpu.memory_space<vmem>>, vector<1x32xf32>
    %c8_49 = arith.constant 8 : index
    %c0_50 = arith.constant 0 : index
    %178 = vector.load %arg4[%c8_49, %c0_50] : memref<560x64xf32, #tpu.memory_space<vmem>>, vector<1x32xf32>
    %c16_51 = arith.constant 16 : index
    %c0_52 = arith.constant 0 : index
    %179 = vector.load %arg4[%c16_51, %c0_52] : memref<560x64xf32, #tpu.memory_space<vmem>>, vector<1x32xf32>
    %c0_53 = arith.constant 0 : index
    %180 = memref.load %arg5[%c0_53] : memref<3xf32, #tpu.memory_space<smem>>
    %181 = vector.broadcast %179 : vector<1x32xf32> to vector<16x32xf32>
    %182 = arith.mulf %0, %181 : vector<16x32xf32>
    "tpu.trace_start"() <{level = 10 : i32, message = "ld,md->lm"}> : () -> ()
    %cst_54 = arith.constant dense<0.000000e+00> : vector<16x20xf32>
    %183 = tpu.matmul %182, %2, %cst_54 {dimension_numbers = #tpu.dot_dimension_numbers<[1], [1], [0], [0], [0, 0, 1, 0], [], []>} : vector<16x32xf32>, vector<20x32xf32>, vector<16x20xf32> -> vector<16x20xf32>
    "tpu.trace_stop"() : () -> ()
    %184 = tpu.transpose %183, [1, 0] : vector<16x20xf32> -> vector<20x16xf32>
    %185 = vector.broadcast %5 : vector<1x20xf32> to vector<16x20xf32>
    %186 = arith.mulf %35, %185 : vector<16x20xf32>
    %187 = vector.broadcast %6 : vector<16x1xf32> to vector<16x20xf32>
    %188 = arith.mulf %35, %187 : vector<16x20xf32>
    %189 = vector.broadcast %177 : vector<1x32xf32> to vector<16x32xf32>
    %190 = arith.mulf %0, %189 : vector<16x32xf32>
    %cst_55 = arith.constant dense<0.000000e+00> : vector<16xf32>
    %191 = vector.multi_reduction <add>, %190, %cst_55 [1] : vector<16x32xf32> to vector<16xf32>
    %192 = vector.shape_cast %191 : vector<16xf32> to vector<16x1xf32>
    %193 = vector.broadcast %178 : vector<1x32xf32> to vector<20x32xf32>
    %194 = arith.mulf %2, %193 : vector<20x32xf32>
    %cst_56 = arith.constant dense<0.000000e+00> : vector<20xf32>
    %195 = vector.multi_reduction <add>, %194, %cst_56 [1] : vector<20x32xf32> to vector<20xf32>
    %196 = vector.shape_cast %195 : vector<20xf32> to vector<20x1xf32>
    %197 = tpu.transpose %196, [1, 0] : vector<20x1xf32> -> vector<1x20xf32>
    %198 = vector.broadcast %192 : vector<16x1xf32> to vector<16x20xf32>
    %199 = vector.broadcast %197 : vector<1x20xf32> to vector<16x20xf32>
    %200 = arith.addf %198, %199 : vector<16x20xf32>
    %201 = arith.addf %200, %183 : vector<16x20xf32>
    %202 = vector.broadcast %180 : f32 to vector<16x20xf32>
    %203 = arith.addf %201, %202 : vector<16x20xf32>
    %cst_57 = arith.constant -1.500000e+01 : f32
    %cst_58 = arith.constant 1.500000e+01 : f32
    %204 = vector.broadcast %cst_57 : f32 to vector<16x20xf32>
    %205 = arith.maximumf %204, %203 : vector<16x20xf32>
    %206 = vector.broadcast %cst_58 : f32 to vector<16x20xf32>
    %207 = arith.minimumf %206, %205 : vector<16x20xf32>
    %208 = arith.mulf %207, %186 : vector<16x20xf32>
    %cst_59 = arith.constant dense<0xFF800000> : vector<16xf32>
    %209 = vector.multi_reduction <maximumf>, %208, %cst_59 [1] : vector<16x20xf32> to vector<16xf32>
    %210 = vector.shape_cast %209 : vector<16xf32> to vector<16x1xf32>
    %211 = vector.broadcast %210 : vector<16x1xf32> to vector<16x20xf32>
    %212 = arith.subf %208, %211 : vector<16x20xf32>
    %213 = math.exp %212 : vector<16x20xf32>
    %214 = arith.mulf %213, %186 : vector<16x20xf32>
    %cst_60 = arith.constant dense<0.000000e+00> : vector<16xf32>
    %215 = vector.multi_reduction <add>, %214, %cst_60 [1] : vector<16x20xf32> to vector<16xf32>
    %216 = vector.shape_cast %215 : vector<16xf32> to vector<16x1xf32>
    %cst_61 = arith.constant 9.99999997E-7 : f32
    %217 = vector.broadcast %cst_61 : f32 to vector<16x1xf32>
    %218 = arith.addf %216, %217 : vector<16x1xf32>
    %219 = tpu.reciprocal %218 {approx = true} : vector<16x1xf32> -> vector<16x1xf32>
    %220 = vector.broadcast %219 : vector<16x1xf32> to vector<16x20xf32>
    %221 = arith.mulf %214, %220 : vector<16x20xf32>
    %222 = arith.mulf %207, %188 : vector<16x20xf32>
    %cst_62 = arith.constant dense<0xFF800000> : vector<20xf32>
    %223 = vector.multi_reduction <maximumf>, %222, %cst_62 [0] : vector<16x20xf32> to vector<20xf32>
    %224 = vector.shape_cast %223 : vector<20xf32> to vector<1x20xf32>
    %225 = vector.broadcast %224 : vector<1x20xf32> to vector<16x20xf32>
    %226 = arith.subf %222, %225 : vector<16x20xf32>
    %227 = math.exp %226 : vector<16x20xf32>
    %228 = arith.mulf %227, %188 : vector<16x20xf32>
    %cst_63 = arith.constant dense<0.000000e+00> : vector<20xf32>
    %229 = vector.multi_reduction <add>, %228, %cst_63 [0] : vector<16x20xf32> to vector<20xf32>
    %230 = vector.shape_cast %229 : vector<20xf32> to vector<1x20xf32>
    %cst_64 = arith.constant 9.99999997E-7 : f32
    %231 = vector.broadcast %cst_64 : f32 to vector<1x20xf32>
    %232 = arith.addf %230, %231 : vector<1x20xf32>
    %233 = tpu.reciprocal %232 {approx = true} : vector<1x20xf32> -> vector<1x20xf32>
    %234 = vector.broadcast %233 : vector<1x20xf32> to vector<16x20xf32>
    %235 = arith.mulf %228, %234 : vector<16x20xf32>
    %cst_65 = arith.constant dense<0.000000e+00> : vector<16x32xf32>
    %236 = tpu.matmul %221, %2, %cst_65 {dimension_numbers = #tpu.dot_dimension_numbers<[1], [0], [0], [1], [0, 0, 1, 1], [], []>} : vector<16x20xf32>, vector<20x32xf32>, vector<16x32xf32> -> vector<16x32xf32>
    "tpu.trace_start"() <{level = 10 : i32, message = "lm,km->lk"}> : () -> ()
    %cst_66 = arith.constant dense<0.000000e+00> : vector<16x16xf32>
    %237 = tpu.matmul %221, %235, %cst_66 {dimension_numbers = #tpu.dot_dimension_numbers<[1], [1], [0], [0], [0, 0, 1, 0], [], []>} : vector<16x20xf32>, vector<16x20xf32>, vector<16x16xf32> -> vector<16x16xf32>
    "tpu.trace_stop"() : () -> ()
    %cst_67 = arith.constant dense<0.000000e+00> : vector<16x32xf32>
    %238 = tpu.matmul %237, %0, %cst_67 {dimension_numbers = #tpu.dot_dimension_numbers<[1], [0], [0], [1], [0, 0, 1, 1], [], []>} : vector<16x16xf32>, vector<16x32xf32>, vector<16x32xf32> -> vector<16x32xf32>
    %c80 = arith.constant 80 : index
    %c0_68 = arith.constant 0 : index
    %239 = vector.load %arg4[%c80, %c0_68] : memref<560x64xf32, #tpu.memory_space<vmem>>, vector<32x32xf32>
    %cst_69 = arith.constant dense<0.000000e+00> : vector<16x32xf32>
    %240 = tpu.matmul %0, %239, %cst_69 {dimension_numbers = #tpu.dot_dimension_numbers<[1], [0], [0], [1], [0, 0, 1, 1], [], []>} : vector<16x32xf32>, vector<32x32xf32>, vector<16x32xf32> -> vector<16x32xf32>
    %c112 = arith.constant 112 : index
    %c0_70 = arith.constant 0 : index
    %241 = vector.load %arg4[%c112, %c0_70] : memref<560x64xf32, #tpu.memory_space<vmem>>, vector<32x32xf32>
    %cst_71 = arith.constant dense<0.000000e+00> : vector<16x32xf32>
    %242 = tpu.matmul %236, %241, %cst_71 {dimension_numbers = #tpu.dot_dimension_numbers<[1], [0], [0], [1], [0, 0, 1, 1], [], []>} : vector<16x32xf32>, vector<32x32xf32>, vector<16x32xf32> -> vector<16x32xf32>
    %243 = arith.addf %240, %242 : vector<16x32xf32>
    %244 = arith.mulf %0, %236 : vector<16x32xf32>
    %c144 = arith.constant 144 : index
    %c0_72 = arith.constant 0 : index
    %245 = vector.load %arg4[%c144, %c0_72] : memref<560x64xf32, #tpu.memory_space<vmem>>, vector<32x32xf32>
    %cst_73 = arith.constant dense<0.000000e+00> : vector<16x32xf32>
    %246 = tpu.matmul %244, %245, %cst_73 {dimension_numbers = #tpu.dot_dimension_numbers<[1], [0], [0], [1], [0, 0, 1, 1], [], []>} : vector<16x32xf32>, vector<32x32xf32>, vector<16x32xf32> -> vector<16x32xf32>
    %247 = arith.addf %243, %246 : vector<16x32xf32>
    %248 = arith.mulf %0, %238 : vector<16x32xf32>
    %c176 = arith.constant 176 : index
    %c0_74 = arith.constant 0 : index
    %249 = vector.load %arg4[%c176, %c0_74] : memref<560x64xf32, #tpu.memory_space<vmem>>, vector<32x32xf32>
    %cst_75 = arith.constant dense<0.000000e+00> : vector<16x32xf32>
    %250 = tpu.matmul %248, %249, %cst_75 {dimension_numbers = #tpu.dot_dimension_numbers<[1], [0], [0], [1], [0, 0, 1, 1], [], []>} : vector<16x32xf32>, vector<32x32xf32>, vector<16x32xf32> -> vector<16x32xf32>
    %251 = arith.addf %247, %250 : vector<16x32xf32>
    %cst_76 = arith.constant dense<0.000000e+00> : vector<2x32xf32>
    %252 = tpu.matmul %131, %251, %cst_76 {dimension_numbers = #tpu.dot_dimension_numbers<[1], [0], [0], [1], [0, 0, 1, 1], [], []>} : vector<2x16xf32>, vector<16x32xf32>, vector<2x32xf32> -> vector<2x32xf32>
    %253 = vector.broadcast %166 : vector<2x1xf32> to vector<2x32xf32>
    %254 = arith.mulf %252, %253 : vector<2x32xf32>
    %255 = vector.broadcast %3 : vector<1x16xf32> to vector<20x16xf32>
    %256 = arith.mulf %62, %255 : vector<20x16xf32>
    %257 = vector.broadcast %8 : vector<20x1xf32> to vector<20x16xf32>
    %258 = arith.mulf %62, %257 : vector<20x16xf32>
    %259 = vector.broadcast %177 : vector<1x32xf32> to vector<20x32xf32>
    %260 = arith.mulf %2, %259 : vector<20x32xf32>
    %cst_77 = arith.constant dense<0.000000e+00> : vector<20xf32>
    %261 = vector.multi_reduction <add>, %260, %cst_77 [1] : vector<20x32xf32> to vector<20xf32>
    %262 = vector.shape_cast %261 : vector<20xf32> to vector<20x1xf32>
    %263 = vector.broadcast %178 : vector<1x32xf32> to vector<16x32xf32>
    %264 = arith.mulf %0, %263 : vector<16x32xf32>
    %cst_78 = arith.constant dense<0.000000e+00> : vector<16xf32>
    %265 = vector.multi_reduction <add>, %264, %cst_78 [1] : vector<16x32xf32> to vector<16xf32>
    %266 = vector.shape_cast %265 : vector<16xf32> to vector<16x1xf32>
    %267 = tpu.transpose %266, [1, 0] : vector<16x1xf32> -> vector<1x16xf32>
    %268 = vector.broadcast %262 : vector<20x1xf32> to vector<20x16xf32>
    %269 = vector.broadcast %267 : vector<1x16xf32> to vector<20x16xf32>
    %270 = arith.addf %268, %269 : vector<20x16xf32>
    %271 = arith.addf %270, %184 : vector<20x16xf32>
    %272 = vector.broadcast %180 : f32 to vector<20x16xf32>
    %273 = arith.addf %271, %272 : vector<20x16xf32>
    %cst_79 = arith.constant -1.500000e+01 : f32
    %cst_80 = arith.constant 1.500000e+01 : f32
    %274 = vector.broadcast %cst_79 : f32 to vector<20x16xf32>
    %275 = arith.maximumf %274, %273 : vector<20x16xf32>
    %276 = vector.broadcast %cst_80 : f32 to vector<20x16xf32>
    %277 = arith.minimumf %276, %275 : vector<20x16xf32>
    %278 = arith.mulf %277, %256 : vector<20x16xf32>
    %cst_81 = arith.constant dense<0xFF800000> : vector<20xf32>
    %279 = vector.multi_reduction <maximumf>, %278, %cst_81 [1] : vector<20x16xf32> to vector<20xf32>
    %280 = vector.shape_cast %279 : vector<20xf32> to vector<20x1xf32>
    %281 = vector.broadcast %280 : vector<20x1xf32> to vector<20x16xf32>
    %282 = arith.subf %278, %281 : vector<20x16xf32>
    %283 = math.exp %282 : vector<20x16xf32>
    %284 = arith.mulf %283, %256 : vector<20x16xf32>
    %cst_82 = arith.constant dense<0.000000e+00> : vector<20xf32>
    %285 = vector.multi_reduction <add>, %284, %cst_82 [1] : vector<20x16xf32> to vector<20xf32>
    %286 = vector.shape_cast %285 : vector<20xf32> to vector<20x1xf32>
    %cst_83 = arith.constant 9.99999997E-7 : f32
    %287 = vector.broadcast %cst_83 : f32 to vector<20x1xf32>
    %288 = arith.addf %286, %287 : vector<20x1xf32>
    %289 = tpu.reciprocal %288 {approx = true} : vector<20x1xf32> -> vector<20x1xf32>
    %290 = vector.broadcast %289 : vector<20x1xf32> to vector<20x16xf32>
    %291 = arith.mulf %284, %290 : vector<20x16xf32>
    %292 = arith.mulf %277, %258 : vector<20x16xf32>
    %cst_84 = arith.constant dense<0xFF800000> : vector<16xf32>
    %293 = vector.multi_reduction <maximumf>, %292, %cst_84 [0] : vector<20x16xf32> to vector<16xf32>
    %294 = vector.shape_cast %293 : vector<16xf32> to vector<1x16xf32>
    %295 = vector.broadcast %294 : vector<1x16xf32> to vector<20x16xf32>
    %296 = arith.subf %292, %295 : vector<20x16xf32>
    %297 = math.exp %296 : vector<20x16xf32>
    %298 = arith.mulf %297, %258 : vector<20x16xf32>
    %cst_85 = arith.constant dense<0.000000e+00> : vector<16xf32>
    %299 = vector.multi_reduction <add>, %298, %cst_85 [0] : vector<20x16xf32> to vector<16xf32>
    %300 = vector.shape_cast %299 : vector<16xf32> to vector<1x16xf32>
    %cst_86 = arith.constant 9.99999997E-7 : f32
    %301 = vector.broadcast %cst_86 : f32 to vector<1x16xf32>
    %302 = arith.addf %300, %301 : vector<1x16xf32>
    %303 = tpu.reciprocal %302 {approx = true} : vector<1x16xf32> -> vector<1x16xf32>
    %304 = vector.broadcast %303 : vector<1x16xf32> to vector<20x16xf32>
    %305 = arith.mulf %298, %304 : vector<20x16xf32>
    %cst_87 = arith.constant dense<0.000000e+00> : vector<20x32xf32>
    %306 = tpu.matmul %291, %0, %cst_87 {dimension_numbers = #tpu.dot_dimension_numbers<[1], [0], [0], [1], [0, 0, 1, 1], [], []>} : vector<20x16xf32>, vector<16x32xf32>, vector<20x32xf32> -> vector<20x32xf32>
    "tpu.trace_start"() <{level = 10 : i32, message = "lm,km->lk"}> : () -> ()
    %cst_88 = arith.constant dense<0.000000e+00> : vector<20x20xf32>
    %307 = tpu.matmul %291, %305, %cst_88 {dimension_numbers = #tpu.dot_dimension_numbers<[1], [1], [0], [0], [0, 0, 1, 0], [], []>} : vector<20x16xf32>, vector<20x16xf32>, vector<20x20xf32> -> vector<20x20xf32>
    "tpu.trace_stop"() : () -> ()
    %cst_89 = arith.constant dense<0.000000e+00> : vector<20x32xf32>
    %308 = tpu.matmul %307, %2, %cst_89 {dimension_numbers = #tpu.dot_dimension_numbers<[1], [0], [0], [1], [0, 0, 1, 1], [], []>} : vector<20x20xf32>, vector<20x32xf32>, vector<20x32xf32> -> vector<20x32xf32>
    %c80_90 = arith.constant 80 : index
    %c0_91 = arith.constant 0 : index
    %309 = vector.load %arg4[%c80_90, %c0_91] : memref<560x64xf32, #tpu.memory_space<vmem>>, vector<32x32xf32>
    %cst_92 = arith.constant dense<0.000000e+00> : vector<20x32xf32>
    %310 = tpu.matmul %2, %309, %cst_92 {dimension_numbers = #tpu.dot_dimension_numbers<[1], [0], [0], [1], [0, 0, 1, 1], [], []>} : vector<20x32xf32>, vector<32x32xf32>, vector<20x32xf32> -> vector<20x32xf32>
    %c112_93 = arith.constant 112 : index
    %c0_94 = arith.constant 0 : index
    %311 = vector.load %arg4[%c112_93, %c0_94] : memref<560x64xf32, #tpu.memory_space<vmem>>, vector<32x32xf32>
    %cst_95 = arith.constant dense<0.000000e+00> : vector<20x32xf32>
    %312 = tpu.matmul %306, %311, %cst_95 {dimension_numbers = #tpu.dot_dimension_numbers<[1], [0], [0], [1], [0, 0, 1, 1], [], []>} : vector<20x32xf32>, vector<32x32xf32>, vector<20x32xf32> -> vector<20x32xf32>
    %313 = arith.addf %310, %312 : vector<20x32xf32>
    %314 = arith.mulf %2, %306 : vector<20x32xf32>
    %c144_96 = arith.constant 144 : index
    %c0_97 = arith.constant 0 : index
    %315 = vector.load %arg4[%c144_96, %c0_97] : memref<560x64xf32, #tpu.memory_space<vmem>>, vector<32x32xf32>
    %cst_98 = arith.constant dense<0.000000e+00> : vector<20x32xf32>
    %316 = tpu.matmul %314, %315, %cst_98 {dimension_numbers = #tpu.dot_dimension_numbers<[1], [0], [0], [1], [0, 0, 1, 1], [], []>} : vector<20x32xf32>, vector<32x32xf32>, vector<20x32xf32> -> vector<20x32xf32>
    %317 = arith.addf %313, %316 : vector<20x32xf32>
    %318 = arith.mulf %2, %308 : vector<20x32xf32>
    %c176_99 = arith.constant 176 : index
    %c0_100 = arith.constant 0 : index
    %319 = vector.load %arg4[%c176_99, %c0_100] : memref<560x64xf32, #tpu.memory_space<vmem>>, vector<32x32xf32>
    %cst_101 = arith.constant dense<0.000000e+00> : vector<20x32xf32>
    %320 = tpu.matmul %318, %319, %cst_101 {dimension_numbers = #tpu.dot_dimension_numbers<[1], [0], [0], [1], [0, 0, 1, 1], [], []>} : vector<20x32xf32>, vector<32x32xf32>, vector<20x32xf32> -> vector<20x32xf32>
    %321 = arith.addf %317, %320 : vector<20x32xf32>
    %cst_102 = arith.constant dense<0.000000e+00> : vector<2x32xf32>
    %322 = tpu.matmul %161, %321, %cst_102 {dimension_numbers = #tpu.dot_dimension_numbers<[1], [0], [0], [1], [0, 0, 1, 1], [], []>} : vector<2x20xf32>, vector<20x32xf32>, vector<2x32xf32> -> vector<2x32xf32>
    %323 = vector.broadcast %176 : vector<2x1xf32> to vector<2x32xf32>
    %324 = arith.mulf %322, %323 : vector<2x32xf32>
    %c24 = arith.constant 24 : index
    %c0_103 = arith.constant 0 : index
    %325 = vector.load %arg4[%c24, %c0_103] : memref<560x64xf32, #tpu.memory_space<vmem>>, vector<1x32xf32>
    %c32 = arith.constant 32 : index
    %c0_104 = arith.constant 0 : index
    %326 = vector.load %arg4[%c32, %c0_104] : memref<560x64xf32, #tpu.memory_space<vmem>>, vector<1x32xf32>
    %c40 = arith.constant 40 : index
    %c0_105 = arith.constant 0 : index
    %327 = vector.load %arg4[%c40, %c0_105] : memref<560x64xf32, #tpu.memory_space<vmem>>, vector<1x32xf32>
    %c1 = arith.constant 1 : index
    %328 = memref.load %arg5[%c1] : memref<3xf32, #tpu.memory_space<smem>>
    %329 = vector.broadcast %327 : vector<1x32xf32> to vector<12x32xf32>
    %330 = arith.mulf %1, %329 : vector<12x32xf32>
    "tpu.trace_start"() <{level = 10 : i32, message = "ld,md->lm"}> : () -> ()
    %cst_106 = arith.constant dense<0.000000e+00> : vector<12x20xf32>
    %331 = tpu.matmul %330, %2, %cst_106 {dimension_numbers = #tpu.dot_dimension_numbers<[1], [1], [0], [0], [0, 0, 1, 0], [], []>} : vector<12x32xf32>, vector<20x32xf32>, vector<12x20xf32> -> vector<12x20xf32>
    "tpu.trace_stop"() : () -> ()
    %332 = tpu.transpose %331, [1, 0] : vector<12x20xf32> -> vector<20x12xf32>
    %333 = vector.broadcast %5 : vector<1x20xf32> to vector<12x20xf32>
    %334 = arith.mulf %89, %333 : vector<12x20xf32>
    %335 = vector.broadcast %7 : vector<12x1xf32> to vector<12x20xf32>
    %336 = arith.mulf %89, %335 : vector<12x20xf32>
    %337 = vector.broadcast %325 : vector<1x32xf32> to vector<12x32xf32>
    %338 = arith.mulf %1, %337 : vector<12x32xf32>
    %cst_107 = arith.constant dense<0.000000e+00> : vector<12xf32>
    %339 = vector.multi_reduction <add>, %338, %cst_107 [1] : vector<12x32xf32> to vector<12xf32>
    %340 = vector.shape_cast %339 : vector<12xf32> to vector<12x1xf32>
    %341 = vector.broadcast %326 : vector<1x32xf32> to vector<20x32xf32>
    %342 = arith.mulf %2, %341 : vector<20x32xf32>
    %cst_108 = arith.constant dense<0.000000e+00> : vector<20xf32>
    %343 = vector.multi_reduction <add>, %342, %cst_108 [1] : vector<20x32xf32> to vector<20xf32>
    %344 = vector.shape_cast %343 : vector<20xf32> to vector<20x1xf32>
    %345 = tpu.transpose %344, [1, 0] : vector<20x1xf32> -> vector<1x20xf32>
    %346 = vector.broadcast %340 : vector<12x1xf32> to vector<12x20xf32>
    %347 = vector.broadcast %345 : vector<1x20xf32> to vector<12x20xf32>
    %348 = arith.addf %346, %347 : vector<12x20xf32>
    %349 = arith.addf %348, %331 : vector<12x20xf32>
    %350 = vector.broadcast %328 : f32 to vector<12x20xf32>
    %351 = arith.addf %349, %350 : vector<12x20xf32>
    %cst_109 = arith.constant -1.500000e+01 : f32
    %cst_110 = arith.constant 1.500000e+01 : f32
    %352 = vector.broadcast %cst_109 : f32 to vector<12x20xf32>
    %353 = arith.maximumf %352, %351 : vector<12x20xf32>
    %354 = vector.broadcast %cst_110 : f32 to vector<12x20xf32>
    %355 = arith.minimumf %354, %353 : vector<12x20xf32>
    %356 = arith.mulf %355, %334 : vector<12x20xf32>
    %cst_111 = arith.constant dense<0xFF800000> : vector<12xf32>
    %357 = vector.multi_reduction <maximumf>, %356, %cst_111 [1] : vector<12x20xf32> to vector<12xf32>
    %358 = vector.shape_cast %357 : vector<12xf32> to vector<12x1xf32>
    %359 = vector.broadcast %358 : vector<12x1xf32> to vector<12x20xf32>
    %360 = arith.subf %356, %359 : vector<12x20xf32>
    %361 = math.exp %360 : vector<12x20xf32>
    %362 = arith.mulf %361, %334 : vector<12x20xf32>
    %cst_112 = arith.constant dense<0.000000e+00> : vector<12xf32>
    %363 = vector.multi_reduction <add>, %362, %cst_112 [1] : vector<12x20xf32> to vector<12xf32>
    %364 = vector.shape_cast %363 : vector<12xf32> to vector<12x1xf32>
    %cst_113 = arith.constant 9.99999997E-7 : f32
    %365 = vector.broadcast %cst_113 : f32 to vector<12x1xf32>
    %366 = arith.addf %364, %365 : vector<12x1xf32>
    %367 = tpu.reciprocal %366 {approx = true} : vector<12x1xf32> -> vector<12x1xf32>
    %368 = vector.broadcast %367 : vector<12x1xf32> to vector<12x20xf32>
    %369 = arith.mulf %362, %368 : vector<12x20xf32>
    %370 = arith.mulf %355, %336 : vector<12x20xf32>
    %cst_114 = arith.constant dense<0xFF800000> : vector<20xf32>
    %371 = vector.multi_reduction <maximumf>, %370, %cst_114 [0] : vector<12x20xf32> to vector<20xf32>
    %372 = vector.shape_cast %371 : vector<20xf32> to vector<1x20xf32>
    %373 = vector.broadcast %372 : vector<1x20xf32> to vector<12x20xf32>
    %374 = arith.subf %370, %373 : vector<12x20xf32>
    %375 = math.exp %374 : vector<12x20xf32>
    %376 = arith.mulf %375, %336 : vector<12x20xf32>
    %cst_115 = arith.constant dense<0.000000e+00> : vector<20xf32>
    %377 = vector.multi_reduction <add>, %376, %cst_115 [0] : vector<12x20xf32> to vector<20xf32>
    %378 = vector.shape_cast %377 : vector<20xf32> to vector<1x20xf32>
    %cst_116 = arith.constant 9.99999997E-7 : f32
    %379 = vector.broadcast %cst_116 : f32 to vector<1x20xf32>
    %380 = arith.addf %378, %379 : vector<1x20xf32>
    %381 = tpu.reciprocal %380 {approx = true} : vector<1x20xf32> -> vector<1x20xf32>
    %382 = vector.broadcast %381 : vector<1x20xf32> to vector<12x20xf32>
    %383 = arith.mulf %376, %382 : vector<12x20xf32>
    %cst_117 = arith.constant dense<0.000000e+00> : vector<12x32xf32>
    %384 = tpu.matmul %369, %2, %cst_117 {dimension_numbers = #tpu.dot_dimension_numbers<[1], [0], [0], [1], [0, 0, 1, 1], [], []>} : vector<12x20xf32>, vector<20x32xf32>, vector<12x32xf32> -> vector<12x32xf32>
    "tpu.trace_start"() <{level = 10 : i32, message = "lm,km->lk"}> : () -> ()
    %cst_118 = arith.constant dense<0.000000e+00> : vector<12x12xf32>
    %385 = tpu.matmul %369, %383, %cst_118 {dimension_numbers = #tpu.dot_dimension_numbers<[1], [1], [0], [0], [0, 0, 1, 0], [], []>} : vector<12x20xf32>, vector<12x20xf32>, vector<12x12xf32> -> vector<12x12xf32>
    "tpu.trace_stop"() : () -> ()
    %cst_119 = arith.constant dense<0.000000e+00> : vector<12x32xf32>
    %386 = tpu.matmul %385, %1, %cst_119 {dimension_numbers = #tpu.dot_dimension_numbers<[1], [0], [0], [1], [0, 0, 1, 1], [], []>} : vector<12x12xf32>, vector<12x32xf32>, vector<12x32xf32> -> vector<12x32xf32>
    %c208 = arith.constant 208 : index
    %c0_120 = arith.constant 0 : index
    %387 = vector.load %arg4[%c208, %c0_120] : memref<560x64xf32, #tpu.memory_space<vmem>>, vector<32x32xf32>
    %cst_121 = arith.constant dense<0.000000e+00> : vector<12x32xf32>
    %388 = tpu.matmul %1, %387, %cst_121 {dimension_numbers = #tpu.dot_dimension_numbers<[1], [0], [0], [1], [0, 0, 1, 1], [], []>} : vector<12x32xf32>, vector<32x32xf32>, vector<12x32xf32> -> vector<12x32xf32>
    %c240 = arith.constant 240 : index
    %c0_122 = arith.constant 0 : index
    %389 = vector.load %arg4[%c240, %c0_122] : memref<560x64xf32, #tpu.memory_space<vmem>>, vector<32x32xf32>
    %cst_123 = arith.constant dense<0.000000e+00> : vector<12x32xf32>
    %390 = tpu.matmul %384, %389, %cst_123 {dimension_numbers = #tpu.dot_dimension_numbers<[1], [0], [0], [1], [0, 0, 1, 1], [], []>} : vector<12x32xf32>, vector<32x32xf32>, vector<12x32xf32> -> vector<12x32xf32>
    %391 = arith.addf %388, %390 : vector<12x32xf32>
    %392 = arith.mulf %1, %384 : vector<12x32xf32>
    %c272 = arith.constant 272 : index
    %c0_124 = arith.constant 0 : index
    %393 = vector.load %arg4[%c272, %c0_124] : memref<560x64xf32, #tpu.memory_space<vmem>>, vector<32x32xf32>
    %cst_125 = arith.constant dense<0.000000e+00> : vector<12x32xf32>
    %394 = tpu.matmul %392, %393, %cst_125 {dimension_numbers = #tpu.dot_dimension_numbers<[1], [0], [0], [1], [0, 0, 1, 1], [], []>} : vector<12x32xf32>, vector<32x32xf32>, vector<12x32xf32> -> vector<12x32xf32>
    %395 = arith.addf %391, %394 : vector<12x32xf32>
    %396 = arith.mulf %1, %386 : vector<12x32xf32>
    %c304 = arith.constant 304 : index
    %c0_126 = arith.constant 0 : index
    %397 = vector.load %arg4[%c304, %c0_126] : memref<560x64xf32, #tpu.memory_space<vmem>>, vector<32x32xf32>
    %cst_127 = arith.constant dense<0.000000e+00> : vector<12x32xf32>
    %398 = tpu.matmul %396, %397, %cst_127 {dimension_numbers = #tpu.dot_dimension_numbers<[1], [0], [0], [1], [0, 0, 1, 1], [], []>} : vector<12x32xf32>, vector<32x32xf32>, vector<12x32xf32> -> vector<12x32xf32>
    %399 = arith.addf %395, %398 : vector<12x32xf32>
    %cst_128 = arith.constant dense<0.000000e+00> : vector<2x32xf32>
    %400 = tpu.matmul %146, %399, %cst_128 {dimension_numbers = #tpu.dot_dimension_numbers<[1], [0], [0], [1], [0, 0, 1, 1], [], []>} : vector<2x12xf32>, vector<12x32xf32>, vector<2x32xf32> -> vector<2x32xf32>
    %401 = vector.broadcast %171 : vector<2x1xf32> to vector<2x32xf32>
    %402 = arith.mulf %400, %401 : vector<2x32xf32>
    %403 = vector.broadcast %4 : vector<1x12xf32> to vector<20x12xf32>
    %404 = arith.mulf %116, %403 : vector<20x12xf32>
    %405 = vector.broadcast %8 : vector<20x1xf32> to vector<20x12xf32>
    %406 = arith.mulf %116, %405 : vector<20x12xf32>
    %407 = vector.broadcast %325 : vector<1x32xf32> to vector<20x32xf32>
    %408 = arith.mulf %2, %407 : vector<20x32xf32>
    %cst_129 = arith.constant dense<0.000000e+00> : vector<20xf32>
    %409 = vector.multi_reduction <add>, %408, %cst_129 [1] : vector<20x32xf32> to vector<20xf32>
    %410 = vector.shape_cast %409 : vector<20xf32> to vector<20x1xf32>
    %411 = vector.broadcast %326 : vector<1x32xf32> to vector<12x32xf32>
    %412 = arith.mulf %1, %411 : vector<12x32xf32>
    %cst_130 = arith.constant dense<0.000000e+00> : vector<12xf32>
    %413 = vector.multi_reduction <add>, %412, %cst_130 [1] : vector<12x32xf32> to vector<12xf32>
    %414 = vector.shape_cast %413 : vector<12xf32> to vector<12x1xf32>
    %415 = tpu.transpose %414, [1, 0] : vector<12x1xf32> -> vector<1x12xf32>
    %416 = vector.broadcast %410 : vector<20x1xf32> to vector<20x12xf32>
    %417 = vector.broadcast %415 : vector<1x12xf32> to vector<20x12xf32>
    %418 = arith.addf %416, %417 : vector<20x12xf32>
    %419 = arith.addf %418, %332 : vector<20x12xf32>
    %420 = vector.broadcast %328 : f32 to vector<20x12xf32>
    %421 = arith.addf %419, %420 : vector<20x12xf32>
    %cst_131 = arith.constant -1.500000e+01 : f32
    %cst_132 = arith.constant 1.500000e+01 : f32
    %422 = vector.broadcast %cst_131 : f32 to vector<20x12xf32>
    %423 = arith.maximumf %422, %421 : vector<20x12xf32>
    %424 = vector.broadcast %cst_132 : f32 to vector<20x12xf32>
    %425 = arith.minimumf %424, %423 : vector<20x12xf32>
    %426 = arith.mulf %425, %404 : vector<20x12xf32>
    %cst_133 = arith.constant dense<0xFF800000> : vector<20xf32>
    %427 = vector.multi_reduction <maximumf>, %426, %cst_133 [1] : vector<20x12xf32> to vector<20xf32>
    %428 = vector.shape_cast %427 : vector<20xf32> to vector<20x1xf32>
    %429 = vector.broadcast %428 : vector<20x1xf32> to vector<20x12xf32>
    %430 = arith.subf %426, %429 : vector<20x12xf32>
    %431 = math.exp %430 : vector<20x12xf32>
    %432 = arith.mulf %431, %404 : vector<20x12xf32>
    %cst_134 = arith.constant dense<0.000000e+00> : vector<20xf32>
    %433 = vector.multi_reduction <add>, %432, %cst_134 [1] : vector<20x12xf32> to vector<20xf32>
    %434 = vector.shape_cast %433 : vector<20xf32> to vector<20x1xf32>
    %cst_135 = arith.constant 9.99999997E-7 : f32
    %435 = vector.broadcast %cst_135 : f32 to vector<20x1xf32>
    %436 = arith.addf %434, %435 : vector<20x1xf32>
    %437 = tpu.reciprocal %436 {approx = true} : vector<20x1xf32> -> vector<20x1xf32>
    %438 = vector.broadcast %437 : vector<20x1xf32> to vector<20x12xf32>
    %439 = arith.mulf %432, %438 : vector<20x12xf32>
    %440 = arith.mulf %425, %406 : vector<20x12xf32>
    %cst_136 = arith.constant dense<0xFF800000> : vector<12xf32>
    %441 = vector.multi_reduction <maximumf>, %440, %cst_136 [0] : vector<20x12xf32> to vector<12xf32>
    %442 = vector.shape_cast %441 : vector<12xf32> to vector<1x12xf32>
    %443 = vector.broadcast %442 : vector<1x12xf32> to vector<20x12xf32>
    %444 = arith.subf %440, %443 : vector<20x12xf32>
    %445 = math.exp %444 : vector<20x12xf32>
    %446 = arith.mulf %445, %406 : vector<20x12xf32>
    %cst_137 = arith.constant dense<0.000000e+00> : vector<12xf32>
    %447 = vector.multi_reduction <add>, %446, %cst_137 [0] : vector<20x12xf32> to vector<12xf32>
    %448 = vector.shape_cast %447 : vector<12xf32> to vector<1x12xf32>
    %cst_138 = arith.constant 9.99999997E-7 : f32
    %449 = vector.broadcast %cst_138 : f32 to vector<1x12xf32>
    %450 = arith.addf %448, %449 : vector<1x12xf32>
    %451 = tpu.reciprocal %450 {approx = true} : vector<1x12xf32> -> vector<1x12xf32>
    %452 = vector.broadcast %451 : vector<1x12xf32> to vector<20x12xf32>
    %453 = arith.mulf %446, %452 : vector<20x12xf32>
    %cst_139 = arith.constant dense<0.000000e+00> : vector<20x32xf32>
    %454 = tpu.matmul %439, %1, %cst_139 {dimension_numbers = #tpu.dot_dimension_numbers<[1], [0], [0], [1], [0, 0, 1, 1], [], []>} : vector<20x12xf32>, vector<12x32xf32>, vector<20x32xf32> -> vector<20x32xf32>
    "tpu.trace_start"() <{level = 10 : i32, message = "lm,km->lk"}> : () -> ()
    %cst_140 = arith.constant dense<0.000000e+00> : vector<20x20xf32>
    %455 = tpu.matmul %439, %453, %cst_140 {dimension_numbers = #tpu.dot_dimension_numbers<[1], [1], [0], [0], [0, 0, 1, 0], [], []>} : vector<20x12xf32>, vector<20x12xf32>, vector<20x20xf32> -> vector<20x20xf32>
    "tpu.trace_stop"() : () -> ()
    %cst_141 = arith.constant dense<0.000000e+00> : vector<20x32xf32>
    %456 = tpu.matmul %455, %2, %cst_141 {dimension_numbers = #tpu.dot_dimension_numbers<[1], [0], [0], [1], [0, 0, 1, 1], [], []>} : vector<20x20xf32>, vector<20x32xf32>, vector<20x32xf32> -> vector<20x32xf32>
    %c208_142 = arith.constant 208 : index
    %c0_143 = arith.constant 0 : index
    %457 = vector.load %arg4[%c208_142, %c0_143] : memref<560x64xf32, #tpu.memory_space<vmem>>, vector<32x32xf32>
    %cst_144 = arith.constant dense<0.000000e+00> : vector<20x32xf32>
    %458 = tpu.matmul %2, %457, %cst_144 {dimension_numbers = #tpu.dot_dimension_numbers<[1], [0], [0], [1], [0, 0, 1, 1], [], []>} : vector<20x32xf32>, vector<32x32xf32>, vector<20x32xf32> -> vector<20x32xf32>
    %c240_145 = arith.constant 240 : index
    %c0_146 = arith.constant 0 : index
    %459 = vector.load %arg4[%c240_145, %c0_146] : memref<560x64xf32, #tpu.memory_space<vmem>>, vector<32x32xf32>
    %cst_147 = arith.constant dense<0.000000e+00> : vector<20x32xf32>
    %460 = tpu.matmul %454, %459, %cst_147 {dimension_numbers = #tpu.dot_dimension_numbers<[1], [0], [0], [1], [0, 0, 1, 1], [], []>} : vector<20x32xf32>, vector<32x32xf32>, vector<20x32xf32> -> vector<20x32xf32>
    %461 = arith.addf %458, %460 : vector<20x32xf32>
    %462 = arith.mulf %2, %454 : vector<20x32xf32>
    %c272_148 = arith.constant 272 : index
    %c0_149 = arith.constant 0 : index
    %463 = vector.load %arg4[%c272_148, %c0_149] : memref<560x64xf32, #tpu.memory_space<vmem>>, vector<32x32xf32>
    %cst_150 = arith.constant dense<0.000000e+00> : vector<20x32xf32>
    %464 = tpu.matmul %462, %463, %cst_150 {dimension_numbers = #tpu.dot_dimension_numbers<[1], [0], [0], [1], [0, 0, 1, 1], [], []>} : vector<20x32xf32>, vector<32x32xf32>, vector<20x32xf32> -> vector<20x32xf32>
    %465 = arith.addf %461, %464 : vector<20x32xf32>
    %466 = arith.mulf %2, %456 : vector<20x32xf32>
    %c304_151 = arith.constant 304 : index
    %c0_152 = arith.constant 0 : index
    %467 = vector.load %arg4[%c304_151, %c0_152] : memref<560x64xf32, #tpu.memory_space<vmem>>, vector<32x32xf32>
    %cst_153 = arith.constant dense<0.000000e+00> : vector<20x32xf32>
    %468 = tpu.matmul %466, %467, %cst_153 {dimension_numbers = #tpu.dot_dimension_numbers<[1], [0], [0], [1], [0, 0, 1, 1], [], []>} : vector<20x32xf32>, vector<32x32xf32>, vector<20x32xf32> -> vector<20x32xf32>
    %469 = arith.addf %465, %468 : vector<20x32xf32>
    %cst_154 = arith.constant dense<0.000000e+00> : vector<2x32xf32>
    %470 = tpu.matmul %161, %469, %cst_154 {dimension_numbers = #tpu.dot_dimension_numbers<[1], [0], [0], [1], [0, 0, 1, 1], [], []>} : vector<2x20xf32>, vector<20x32xf32>, vector<2x32xf32> -> vector<2x32xf32>
    %471 = vector.broadcast %176 : vector<2x1xf32> to vector<2x32xf32>
    %472 = arith.mulf %470, %471 : vector<2x32xf32>
    %c336 = arith.constant 336 : index
    %c0_155 = arith.constant 0 : index
    %473 = vector.load %arg4[%c336, %c0_155] : memref<560x64xf32, #tpu.memory_space<vmem>>, vector<32x64xf32>
    %cst_156 = arith.constant dense<0.000000e+00> : vector<2x64xf32>
    %474 = tpu.matmul %472, %473, %cst_156 {dimension_numbers = #tpu.dot_dimension_numbers<[1], [0], [0], [1], [0, 0, 1, 1], [], []>} : vector<2x32xf32>, vector<32x64xf32>, vector<2x64xf32> -> vector<2x64xf32>
    %c368 = arith.constant 368 : index
    %c0_157 = arith.constant 0 : index
    %475 = vector.load %arg4[%c368, %c0_157] : memref<560x64xf32, #tpu.memory_space<vmem>>, vector<32x64xf32>
    %cst_158 = arith.constant dense<0.000000e+00> : vector<2x64xf32>
    %476 = tpu.matmul %402, %475, %cst_158 {dimension_numbers = #tpu.dot_dimension_numbers<[1], [0], [0], [1], [0, 0, 1, 1], [], []>} : vector<2x32xf32>, vector<32x64xf32>, vector<2x64xf32> -> vector<2x64xf32>
    %477 = arith.addf %474, %476 : vector<2x64xf32>
    %c400 = arith.constant 400 : index
    %c0_159 = arith.constant 0 : index
    %478 = vector.load %arg4[%c400, %c0_159] : memref<560x64xf32, #tpu.memory_space<vmem>>, vector<32x64xf32>
    %cst_160 = arith.constant dense<0.000000e+00> : vector<2x64xf32>
    %479 = tpu.matmul %324, %478, %cst_160 {dimension_numbers = #tpu.dot_dimension_numbers<[1], [0], [0], [1], [0, 0, 1, 1], [], []>} : vector<2x32xf32>, vector<32x64xf32>, vector<2x64xf32> -> vector<2x64xf32>
    %480 = arith.addf %477, %479 : vector<2x64xf32>
    %c432 = arith.constant 432 : index
    %c0_161 = arith.constant 0 : index
    %481 = vector.load %arg4[%c432, %c0_161] : memref<560x64xf32, #tpu.memory_space<vmem>>, vector<32x64xf32>
    %cst_162 = arith.constant dense<0.000000e+00> : vector<2x64xf32>
    %482 = tpu.matmul %254, %481, %cst_162 {dimension_numbers = #tpu.dot_dimension_numbers<[1], [0], [0], [1], [0, 0, 1, 1], [], []>} : vector<2x32xf32>, vector<32x64xf32>, vector<2x64xf32> -> vector<2x64xf32>
    %483 = arith.addf %480, %482 : vector<2x64xf32>
    %c48 = arith.constant 48 : index
    %c0_163 = arith.constant 0 : index
    %484 = vector.load %arg4[%c48, %c0_163] : memref<560x64xf32, #tpu.memory_space<vmem>>, vector<1x64xf32>
    %485 = vector.broadcast %484 : vector<1x64xf32> to vector<2x64xf32>
    %486 = arith.addf %483, %485 : vector<2x64xf32>
    %487 = math.tanh %486 : vector<2x64xf32>
    %c464 = arith.constant 464 : index
    %c0_164 = arith.constant 0 : index
    %488 = vector.load %arg4[%c464, %c0_164] : memref<560x64xf32, #tpu.memory_space<vmem>>, vector<64x32xf32>
    %cst_165 = arith.constant dense<0.000000e+00> : vector<2x32xf32>
    %489 = tpu.matmul %487, %488, %cst_165 {dimension_numbers = #tpu.dot_dimension_numbers<[1], [0], [0], [1], [0, 0, 1, 1], [], []>} : vector<2x64xf32>, vector<64x32xf32>, vector<2x32xf32> -> vector<2x32xf32>
    %c56 = arith.constant 56 : index
    %c0_166 = arith.constant 0 : index
    %490 = vector.load %arg4[%c56, %c0_166] : memref<560x64xf32, #tpu.memory_space<vmem>>, vector<1x32xf32>
    %491 = vector.broadcast %490 : vector<1x32xf32> to vector<2x32xf32>
    %492 = arith.addf %489, %491 : vector<2x32xf32>
    %493 = math.tanh %492 : vector<2x32xf32>
    %c528 = arith.constant 528 : index
    %c0_167 = arith.constant 0 : index
    %494 = vector.load %arg4[%c528, %c0_167] : memref<560x64xf32, #tpu.memory_space<vmem>>, vector<32x16xf32>
    %cst_168 = arith.constant dense<0.000000e+00> : vector<2x16xf32>
    %495 = tpu.matmul %493, %494, %cst_168 {dimension_numbers = #tpu.dot_dimension_numbers<[1], [0], [0], [1], [0, 0, 1, 1], [], []>} : vector<2x32xf32>, vector<32x16xf32>, vector<2x16xf32> -> vector<2x16xf32>
    %c64 = arith.constant 64 : index
    %c0_169 = arith.constant 0 : index
    %496 = vector.load %arg4[%c64, %c0_169] : memref<560x64xf32, #tpu.memory_space<vmem>>, vector<1x16xf32>
    %497 = vector.broadcast %496 : vector<1x16xf32> to vector<2x16xf32>
    %498 = arith.addf %495, %497 : vector<2x16xf32>
    %499 = math.tanh %498 : vector<2x16xf32>
    %c72 = arith.constant 72 : index
    %c0_170 = arith.constant 0 : index
    %500 = vector.load %arg4[%c72, %c0_170] : memref<560x64xf32, #tpu.memory_space<vmem>>, vector<1x16xf32>
    %501 = vector.broadcast %500 : vector<1x16xf32> to vector<2x16xf32>
    %502 = arith.mulf %499, %501 : vector<2x16xf32>
    %cst_171 = arith.constant dense<0.000000e+00> : vector<2xf32>
    %503 = vector.multi_reduction <add>, %502, %cst_171 [1] : vector<2x16xf32> to vector<2xf32>
    %504 = vector.shape_cast %503 : vector<2xf32> to vector<2x1xf32>
    %c2 = arith.constant 2 : index
    %505 = memref.load %arg5[%c2] : memref<3xf32, #tpu.memory_space<smem>>
    %506 = vector.broadcast %505 : f32 to vector<2x1xf32>
    %507 = arith.addf %504, %506 : vector<2x1xf32>
    %c0_172 = arith.constant 0 : index
    %c0_173 = arith.constant 0 : index
    %508 = vector.load %arg6[%c0_172, %c0_173] : memref<2x1xf32, #tpu.memory_space<vmem>>, vector<2x1xf32>
    tpu.vector_store %arg6[%c0_172, %c0_173], %507 {strides = array<i32>} : memref<2x1xf32, #tpu.memory_space<vmem>>, vector<2x1xf32>,
    return
  }
}

</mosaic_0001>

<bundles_post_ra>
// kernel: qnetwork_forward.1
= control target key start
LH: loop header
LB: loop body
LE: loop exit
PB: predicated region body
PF: predicated region fallthrough
CT: control target
= control target key end

     0   :  { %11 = vsyncpa [#allocation3], 0  ;;  %s6823_s0 = inlined_call_operand.vmem [shape: f32[16,32], index: 0, kind: input, shape index: {}]   ;;  %s6824_s1 = inlined_call_operand.vmem [shape: f32[12,32], index: 1, kind: input, shape index: {}]   ;;  %s6825_s2 = inlined_call_operand.vmem [shape: f32[20,32], index: 2, kind: input, shape index: {}]   ;;  %s6826_s3 = inlined_call_operand.vmem [shape: f32[24,20], index: 3, kind: input, shape index: {}]   ;;  %s6827_s4 = inlined_call_operand.vmem [shape: f32[560,64], index: 4, kind: input, shape index: {}]   ;;  %s6828_s5 = inlined_call_operand.vmem [shape: f32[3], index: 5, kind: input, shape index: {}]   ;;  %s6829_s6 = inlined_call_operand.vmem [shape: f32[2,1], index: 6, kind: output, shape index: {}]  }
   0x1   :  { %s28_s23 = sshll.u32 %s6828_s5, 4  ;;  %s29_s23 = int_to_ptr.vmem [resolvable:$true] %s28_s23 }
   0x2   :  { %s5434_s24 = scalar_lea.vmem %s29_s23, 16  ;;  %p5439_p1 = scmp.lt.s32.totalorder %s29_s23, %s29_s23 }
   0x3   :  { %p5435_p0 = scmp.ne.s32.totalorder %s29_s23, %s5434_s24  ;;  %p5440_p2 = scmp.lt.s32.totalorder %s5434_s24, %s5434_s24 }
   0x5   :  { %p5441_p3 = por %p5440_p2, %p5439_p1 }
   0x7   :  { %p5442_p4 = pnand %p5441_p3, %p5435_p0 }
   0x9   :  { %5445 = shalt.err (!%p5442_p4)
}
   0xa   :  { %s5448_s25 = smov [#allocation2]  }
   0xb   :  { %31 = dma.vmem_to_smem %s29_s23, 16, %s5448_s25, [#allocation3]  }
   0xc   :  { %5446 = dma.done.wait [#allocation3], 16  }
   0xd   :  { %5447 = vsyncadd [#allocation3], 4294967280 }
   0xe   :  { %35 = sfence }
   0xf   :  { %v5493_v0 = vld [vmem:[%s6825_s2] sm:$0xff]  ;;  %v5498_v1 = vld [vmem:[%s6827_s4 + $0x8] ss:$0 sm:$0xff]  ;;  %vm328_vm0 = vcmask 261120   ;;  %v5512_v5 = vld [vmem:[%s6825_s2 + $0x10] sm:$0xf]  ;;  %v142_v23 = vlaneseq }
  0x10   :  { %v5503_v2 = vld [vmem:[%s6825_s2 + $0x8] sm:$0xff]  ;;  %v481_v3 = vmul.f32 %v5498_v1, %v5493_v0  ;;  %vm490_vm1 = vcmask 257024   ;;  %v5517_v6 = vld [vmem:[%s6823_s0] sm:$0xff]  ;;  %v483_v7 = vmul.f32 %v5498_v1, %v5512_v5  ;;  %4862 = vmatprep.subr.msk.mxu0 %vm328_vm0, %v5512_v5  ;;  %v4509_v8 = vld [vmem:[%s6827_s4 + $0x10] ss:$0 sm:$0xff]  ;;  %v5449_v38 = vmov 0.0  }
  0x11   :  { %v482_v4 = vmul.f32 %v5498_v1, %v5503_v2  ;;  %v5529_v9 = vld [vmem:[%s6827_s4] ss:$0 sm:$0xff]  ;;  %4863 = vmatpush3.xpose.msk.msra.mxu0 %vm328_vm0, %v5512_v5  ;;  %v326_v11 = vmul.f32 %v4509_v8, %v5517_v6  ;;  %v5541_v13 = vld [vmem:[%s6823_s0 + $0x8] sm:$0xff]  ;;  %v5563_v24 = vshrl.u32 %v142_v23, 7  ;;  %v5565_v26 = vand.u32 127, %v142_v23  ;;  %s321_s0 = sld [smem:[#allocation2]] }
  0x12   :  { %v484_v10 = vsel %vm328_vm0, %v481_v3, 0.0  ;;  %v491_v12 = vsel %vm490_vm1, %v483_v7, 0.0  ;;  %4864 = vmatprep.subr.msk.mxu0 %vm328_vm0, %v5503_v2  ;;  %v469_v14 = vmul.f32 %v5529_v9, %v5517_v6  ;;  %v470_v16 = vmul.f32 %v5529_v9, %v5541_v13  ;;  %v5575_v31 = vld [vmem:[%s6826_s3 + $0x10] sm:$0x1]  ;;  %v5624_v54 = vld [vmem:[%s6826_s3] sm:$0x1] }
  0x13   :  { %485 = vadd.xlane.f32.xlu0 %v484_v10  ;;  %v487_v15 = vsel %vm328_vm0, %v482_v4, 0.0  ;;  %492 = vadd.xlane.f32.xlu1 %v491_v12  ;;  %v327_v19 = vmul.f32 %v4509_v8, %v5541_v13  ;;  %v5568_v27 = vsub.s32 0, %v5563_v24  ;;  %vm6832_vm2 = vcmp.ge.s32.totalorder %v5565_v26, 10  ;;  %s4639_s8 = sld [smem:[#allocation2 + $0x2]] }
  0x14   :  { %4868 = vmatprep.mubr.msk.f32.mxu0 %vm328_vm0, %v326_v11  ;;  %v471_v17 = vsel %vm328_vm0, %v469_v14, 0.0  ;;  %v474_v18 = vsel %vm328_vm0, %v470_v16, 0.0  ;;  %vm6830_vm3 = vcmp.lt.s32.totalorder %v5565_v26, 20  ;;  %vm6831_vm4 = vcmp.lt.s32.totalorder %v5565_v26, 10 }
  0x15   :  { %4865 = vmatpush3.xpose.msk.msra.mxu0 %vm328_vm0, %v5503_v2  ;;  %v5583_v35 = vrot.slane %v5575_v31, %v5568_v27  ;;  %vm170_vm5 = vmand %vm6832_vm2, %vm6830_vm3  ;;  %v5596_v39 = vsel %vm6831_vm4, 1.0, %v5449_v38  ;;  %vm543_vm6 = vcmask 162816   ;;  %v5450_v53 = vmov 0  }
  0x16   :  { %4866 = vmatprep.subr.msk.mxu0 %vm328_vm0, %v5493_v0  ;;  %v5601_v42 = vsel %vm170_vm5, 1.0, %v5449_v38  ;;  %v1292_v4 = vmul.f32 %v5529_v9, %v5493_v0  ;;  %v1294_v11 = vmul.f32 %v5529_v9, %v5512_v5  ;;  %vm608_vm7 = vcmask 1043456  }
  0x17   :  { %488 = vadd.xlane.f32.xlu0 %v487_v15  ;;  %472 = vadd.xlane.f32.xlu1 %v471_v17  ;;  %v5589_v36 = vstv %s321_s0  ;;  %v451_v45 = vmul.f32 %v5596_v39, %v5583_v35  ;;  %v452_v47 = vmul.f32 %v5601_v42, %v5583_v35  ;;  %v1304_v15 = vmul.f32 %v5498_v1, %v5517_v6  ;;  %s4567_s0 = sld [smem:[#allocation2 + $0x1]] }
  0x18   :  { %v1295_v10 = vsel %vm328_vm0, %v1292_v4, 0.0  ;;  %v1301_v14 = vsel %vm490_vm1, %v1294_v11, 0.0  ;;  %4871 = vmatprep.subr.msk.mxu1 %vm608_vm7, %v5512_v5  ;;  %vm201_vm9 = vcmp.ge.s32.totalorder %v5565_v26, 8  ;;  %vm188_vm10 = vcmp.lt.s32.totalorder %v5565_v26, 8 }
  0x19   :  { %4867 = vmatpush3.xpose.msk.msra.mxu0 %vm328_vm0, %v5493_v0  ;;  %v1306_v17 = vsel %vm328_vm0, %v1304_v15, 0.0  ;;  %4872 = vmatpush3.msk.msra.mxu1 %vm608_vm7, %v5512_v5  ;;  %vm205_vm13 = vcmp.lt.s32.totalorder %v5565_v26, 16 }
  0x1a   :  { %4887 = vmatprep.subr.mxu0 %v5541_v13  ;;  %4873 = vmatprep.subr.mxu1 %v5503_v2 }
  0x1b   :  { %475 = vadd.xlane.f32.xlu0 %v474_v18  ;;  %v1305_v18 = vmul.f32 %v5498_v1, %v5541_v13  ;;  %4874 = vmatpush3.msra.mxu1 %v5503_v2 }
  0x1c   :  { %4869 = vmatmul.mubr.msk.f32.vlgmr.msra.gmra.mxu0 %vm328_vm0, %v327_v19  ;;  %4875 = vmatprep.subr.mxu1 %v5493_v0 }
  0x1d   :  { %4888 = vmatpush3.msra.mxu0 %v5541_v13  ;;  %v1309_v19 = vsel %vm328_vm0, %v1305_v18, 0.0  ;;  %4876 = vmatpush3.msra.mxu1 %v5493_v0  ;;  %v5696_v18 = vld [vmem:[%s6827_s4 + $0x78] sm:$0xff] }
  0x1e   :  { %4889 = vmatprep.subr.mxu0 %v5517_v6 }
  0x1f   :  { %4890 = vmatpush3.msra.mxu0 %v5517_v6 }
  0x9c   :  { %v486_v20 = vpop.xlane.xlu0 %485  ;;  %v493_v22 = vpop.xlane.xlu1 %492 }
  0x9d   :  { %494 = vxpose.xlu1.b32.start [1/3] (short) (narrow) %v486_v20, 8  ;;  %v1293_v20 = vmul.f32 %v5529_v9, %v5503_v2 }
  0xa0   :  { %v489_v21 = vpop.xlane.xlu0 %488  ;;  %v473_v25 = vpop.xlane.xlu1 %472 }
  0xa1   :  { %495 = vxpose.xlu1.b32.cont [2/3] (short) (narrow) %v489_v21, 8  ;;  %v1298_v21 = vsel %vm328_vm0, %v1293_v20, 0.0  ;;  %v5712_v20 = vld [vmem:[%s6827_s4 + $0xa8] sm:$0xff] }
  0xa4   :  { %v476_v28 = vpop.xlane.xlu0 %475 }
  0xa5   :  { %496 = vxpose.xlu1.b32.end [3/3] (short) (narrow) %v493_v22, 8 }
  0xc3   :  { %5347 = vset.pattern.permute.xlu1 %v5450_v53 }
  0xdc   :  { %v5570_v30 = vpop.f32.mrf.mxu0 }
  0xde   :  { %v5591_v37 = vpop.f32.mrf.mxu0 }
 0x119   :  { %v510_v29 = vpop.trf.xlu1 }
 0x11a   :  { %v529_v32 = vrot.slane %v510_v29, %v5568_v27 }
 0x11c   :  { %v530_v33 = vadd.f32 %v529_v32, %v473_v25  ;;  %v531_v34 = vadd.f32 %v529_v32, %v476_v28 }
 0x11e   :  { %v533_v40 = vadd.f32 %v5570_v30, %v531_v34  ;;  %v532_v41 = vadd.f32 %v530_v33, %v5591_v37 }
 0x120   :  { %v5604_v43 = vadd.f32 %v5589_v36, %v533_v40  ;;  %v5607_v44 = vadd.f32 %v5589_v36, %v532_v41 }
 0x122   :  { %v4517_v46 = vclamps-f32 %v5607_v44, 15.0  ;;  %v4518_v48 = vclamps-f32 %v5604_v43, 15.0 }
 0x124   :  { %v541_v49 = vmul.f32 %v4517_v46, %v451_v45  ;;  %v542_v51 = vmul.f32 %v4518_v48, %v452_v47 }
 0x126   :  { %v544_v50 = vsel %vm543_vm6, %v541_v49, -inf  ;;  %v547_v52 = vsel %vm543_vm6, %v542_v51, -inf }
 0x127   :  { %545 = vmax.xlane.f32.xlu0 %v544_v50 }
 0x12b   :  { %548 = vmax.xlane.f32.xlu0 %v547_v52 }
 0x158   :  { %46 = vxpose.xlu0.b32.start.end [1/1] (short) (narrow) %v5624_v54, 16 }
 0x181   :  { %5346 = vset.pattern.permute.xlu0 %v5450_v53 }
 0x1b0   :  { %v546_v55 = vpop.xlane.xlu0 %545 }
 0x1b1   :  { %v550_v61 = vsub.f32 %v541_v49, %v546_v55 }
 0x1b3   :  { %v552_v62 = vmul.f32 1.442695, %v550_v61 }
 0x1b4   :  { %v549_v56 = vpop.xlane.xlu0 %548 }
 0x1b5   :  { %v551_v58 = vsub.f32 %v542_v51, %v549_v56 }
 0x1b7   :  { %v554_v60 = vmul.f32 1.442695, %v551_v58 }
 0x1b9   :  { %5348 = vpow2.f32 %v554_v60 }
 0x1ba   :  { %5350 = vpow2.f32 %v552_v62 }
 0x1c6   :  { %v5349_v63 = vpop.eup %5348 }
 0x1c7   :  { %v5627_v3 = vmul.f32 %v5349_v63, %v452_v47  ;;  %v5351_v8 = vpop.eup %5350 }
 0x1c8   :  { %v5636_v12 = vmul.f32 %v5351_v8, %v451_v45 }
 0x1c9   :  { %v561_v7 = vsel %vm543_vm6, %v5627_v3, 0.0 }
 0x1ca   :  { %v558_v16 = vsel %vm543_vm6, %v5636_v12, 0.0 }
 0x1d4   :  { %v62_v57 = vpop.trf.xlu0 }
 0x1d5   :  { %455 = vperm.xlu0 %5346, %v62_v57  }
 0x1d8   :  { %v63_v59 = vpop.trf.xlu0 }
 0x1d9   :  { %460 = vperm.xlu1 %5347, %v63_v59  }
 0x1f4   :  { %562 = vadd.xlane.f32.xlu0 %v561_v7 }
 0x1f8   :  { %1296 = vadd.xlane.f32.xlu0 %v1295_v10 }
 0x1fc   :  { %1302 = vadd.xlane.f32.xlu0 %v1301_v14 }
 0x1fd   :  { %559 = vadd.xlane.f32.xlu1 %v558_v16 }
 0x201   :  { %1307 = vadd.xlane.f32.xlu1 %v1306_v17 }
 0x205   :  { %1310 = vadd.xlane.f32.xlu1 %v1309_v19  ;;  %v5705_v19 = vld [vmem:[%s6827_s4 + $0x70] sm:$0xff] }
 0x209   :  { %1299 = vadd.xlane.f32.xlu1 %v1298_v21  ;;  %v5718_v21 = vld [vmem:[%s6827_s4 + $0x68] sm:$0xff] }
 0x20a   :  { %4905 = vmatprep.subr.mxu0 %v5718_v21 }
 0x229   :  { %419 = vxpose.xlu0.b32.start [1/2] (short) (narrow) %v5591_v37, 24 }
 0x22d   :  { %420 = vxpose.xlu0.b32.end [2/2] (short) (narrow) %v5570_v30, 24 }
 0x232   :  { %110 = vxpose.xlu0.b32.start.end [1/1] (short) (narrow) %v5575_v31, 24 }
 0x250   :  { %v456_v1 = vpop.permute.xlu0 %455 }
 0x251   :  { %v463_v9 = vmul.f32 %v5596_v39, %v456_v1 }
 0x253   :  { %v570_v23 = vmul.f32 %v4517_v46, %v463_v9 }
 0x254   :  { %v461_v22 = vpop.permute.xlu1 %460 }
 0x255   :  { %v464_v25 = vmul.f32 %v5601_v42, %v461_v22  ;;  %v572_v29 = vsel %vm543_vm6, %v570_v23, -inf  ;;  %v5722_v22 = vadd.s32 8, %v5563_v24 }
 0x257   :  { %v571_v28 = vmul.f32 %v4518_v48, %v464_v25  ;;  %vm193_vm8 = vcmp.ge.s32.totalorder %v5722_v22, 10  ;;  %vm180_vm11 = vcmp.lt.s32.totalorder %v5722_v22, 10 }
 0x258   :  { %vm203_vm12 = vmand %vm193_vm8, %vm201_vm9 }
 0x259   :  { %v573_v32 = vsel %vm543_vm6, %v571_v28, -inf  ;;  %vm190_vm15 = vmand %vm180_vm11, %vm188_vm10 }
 0x25a   :  { %v574_v33 = vmax.f32 %v572_v29, %v573_v32  ;;  %vm207_vm5 = vmand %vm203_vm12, %vm205_vm13 }
 0x25b   :  { %vm210_vm4 = vmor %vm190_vm15, %vm207_vm5  ;;  %vm229_vm15 = vcmp.lt.s32.totalorder %v5722_v22, 12  ;;  %vm218_vm5 = vcmp.lt.s32.totalorder %v5563_v24, 6 }
 0x25c   :  { %v575_v30 = vrot.slane %v574_v33, 4 }
 0x25e   :  { %v576_v34 = vmax.f32 %v574_v33, %v575_v30  ;;  %v5744_v30 = vrot.slane %v5624_v54, %v5568_v27 }
 0x260   :  { %v577_v31 = vrot.slane %v576_v34, 2 }
 0x262   :  { %v578_v37 = vmax.f32 %v576_v34, %v577_v31  ;;  %v5749_v31 = vsel %vm188_vm10, 1.0, %v5449_v38 }
 0x263   :  { %v5759_v54 = vmul.f32 %v5749_v31, %v5744_v30 }
 0x264   :  { %v579_v40 = vrot.slane %v578_v37, 1 }
 0x266   :  { %v580_v39 = vmax.f32 %v578_v37, %v579_v40 }
 0x268   :  { %v581_v41 = vsub.f32 %v570_v23, %v580_v39  ;;  %v582_v45 = vsub.f32 %v571_v28, %v580_v39 }
 0x26a   :  { %v583_v44 = vmul.f32 1.442695, %v581_v41  ;;  %v585_v46 = vmul.f32 1.442695, %v582_v45  ;;  %v5752_v41 = vsel %vm210_vm4, 1.0, %v5449_v38  ;;  %vm6833_vm4 = vmmov 0  }
 0x26c   :  { %5352 = vpow2.f32 %v583_v44 }
 0x26d   :  { %5354 = vpow2.f32 %v585_v46 }
 0x279   :  { %v5353_v42 = vpop.eup %5352 }
 0x27a   :  { %v5355_v43 = vpop.eup %5354  ;;  %v587_v47 = vmul.f32 %v5353_v42, %v463_v9 }
 0x27b   :  { %v588_v48 = vmul.f32 %v5355_v43, %v464_v25  ;;  %v5727_v25 = vadd.s32 16, %v5563_v24  ;;  %v5763_v43 = vmul.f32 %v5752_v41, %v5744_v30 }
 0x27c   :  { %v589_v49 = vsel %vm543_vm6, %v587_v47, 0.0 }
 0x27d   :  { %v590_v50 = vsel %vm543_vm6, %v588_v48, 0.0  ;;  %v563_v53 = vpop.xlane.xlu0 %562  ;;  %vm6835_vm14 = vcmp.lt.s32.totalorder %v5727_v25, 20 }
 0x27e   :  { %v591_v51 = vadd.f32 %v590_v50, %v589_v49  ;;  %v565_v57 = vadd.f32 1e-06, %v563_v53  ;;  %vm204_vm3 = vmand %vm6835_vm14, %vm201_vm9  ;;  %vm6841_vm14 = vcmp.lt.s32.totalorder %v5565_v26, 20 }
 0x27f   :  { %vm208_vm2 = vmand %vm204_vm3, %vm205_vm13  ;;  %vm1372_vm3 = vcmask 125952   ;;  %vm226_vm13 = vcmp.ge.s32.totalorder %v5563_v24, 6 }
 0x280   :  { %v592_v52 = vrot.slane %v591_v51, 4  ;;  %5356 = vrcp.f32 %v565_v57  ;;  %v5755_v45 = vsel %vm208_vm2, 1.0, %v5449_v38  ;;  %vm767_vm2 = vcmask 130048  }
 0x281   :  { %v1297_v1 = vpop.xlane.xlu0 %1296  ;;  %v5776_v50 = vmul.f32 %v5755_v45, %v5744_v30 }
 0x282   :  { %v593_v55 = vadd.f32 %v592_v52, %v591_v51 }
 0x284   :  { %v594_v56 = vrot.slane %v593_v55, 2 }
 0x285   :  { %v1303_v9 = vpop.xlane.xlu0 %1302 }
 0x286   :  { %v595_v58 = vadd.f32 %v594_v56, %v593_v55  ;;  %v560_v59 = vpop.xlane.xlu1 %559 }
 0x287   :  { %v564_v60 = vadd.f32 1e-06, %v560_v59 }
 0x288   :  { %v596_v61 = vrot.slane %v595_v58, 1 }
 0x289   :  { %5358 = vrcp.f32 %v564_v60 }
 0x28a   :  { %v597_v62 = vadd.f32 %v596_v61, %v595_v58  ;;  %v1308_v63 = vpop.xlane.xlu1 %1307 }
 0x28b   :  { %1312 = vxpose.xlu1.b32.start [1/2] (short) (narrow) %v1308_v63, 8 }
 0x28c   :  { %v598_v4 = vadd.f32 1e-06, %v597_v62 }
 0x28d   :  { %v5357_v8 = vpop.eup %5356 }
 0x28e   :  { %5360 = vrcp.f32 %v598_v4  ;;  %v1311_v7 = vpop.xlane.xlu1 %1310  ;;  %v569_v14 = vmul.f32 %v5357_v8, %v5627_v3  ;;  %v5684_v3 = vld [vmem:[%s6827_s4 + $0x88] sm:$0xff]  ;;  %v5798_v8 = vld [vmem:[%s6827_s4 + $0xa0] sm:$0xff] }
 0x28f   :  { %1313 = vxpose.xlu1.b32.end [2/2] (short) (narrow) %v1311_v7, 8 }
 0x292   :  { %v1300_v28 = vpop.xlane.xlu1 %1299 }
 0x296   :  { %v5359_v10 = vpop.eup %5358 }
 0x297   :  { %v568_v11 = vmul.f32 %v5359_v10, %v5636_v12  ;;  %v5689_v12 = vld [vmem:[%s6827_s4 + $0x80] sm:$0xff]  ;;  %v5806_v10 = vld [vmem:[%s6827_s4 + $0x98] sm:$0xff] }
 0x299   :  { %4877 = vmatprep.mubr.msk.f32.mxu1 %vm543_vm6, %v568_v11 }
 0x29a   :  { %4878 = vmatmul.mubr.msk.f32.vlgmr.msra.gmra.mxu1 %vm543_vm6, %v569_v14 }
 0x29b   :  { %v5361_v15 = vpop.eup %5360  ;;  %4884 = vmatprep.mubr.msk.f32.mxu1 %vm543_vm6, %v568_v11  ;;  %v5813_v11 = vld [vmem:[%s6827_s4 + $0x90] sm:$0xff] }
 0x29c   :  { %v601_v16 = vmul.f32 %v5361_v15, %v588_v48  ;;  %v600_v17 = vmul.f32 %v5361_v15, %v587_v47 }
 0x29e   :  { %4880 = vmatprep.subr.msk.mxu1 %vm543_vm6, %v601_v16 }
 0x29f   :  { %4881 = vmatpush3.xpose.msk.msra.mxu1 %vm543_vm6, %v601_v16 }
 0x2a0   :  { %4882 = vmatprep.subr.msk.mxu1 %vm543_vm6, %v600_v17 }
 0x2a3   :  { %4883 = vmatpush3.xpose.msk.msra.mxu1 %vm543_vm6, %v600_v17  ;;  %v5826_v17 = vld [vmem:[%s6827_s4 + $0x60] sm:$0xff] }
 0x2a4   :  { %4894 = vmatprep.subr.mxu1 %v5684_v3 }
 0x2a5   :  { %v435_v23 = vpop.trf.xlu0 }
 0x2a6   :  { %4885 = vmatmul.mubr.msk.f32.vlgmr.msra.gmra.mxu1 %vm543_vm6, %v569_v14 }
 0x2a7   :  { %4895 = vmatpush3.msra.mxu1 %v5684_v3 }
 0x2a8   :  { %4896 = vmatprep.subr.mxu1 %v5689_v12 }
 0x2a9   :  { %4897 = vmatpush3.msra.mxu1 %v5689_v12  ;;  %v436_v29 = vpop.trf.xlu0 }
 0x2aa   :  { %4898 = vmatprep.subr.mxu1 %v5696_v18 }
 0x2ab   :  { %4899 = vmatpush3.msra.mxu1 %v5696_v18 }
 0x2ac   :  { %4900 = vmatprep.subr.mxu1 %v5705_v19 }
 0x2ad   :  { %4901 = vmatpush3.msra.mxu1 %v5705_v19  ;;  %v437_v34 = vpop.trf.xlu0 }
 0x2ae   :  { %4916 = vmatprep.subr.mxu1 %v5712_v20 }
 0x2b1   :  { %v126_v60 = vpop.trf.xlu0 }
 0x2b5   :  { %v127_v61 = vpop.trf.xlu0 }
 0x2b9   :  { %v128_v62 = vpop.trf.xlu0 }
 0x307   :  { %v1328_v32 = vpop.trf.xlu1 }
 0x308   :  { %v1347_v33 = vrot.slane %v1328_v32, %v5568_v27 }
 0x30a   :  { %v1348_v37 = vadd.f32 %v1347_v33, %v1297_v1  ;;  %v1349_v40 = vadd.f32 %v1347_v33, %v1300_v28  ;;  %v1350_v39 = vadd.f32 %v1347_v33, %v1303_v9  ;;  %v5833_v1 = vld [vmem:[%s6827_s4 + $0x58] sm:$0xff]  ;;  %v5842_v9 = vld [vmem:[%s6827_s4 + $0x50] sm:$0xff] }
 0x30c   :  { %v1351_v44 = vadd.f32 %v1348_v37, %v435_v23  ;;  %v1352_v46 = vadd.f32 %v1349_v40, %v436_v29  ;;  %v1353_v42 = vadd.f32 %v1350_v39, %v437_v34 }
 0x30e   :  { %v5766_v47 = vadd.f32 %v1351_v44, %v5589_v36  ;;  %v5769_v48 = vadd.f32 %v1352_v46, %v5589_v36  ;;  %v5772_v49 = vadd.f32 %v1353_v42, %v5589_v36  ;;  %v5853_v44 = vld [vmem:[%s6827_s4 + $0xc8] sm:$0xff]  ;;  %v5860_v46 = vld [vmem:[%s6827_s4 + $0xc0] sm:$0xff]  ;;  %v5867_v42 = vld [vmem:[%s6827_s4 + $0xb8] sm:$0xff] }
 0x310   :  { %v4537_v51 = vclamps-f32 %v5766_v47, 15.0  ;;  %v4538_v52 = vclamps-f32 %v5769_v48, 15.0  ;;  %v4539_v53 = vclamps-f32 %v5772_v49, 15.0 }
 0x312   :  { %v1363_v55 = vmul.f32 %v4537_v51, %v5759_v54  ;;  %v1364_v36 = vmul.f32 %v4538_v52, %v5763_v43  ;;  %v1365_v56 = vmul.f32 %v4539_v53, %v5776_v50 }
 0x314   :  { %v1366_v57 = vsel %vm767_vm2, %v1363_v55, -inf  ;;  %v1369_v58 = vsel %vm767_vm2, %v1364_v36, -inf  ;;  %v1373_v59 = vsel %vm1372_vm3, %v1365_v56, -inf }
 0x315   :  { %1367 = vmax.xlane.f32.xlu1 %v1366_v57  ;;  %1370 = vmax.xlane.f32.xlu0 %v1369_v58 }
 0x319   :  { %1374 = vmax.xlane.f32.xlu1 %v1373_v59 }
 0x32a   :  { %1276 = vperm.xlu1 %5347, %v126_v60  }
 0x32b   :  { %1281 = vperm.xlu0 %5346, %v127_v61  }
 0x32e   :  { %1286 = vperm.xlu1 %5347, %v128_v62  }
 0x35a   :  { %v4879_v63 = vpop.f32.mrf.mxu1 }
 0x35b   :  { %v1020_v14 = vmul.f32 %v4879_v63, %v5541_v13 }
 0x35c   :  { %v677_v4 = vpop.f32.mrf.mxu1 }
 0x35d   :  { %v1019_v7 = vmul.f32 %v677_v4, %v5517_v6  ;;  %4902 = vmatprep.mubr.msk.f32.mxu1 %vm328_vm0, %v677_v4 }
 0x35e   :  { %4903 = vmatmul.mubr.msk.f32.vlgmr.msra.gmra.mxu1 %vm328_vm0, %v4879_v63 }
 0x35f   :  { %4917 = vmatpush3.msra.mxu1 %v5712_v20  ;;  %4924 = vmatprep.mubr.msk.f32.mxu1 %vm328_vm0, %v1019_v7 }
 0x360   :  { %4918 = vmatprep.subr.mxu1 %v5798_v8 }
 0x361   :  { %4919 = vmatpush3.msra.mxu1 %v5798_v8 }
 0x362   :  { %4920 = vmatprep.subr.mxu1 %v5806_v10 }
 0x363   :  { %4921 = vmatpush3.msra.mxu1 %v5806_v10 }
 0x364   :  { %4922 = vmatprep.subr.mxu1 %v5813_v11 }
 0x365   :  { %4923 = vmatpush3.msra.mxu1 %v5813_v11 }
 0x366   :  { %v4886_v15 = vpop.f32.mrf.mxu1  ;;  %4925 = vmatmul.mubr.msk.f32.vlgmr.msra.gmra.mxu1 %vm328_vm0, %v1020_v14  ;;  %4938 = vmatprep.subr.mxu1 %v5449_v38 }
 0x367   :  { %4942 = vmatprep.mubr.msk.f32.mxu1 %vm6833_vm4, %v5449_v38 }
 0x368   :  { %v758_v16 = vpop.f32.mrf.mxu1 }
 0x369   :  { %4891 = vmatprep.mubr.msk.f32.mxu0 %vm767_vm2, %v758_v16 }
 0x36a   :  { %4892 = vmatmul.mubr.msk.f32.vlgmr.msra.gmra.mxu0 %vm767_vm2, %v4886_v15 }
 0x36b   :  { %4906 = vmatpush3.msra.mxu0 %v5718_v21  ;;  %4913 = vmatprep.mubr.msk.f32.mxu0 %vm328_vm0, %v5517_v6 }
 0x36c   :  { %4907 = vmatprep.subr.mxu0 %v5826_v17 }
 0x36d   :  { %4908 = vmatpush3.msra.mxu0 %v5826_v17 }
 0x36e   :  { %4909 = vmatprep.subr.mxu0 %v5833_v1 }
 0x36f   :  { %4910 = vmatpush3.msra.mxu0 %v5833_v1 }
 0x370   :  { %4911 = vmatprep.subr.mxu0 %v5842_v9 }
 0x371   :  { %4912 = vmatpush3.msra.mxu0 %v5842_v9 }
 0x372   :  { %4914 = vmatmul.mubr.msk.f32.vlgmr.msra.gmra.mxu0 %vm328_vm0, %v5541_v13  ;;  %4927 = vmatprep.subr.mxu0 %v5853_v44 }
 0x373   :  { %4928 = vmatpush3.msra.mxu0 %v5853_v44 }
 0x374   :  { %4929 = vmatprep.subr.mxu0 %v5860_v46 }
 0x375   :  { %4930 = vmatpush3.msra.mxu0 %v5860_v46 }
 0x376   :  { %4931 = vmatprep.subr.mxu0 %v5867_v42 }
 0x377   :  { %4932 = vmatpush3.msra.mxu0 %v5867_v42 }
 0x39e   :  { %v1368_v23 = vpop.xlane.xlu1 %1367  ;;  %v1371_v28 = vpop.xlane.xlu0 %1370 }
 0x39f   :  { %v1376_v29 = vsub.f32 %v1363_v55, %v1368_v23  ;;  %v1377_v32 = vsub.f32 %v1364_v36, %v1371_v28  ;;  %v5873_v55 = vld [vmem:[%s6827_s4 + $0xb0] sm:$0xff] }
 0x3a0   :  { %4933 = vmatprep.subr.mxu0 %v5873_v55 }
 0x3a1   :  { %v1379_v33 = vmul.f32 1.442695, %v1376_v29  ;;  %v1381_v34 = vmul.f32 1.442695, %v1377_v32  ;;  %4934 = vmatpush3.msra.mxu0 %v5873_v55 }
 0x3a2   :  { %v1375_v37 = vpop.xlane.xlu1 %1374  ;;  %4945 = vmatprep.subr.mxu0 %v5449_v38 }
 0x3a3   :  { %5362 = vpow2.f32 %v1379_v33  ;;  %v1378_v40 = vsub.f32 %v1365_v56, %v1375_v37 }
 0x3a4   :  { %5364 = vpow2.f32 %v1381_v34 }
 0x3a5   :  { %v1383_v39 = vmul.f32 1.442695, %v1378_v40 }
 0x3a6   :  { %v5901_v15 = vpop.permute.xlu0 %1281 }
 0x3a7   :  { %5366 = vpow2.f32 %v1383_v39 }
 0x3b0   :  { %v5363_v36 = vpop.eup %5362 }
 0x3b1   :  { %v5365_v56 = vpop.eup %5364  ;;  %v1385_v57 = vmul.f32 %v5363_v36, %v5759_v54 }
 0x3b2   :  { %v1386_v58 = vmul.f32 %v5365_v56, %v5763_v43  ;;  %v1290_v56 = vmul.f32 %v5752_v41, %v5901_v15 }
 0x3b3   :  { %v1388_v59 = vsel %vm767_vm2, %v1385_v57, 0.0 }
 0x3b4   :  { %v5367_v60 = vpop.eup %5366  ;;  %1389 = vadd.xlane.f32.xlu1 %v1388_v59  ;;  %v1391_v61 = vsel %vm767_vm2, %v1386_v58, 0.0  ;;  %v1407_v59 = vmul.f32 %v4538_v52, %v1290_v56 }
 0x3b5   :  { %1392 = vadd.xlane.f32.xlu0 %v1391_v61  ;;  %v1387_v62 = vmul.f32 %v5367_v60, %v5776_v50  ;;  %v5895_v50 = vpop.permute.xlu1 %1276 }
 0x3b6   :  { %v1289_v36 = vmul.f32 %v5749_v31, %v5895_v50 }
 0x3b7   :  { %v1394_v63 = vsel %vm1372_vm3, %v1387_v62, 0.0 }
 0x3b8   :  { %1395 = vadd.xlane.f32.xlu1 %v1394_v63 }
 0x3b9   :  { %v5899_v14 = vpop.permute.xlu1 %1286 }
 0x42a   :  { %v4893_v54 = vpop.f32.mrf.mxu0 }
 0x42b   :  { %v1109_v7 = vmul.f32 %v4893_v54, %v5541_v13 }
 0x42c   :  { %v840_v4 = vpop.f32.mrf.mxu0 }
 0x42d   :  { %v1108_v43 = vmul.f32 %v840_v4, %v5517_v6 }
 0x42f   :  { %4935 = vmatprep.mubr.msk.f32.mxu0 %vm328_vm0, %v1108_v43 }
 0x430   :  { %4936 = vmatmul.mubr.msk.f32.vlgmr.msra.gmra.mxu0 %vm328_vm0, %v1109_v7 }
 0x431   :  { %4946 = vmatpush3.msra.mxu0 %v5541_v13  ;;  %4949 = vmatprep.mubr.msk.f32.mxu0 %vm6833_vm4, %v5449_v38 }
 0x432   :  { %4947 = vmatprep.subr.mxu0 %v5449_v38 }
 0x433   :  { %4948 = vmatpush3.msra.mxu0 %v5517_v6 }
 0x434   :  { %4973 = vmatprep.subr.mxu0 %v5449_v38 }
 0x43d   :  { %v1390_v16 = vpop.xlane.xlu1 %1389 }
 0x43e   :  { %v1397_v23 = vadd.f32 1e-06, %v1390_v16  ;;  %v1393_v28 = vpop.xlane.xlu0 %1392 }
 0x43f   :  { %v1398_v29 = vadd.f32 1e-06, %v1393_v28 }
 0x440   :  { %5368 = vrcp.f32 %v1397_v23 }
 0x441   :  { %v1396_v13 = vpop.xlane.xlu1 %1395  ;;  %5370 = vrcp.f32 %v1398_v29 }
 0x442   :  { %v1399_v32 = vadd.f32 1e-06, %v1396_v13 }
 0x444   :  { %5372 = vrcp.f32 %v1399_v32 }
 0x44d   :  { %v5369_v33 = vpop.eup %5368 }
 0x44e   :  { %v5903_v34 = vmul.f32 %v5369_v33, %v1385_v57  ;;  %v5371_v37 = vpop.eup %5370  ;;  %v1291_v57 = vmul.f32 %v5755_v45, %v5899_v14 }
 0x44f   :  { %v5911_v6 = vmul.f32 %v5371_v37, %v1386_v58  ;;  %v1406_v58 = vmul.f32 %v4537_v51, %v1289_v36 }
 0x450   :  { %4950 = vmatmul.mubr.msk.f32.vlgmr.msra.gmra.mxu0 %vm767_vm2, %v5903_v34  ;;  %v1408_v60 = vmul.f32 %v4539_v53, %v1291_v57 }
 0x451   :  { %4952 = vmatprep.mubr.msk.f32.mxu0 %vm6833_vm4, %v5449_v38  ;;  %4974 = vmatpush3.msk.msra.mxu0 %vm608_vm7, %v5512_v5  ;;  %v5373_v40 = vpop.eup %5372  ;;  %v1409_v61 = vsel %vm767_vm2, %v1406_v58, -inf }
 0x452   :  { %4975 = vmatprep.subr.mxu0 %v5449_v38  ;;  %v5921_v39 = vmul.f32 %v5373_v40, %v1387_v62  ;;  %v1410_v62 = vsel %vm767_vm2, %v1407_v59, -inf  ;;  %v1411_v31 = vsel %vm1372_vm3, %v1408_v60, -inf }
 0x453   :  { %4976 = vmatpush3.msra.mxu0 %v5503_v2  ;;  %v1412_v63 = vmax.f32 %v1409_v61, %v1410_v62 }
 0x454   :  { %4953 = vmatmul.mubr.msk.f32.gmra.mxu0 %vm767_vm2, %v5911_v6  ;;  %4977 = vmatprep.subr.mxu0 %v5449_v38 }
 0x455   :  { %4955 = vmatprep.mubr.msk.f32.mxu0 %vm6833_vm4, %v5449_v38  ;;  %4978 = vmatpush3.msra.mxu0 %v5493_v0  ;;  %v1413_v41 = vmax.f32 %v1412_v63, %v1411_v31 }
 0x456   :  { %5005 = vmatprep.subr.mxu0 %v5449_v38 }
 0x457   :  { %v1414_v54 = vrot.slane %v1413_v41, 4 }
 0x458   :  { %4956 = vmatmul.mubr.msk.f32.gmra.mxu0 %vm767_vm2, %v5921_v39 }
 0x459   :  { %4979 = vmatprep.mubr.msk.f32.mxu0 %vm6833_vm4, %v5449_v38  ;;  %v1415_v4 = vmax.f32 %v1413_v41, %v1414_v54 }
 0x45b   :  { %v1416_v45 = vrot.slane %v1415_v4, 2 }
 0x45d   :  { %v1417_v43 = vmax.f32 %v1415_v4, %v1416_v45  ;;  %v5947_v4 = vadd.s32 1, %v5563_v24 }
 0x45f   :  { %v1418_v47 = vrot.slane %v1417_v43, 1  ;;  %v266_v45 = vmul.u32 8, %v5947_v4 }
 0x461   :  { %v1419_v51 = vmax.f32 %v1417_v43, %v1418_v47  ;;  %v4915_v43 = vpop.f32.mrf.mxu0  ;;  %vm267_vm10 = vcmp.lt.s32.totalorder %v5565_v26, %v266_v45 }
 0x463   :  { %v1420_v7 = vsub.f32 %v1406_v58, %v1419_v51  ;;  %v1421_v48 = vsub.f32 %v1407_v59, %v1419_v51  ;;  %v1422_v49 = vsub.f32 %v1408_v60, %v1419_v51  ;;  %v1010_v51 = vpop.f32.mrf.mxu0 }
 0x465   :  { %v1423_v52 = vmul.f32 1.442695, %v1420_v7  ;;  %v1425_v16 = vmul.f32 1.442695, %v1421_v48  ;;  %v1427_v53 = vmul.f32 1.442695, %v1422_v49 }
 0x467   :  { %5374 = vpow2.f32 %v1423_v52 }
 0x468   :  { %5376 = vpow2.f32 %v1425_v16 }
 0x469   :  { %5378 = vpow2.f32 %v1427_v53 }
 0x474   :  { %v5375_v23 = vpop.eup %5374 }
 0x475   :  { %v5377_v28 = vpop.eup %5376  ;;  %v1429_v29 = vmul.f32 %v5375_v23, %v1289_v36 }
 0x476   :  { %v1430_v13 = vmul.f32 %v5377_v28, %v1290_v56  ;;  %v5379_v32 = vpop.eup %5378  ;;  %v263_v56 = vmul.u32 8, %v5563_v24 }
 0x477   :  { %v1432_v33 = vsel %vm767_vm2, %v1429_v29, 0.0  ;;  %v1431_v40 = vmul.f32 %v5379_v32, %v1291_v57  ;;  %v4904_v57 = vpop.f32.mrf.mxu1 }
 0x478   :  { %v1433_v37 = vsel %vm767_vm2, %v1430_v13, 0.0  ;;  %vm264_vm9 = vcmp.ge.s32.totalorder %v5565_v26, %v263_v56  ;;  %v1016_v7 = vadd.f32 %v4915_v43, %v4904_v57 }
 0x479   :  { %v1434_v61 = vadd.f32 %v1433_v37, %v1432_v33  ;;  %v1435_v58 = vsel %vm1372_vm3, %v1431_v40, 0.0  ;;  %v929_v47 = vpop.f32.mrf.mxu1  ;;  %vm268_vm12 = vmand %vm264_vm9, %vm267_vm10 }
 0x47a   :  { %v1011_v52 = vadd.f32 %v1010_v51, %v929_v47  ;;  %v4506_v16 = vsel %vm268_vm12, 1.0, %v5449_v38  ;;  %vm6838_vm12 = vcmp.lt.s32.totalorder %v5565_v26, 10 }
 0x47b   :  { %v1436_v59 = vadd.f32 %v1435_v58, %v1434_v61  ;;  %v4926_v48 = vpop.f32.mrf.mxu1  ;;  %v5955_v37 = vmul.f32 %v4506_v16, %v5744_v30 }
 0x47c   :  { %v1107_v49 = vadd.f32 %v4926_v48, %v1016_v7 }
 0x47d   :  { %v1437_v62 = vrot.slane %v1436_v59, 4  ;;  %v1097_v53 = vpop.f32.mrf.mxu1 }
 0x47e   :  { %v1106_v32 = vadd.f32 %v1097_v53, %v1011_v52 }
 0x47f   :  { %v1438_v60 = vadd.f32 %v1437_v62, %v1436_v59 }
 0x481   :  { %v1439_v31 = vrot.slane %v1438_v60, 2 }
 0x483   :  { %v1440_v63 = vadd.f32 %v1439_v31, %v1438_v60  ;;  %v6037_v60 = vld [vmem:[%s6827_s4 + $0x18] ss:$0 sm:$0xff] }
 0x485   :  { %v1441_v41 = vrot.slane %v1440_v63, 1 }
 0x487   :  { %v1442_v54 = vadd.f32 %v1441_v41, %v1440_v63 }
 0x489   :  { %v1443_v36 = vadd.f32 1e-06, %v1442_v54 }
 0x48b   :  { %5380 = vrcp.f32 %v1443_v36 }
 0x498   :  { %v5381_v33 = vpop.eup %5380 }
 0x499   :  { %v1447_v59 = vmul.f32 %v5381_v33, %v1431_v40  ;;  %v1446_v30 = vmul.f32 %v5381_v33, %v1430_v13  ;;  %v1445_v62 = vmul.f32 %v5381_v33, %v1429_v29  ;;  %v6032_v40 = vld [vmem:[%s6824_s1] sm:$0xff] }
 0x4f0   :  { %v4937_v23 = vpop.f32.mrf.mxu0 }
 0x4f1   :  { %v1196_v28 = vadd.f32 %v4937_v23, %v1107_v49  ;;  %v6111_v23 = vld [vmem:[%s6824_s1 + $0x8] sm:$0xf] }
 0x4f2   :  { %v1186_v61 = vpop.f32.mrf.mxu0 }
 0x4f3   :  { %v1195_v58 = vadd.f32 %v1186_v61, %v1106_v32  ;;  %4939 = vmatpush3.msra.mxu1 %v1196_v28  ;;  %v2309_v32 = vmul.f32 %v6037_v60, %v6111_v23 }
 0x4f4   :  { %4940 = vmatprep.subr.mxu1 %v5449_v38 }
 0x4f5   :  { %4941 = vmatpush3.msra.mxu1 %v1195_v58  ;;  %v2313_v33 = vsel %vm490_vm1, %v2309_v32, 0.0 }
 0x4f6   :  { %4943 = vmatmul.mubr.msk.f32.vlgmr.msra.gmra.mxu1 %vm767_vm2, %v5955_v37  ;;  %4958 = vmatprep.subr.mxu1 %v5449_v38 }
 0x4f7   :  { %4959 = vmatpush3.xpose.msk.msra.mxu1 %vm767_vm2, %v1447_v59  ;;  %4964 = vmatprep.mubr.msk.f32.mxu1 %vm6833_vm4, %v5449_v38 }
 0x4f8   :  { %4960 = vmatprep.subr.mxu1 %v5449_v38 }
 0x4fb   :  { %4961 = vmatpush3.xpose.msk.msra.mxu1 %vm767_vm2, %v1446_v30 }
 0x4fc   :  { %4962 = vmatprep.subr.mxu1 %v5449_v38 }
 0x4ff   :  { %4963 = vmatpush3.xpose.msk.msra.mxu1 %vm767_vm2, %v1445_v62 }
 0x500   :  { %4988 = vmatprep.subr.mxu1 %v5449_v38 }
 0x502   :  { %4965 = vmatmul.mubr.msk.f32.vlgmr.msra.gmra.mxu1 %vm767_vm2, %v5903_v34 }
 0x503   :  { %4967 = vmatprep.mubr.msk.f32.mxu1 %vm6833_vm4, %v5449_v38  ;;  %4989 = vmatpush3.msra.mxu1 %v5684_v3 }
 0x504   :  { %4990 = vmatprep.subr.mxu1 %v5449_v38 }
 0x505   :  { %4991 = vmatpush3.msra.mxu1 %v5689_v12 }
 0x506   :  { %4968 = vmatmul.mubr.msk.f32.gmra.mxu1 %vm767_vm2, %v5911_v6  ;;  %4992 = vmatprep.subr.mxu1 %v5449_v38  ;;  %v6021_v6 = vld [vmem:[%s6827_s4 + $0x20] ss:$0 sm:$0xff] }
 0x507   :  { %4970 = vmatprep.mubr.msk.f32.mxu1 %vm6833_vm4, %v5449_v38  ;;  %4993 = vmatpush3.msra.mxu1 %v5696_v18  ;;  %v2321_v29 = vmul.f32 %v6021_v6, %v5503_v2  ;;  %v2322_v13 = vmul.f32 %v6021_v6, %v5512_v5 }
 0x508   :  { %4994 = vmatprep.subr.mxu1 %v5449_v38 }
 0x509   :  { %4995 = vmatpush3.msra.mxu1 %v5705_v19 }
 0x50a   :  { %4971 = vmatmul.mubr.msk.f32.gmra.mxu1 %vm767_vm2, %v5921_v39  ;;  %5022 = vmatprep.subr.mxu1 %v5449_v38  ;;  %v2320_v39 = vmul.f32 %v6021_v6, %v5493_v0  ;;  %vm6836_vm2 = vcmp.ge.s32.totalorder %v5565_v26, 10 }
 0x50b   :  { %4996 = vmatprep.mubr.msk.f32.mxu1 %vm6833_vm4, %v5449_v38  ;;  %vm232_vm3 = vmand %vm226_vm13, %vm6836_vm2 }
 0x50c   :  { %v2323_v31 = vsel %vm328_vm0, %v2320_v39, 0.0  ;;  %vm6837_vm9 = vmmov %vm6836_vm2 }
 0x50d   :  { %2324 = vadd.xlane.f32.xlu1 %v2323_v31  ;;  %vm233_vm10 = vmand %vm229_vm15, %vm6837_vm9 }
 0x50e   :  { %vm6161_vm13 = vmand %vm232_vm3, %vm6841_vm14 }
 0x50f   :  { %vm6844_vm15 = vmmov %vm6841_vm14 }
 0x510   :  { %v1523_v3 = vpop.f32.mrf.mxu0  ;;  %vm235_vm2 = vmand %vm233_vm10, %vm6844_vm15  ;;  %vm242_vm10 = vcmp.lt.s32.totalorder %v5565_v26, 6 }
 0x511   :  { %4997 = vmatmul.mubr.msk.f32.vlgmr.msra.gmra.mxu1 %vm328_vm0, %v1523_v3  ;;  %vm244_vm15 = vmand %vm180_vm11, %vm242_vm10  ;;  %v4503_v22 = vsel %vm242_vm10, 1.0, %v5449_v38  ;;  %vm3197_vm11 = vcmask 93184  }
 0x512   :  { %v4951_v12 = vpop.f32.mrf.mxu0  ;;  %4999 = vmatprep.mubr.msk.f32.mxu1 %vm6833_vm4, %v5449_v38  ;;  %5023 = vmatpush3.msra.mxu1 %v5712_v20 }
 0x513   :  { %5024 = vmatprep.subr.mxu1 %v5449_v38 }
 0x514   :  { %v1528_v18 = vpop.f32.mrf.mxu0  ;;  %5025 = vmatpush3.msra.mxu1 %v5798_v8  ;;  %v1892_v8 = vmul.f32 %v1523_v3, %v5493_v0  ;;  %v2329_v0 = vsel %vm490_vm1, %v2322_v13, 0.0 }
 0x515   :  { %5000 = vmatmul.mubr.msk.f32.gmra.mxu1 %vm328_vm0, %v1528_v18  ;;  %5026 = vmatprep.subr.mxu1 %v5449_v38 }
 0x516   :  { %v4954_v19 = vpop.f32.mrf.mxu0  ;;  %5002 = vmatprep.mubr.msk.f32.mxu1 %vm6833_vm4, %v5449_v38  ;;  %5027 = vmatpush3.msra.mxu1 %v5806_v10  ;;  %v1893_v10 = vmul.f32 %v1528_v18, %v5503_v2  ;;  %v2326_v2 = vsel %vm328_vm0, %v2321_v29, 0.0  ;;  %v4568_v18 = vld [vmem:[%s6827_s4 + $0x28] ss:$0 sm:$0xff] }
 0x517   :  { %5028 = vmatprep.subr.mxu1 %v5449_v38  ;;  %2330 = vadd.xlane.f32.xlu0 %v2329_v0 }
 0x518   :  { %v1533_v34 = vpop.f32.mrf.mxu0  ;;  %5029 = vmatpush3.msra.mxu1 %v5813_v11  ;;  %2327 = vadd.xlane.f32.xlu1 %v2326_v2 }
 0x519   :  { %5003 = vmatmul.mubr.msk.f32.gmra.mxu1 %vm328_vm0, %v1533_v34  ;;  %5056 = vmatprep.subr.mxu1 %v5449_v38  ;;  %v1894_v11 = vmul.f32 %v1533_v34, %v5512_v5  ;;  %v2308_v5 = vmul.f32 %v6037_v60, %v6032_v40 }
 0x51a   :  { %v4957_v20 = vpop.f32.mrf.mxu0  ;;  %5030 = vmatprep.mubr.msk.f32.mxu1 %vm6833_vm4, %v5449_v38 }
 0x51b   :  { %v2310_v63 = vsel %vm328_vm0, %v2308_v5, 0.0  ;;  %2314 = vadd.xlane.f32.xlu0 %v2313_v33  ;;  %v2175_v20 = vmul.f32 %v4568_v18, %v6032_v40 }
 0x51c   :  { %2311 = vadd.xlane.f32.xlu1 %v2310_v63 }
 0x51d   :  { %5031 = vmatmul.mubr.msk.f32.vlgmr.msra.gmra.mxu1 %vm328_vm0, %v1892_v8 }
 0x51e   :  { %5033 = vmatprep.mubr.msk.f32.mxu1 %vm6833_vm4, %v5449_v38 }
 0x521   :  { %5034 = vmatmul.mubr.msk.f32.gmra.mxu1 %vm328_vm0, %v1893_v10 }
 0x522   :  { %5036 = vmatprep.mubr.msk.f32.mxu1 %vm6833_vm4, %v5449_v38 }
 0x525   :  { %5037 = vmatmul.mubr.msk.f32.gmra.mxu1 %vm328_vm0, %v1894_v11  ;;  %v2176_v11 = vmul.f32 %v4568_v18, %v6111_v23 }
 0x526   :  { %5062 = vmatprep.mubr.msk.f32.mxu1 %vm6833_vm4, %v5449_v38 }
 0x596   :  { %v2325_v28 = vpop.xlane.xlu1 %2324 }
 0x597   :  { %2332 = vxpose.xlu1.b32.start [1/3] (short) (narrow) %v2325_v28, 8 }
 0x5a0   :  { %v2331_v58 = vpop.xlane.xlu0 %2330 }
 0x5a1   :  { %v2328_v61 = vpop.xlane.xlu1 %2327 }
 0x5a2   :  { %2333 = vxpose.xlu1.b32.cont [2/3] (short) (narrow) %v2328_v61, 8  ;;  %v6180_v61 = vsel %vm235_vm2, 1.0, %v5449_v38 }
 0x5a3   :  { %v2291_v18 = vmul.f32 %v6180_v61, %v5583_v35 }
 0x5a5   :  { %v2312_v5 = vpop.xlane.xlu1 %2311 }
 0x5a6   :  { %2334 = vxpose.xlu1.b32.end [3/3] (short) (narrow) %v2331_v58, 8 }
 0x5b6   :  { %v6045_v41 = vpop.f32.mrf.mxu1 }
 0x5b8   :  { %v4944_v54 = vpop.f32.mrf.mxu1 }
 0x5c2   :  { %v1612_v36 = vpop.f32.mrf.mxu1 }
 0x5c3   :  { %4980 = vmatmul.mubr.msk.f32.vlgmr.msra.gmra.mxu0 %vm543_vm6, %v1612_v36 }
 0x5c4   :  { %v4966_v56 = vpop.f32.mrf.mxu1  ;;  %4982 = vmatprep.mubr.msk.f32.mxu0 %vm6833_vm4, %v5449_v38  ;;  %5006 = vmatpush3.msra.mxu0 %v5718_v21 }
 0x5c5   :  { %5007 = vmatprep.subr.mxu0 %v5449_v38 }
 0x5c6   :  { %v1617_v45 = vpop.f32.mrf.mxu1  ;;  %5008 = vmatpush3.msra.mxu0 %v5826_v17  ;;  %v6067_v17 = vld [vmem:[%s6825_s2] sm:$0xff] }
 0x5c7   :  { %4983 = vmatmul.mubr.msk.f32.gmra.mxu0 %vm543_vm6, %v1617_v45  ;;  %5009 = vmatprep.subr.mxu0 %v5449_v38 }
 0x5c8   :  { %v4969_v57 = vpop.f32.mrf.mxu1  ;;  %4985 = vmatprep.mubr.msk.f32.mxu0 %vm6833_vm4, %v5449_v38  ;;  %5010 = vmatpush3.msra.mxu0 %v5833_v1 }
 0x5c9   :  { %5011 = vmatprep.subr.mxu0 %v5449_v38 }
 0x5ca   :  { %v1622_v43 = vpop.f32.mrf.mxu1  ;;  %5012 = vmatpush3.msra.mxu0 %v5842_v9  ;;  %v6081_v9 = vld [vmem:[%s6825_s2 + $0x8] sm:$0xff] }
 0x5cb   :  { %4986 = vmatmul.mubr.msk.f32.gmra.mxu0 %vm543_vm6, %v1622_v43  ;;  %5039 = vmatprep.subr.mxu0 %v5449_v38 }
 0x5cc   :  { %v4972_v21 = vpop.f32.mrf.mxu1  ;;  %5013 = vmatprep.mubr.msk.f32.mxu0 %vm6833_vm4, %v5449_v38 }
 0x5cd   :  { %v2315_v21 = vpop.xlane.xlu0 %2314 }
 0x5cf   :  { %5014 = vmatmul.mubr.msk.f32.vlgmr.msra.gmra.mxu0 %vm328_vm0, %v6067_v17 }
 0x5d0   :  { %5016 = vmatprep.mubr.msk.f32.mxu0 %vm6833_vm4, %v5449_v38  ;;  %5040 = vmatpush3.msra.mxu0 %v5853_v44 }
 0x5d1   :  { %v6074_v1 = vpop.f32.mrf.mxu1  ;;  %5041 = vmatprep.subr.mxu0 %v5449_v38 }
 0x5d2   :  { %5042 = vmatpush3.msra.mxu0 %v5860_v46  ;;  %v6096_v46 = vld [vmem:[%s6825_s2 + $0x10] sm:$0xf] }
 0x5d3   :  { %5017 = vmatmul.mubr.msk.f32.gmra.mxu0 %vm328_vm0, %v6081_v9  ;;  %v4998_v47 = vpop.f32.mrf.mxu1  ;;  %5043 = vmatprep.subr.mxu0 %v5449_v38 }
 0x5d4   :  { %5019 = vmatprep.mubr.msk.f32.mxu0 %vm6833_vm4, %v5449_v38  ;;  %5044 = vmatpush3.msra.mxu0 %v5867_v42 }
 0x5d5   :  { %v6089_v44 = vpop.f32.mrf.mxu1  ;;  %5045 = vmatprep.subr.mxu0 %v5449_v38 }
 0x5d6   :  { %5046 = vmatpush3.msra.mxu0 %v5873_v55 }
 0x5d7   :  { %5020 = vmatmul.mubr.msk.f32.gmra.mxu0 %vm328_vm0, %v6096_v46  ;;  %v5001_v51 = vpop.f32.mrf.mxu1  ;;  %5065 = vmatprep.subr.msk.mxu0 %vm328_vm0, %v6096_v46 }
 0x5d8   :  { %5047 = vmatprep.mubr.msk.f32.mxu0 %vm6833_vm4, %v5449_v38 }
 0x5d9   :  { %v1808_v42 = vpop.f32.mrf.mxu1 }
 0x5db   :  { %v5004_v7 = vpop.f32.mrf.mxu1 }
 0x5dd   :  { %v6104_v48 = vpop.f32.mrf.mxu1 }
 0x5df   :  { %v5032_v55 = vpop.f32.mrf.mxu1 }
 0x5e0   :  { %v3129_v55 = vmul.f32 %v6021_v6, %v6032_v40 }
 0x5e1   :  { %v6106_v52 = vpop.f32.mrf.mxu1 }
 0x5e3   :  { %v5035_v16 = vpop.f32.mrf.mxu1 }
 0x5e5   :  { %v1984_v49 = vpop.f32.mrf.mxu1 }
 0x5e7   :  { %v5038_v53 = vpop.f32.mrf.mxu1 }
 0x61a   :  { %v2348_v56 = vpop.trf.xlu1 }
 0x61b   :  { %v2367_v51 = vrot.slane %v2348_v56, %v5568_v27 }
 0x61d   :  { %v2368_v58 = vadd.f32 %v2367_v51, %v2312_v5 }
 0x683   :  { %v1701_v59 = vpop.f32.mrf.mxu0 }
 0x684   :  { %v1991_v30 = vmul.f32 %v6067_v17, %v1701_v59 }
 0x685   :  { %v4981_v62 = vpop.f32.mrf.mxu0 }
 0x686   :  { %5048 = vmatmul.mubr.msk.f32.vlgmr.msra.gmra.mxu0 %vm328_vm0, %v1991_v30 }
 0x687   :  { %v1706_v3 = vpop.f32.mrf.mxu0  ;;  %5066 = vmatpush3.xpose.msk.msra.mxu0 %vm328_vm0, %v6096_v46  ;;  %5050 = vmatprep.mubr.msk.f32.mxu0 %vm6833_vm4, %v5449_v38 }
 0x688   :  { %v1992_v12 = vmul.f32 %v6081_v9, %v1706_v3  ;;  %5067 = vmatprep.subr.msk.mxu0 %vm328_vm0, %v6081_v9 }
 0x689   :  { %v4984_v19 = vpop.f32.mrf.mxu0 }
 0x68a   :  { %5051 = vmatmul.mubr.msk.f32.gmra.mxu0 %vm328_vm0, %v1992_v12 }
 0x68b   :  { %v1711_v34 = vpop.f32.mrf.mxu0  ;;  %5068 = vmatpush3.xpose.msk.msra.mxu0 %vm328_vm0, %v6081_v9  ;;  %5053 = vmatprep.mubr.msk.f32.mxu0 %vm6833_vm4, %v5449_v38  ;;  %vm6155_vm4 = vmand %vm218_vm5, %vm6838_vm12 }
 0x68c   :  { %v1993_v8 = vmul.f32 %v6096_v46, %v1711_v34  ;;  %5069 = vmatprep.subr.msk.mxu0 %vm328_vm0, %v6067_v17  ;;  %vm236_vm14 = vmor %vm6155_vm4, %vm6161_vm13  ;;  %vm2384_vm4 = vcmask 158720   ;;  %vm250_vm13 = vcmp.lt.s32.totalorder %v5565_v26, 12 }
 0x68d   :  { %v4987_v10 = vpop.f32.mrf.mxu0  ;;  %v6187_v62 = vsel %vm236_vm14, 1.0, %v5449_v38  ;;  %vm6845_vm14 = vcmp.lt.s32.totalorder %v5727_v25, 20 }
 0x68e   :  { %5054 = vmatmul.mubr.msk.f32.gmra.mxu0 %vm328_vm0, %v1993_v8 }
 0x68f   :  { %v1878_v39 = vpop.f32.mrf.mxu0  ;;  %5070 = vmatpush3.xpose.msk.msra.mxu0 %vm328_vm0, %v6067_v17  ;;  %5071 = vmatprep.mubr.msk.f32.mxu0 %vm328_vm0, %v2175_v20  ;;  %v2290_v20 = vmul.f32 %v6187_v62, %v5583_v35 }
 0x690   :  { %v1879_v47 = vadd.f32 %v1878_v39, %v6074_v1  ;;  %v2369_v1 = vadd.f32 %v2367_v51, %v2315_v21 }
 0x691   :  { %v5015_v29 = vpop.f32.mrf.mxu0 }
 0x692   :  { %5072 = vmatmul.mubr.msk.f32.vlgmr.msra.gmra.mxu0 %vm328_vm0, %v2176_v11  ;;  %v1988_v28 = vadd.f32 %v6104_v48, %v1879_v47 }
 0x693   :  { %v1883_v13 = vpop.f32.mrf.mxu0 }
 0x694   :  { %v1884_v57 = vadd.f32 %v1883_v13, %v6089_v44  ;;  %v6213_v13 = vld [vmem:[%s6826_s3 + $0x8] sm:$0x1] }
 0x695   :  { %v5018_v31 = vpop.f32.mrf.mxu0 }
 0x696   :  { %v1989_v16 = vadd.f32 %v6106_v52, %v1884_v57  ;;  %v6177_v52 = vstv %s4567_s0 }
 0x697   :  { %v1888_v0 = vpop.f32.mrf.mxu0 }
 0x698   :  { %v1889_v36 = vadd.f32 %v1888_v0, %v1808_v42 }
 0x699   :  { %v5021_v2 = vpop.f32.mrf.mxu0 }
 0x69a   :  { %v1990_v42 = vadd.f32 %v1984_v49, %v1889_v36 }
 0x746   :  { %v2073_v63 = vpop.f32.mrf.mxu0 }
 0x747   :  { %v2087_v59 = vadd.f32 %v2073_v63, %v1988_v28  ;;  %v3118_v28 = vmul.f32 %v6081_v9, %v6037_v60 }
 0x748   :  { %v5049_v54 = vpop.f32.mrf.mxu0 }
 0x74a   :  { %v2078_v45 = vpop.f32.mrf.mxu0 }
 0x74b   :  { %v2088_v32 = vadd.f32 %v2078_v45, %v1989_v16 }
 0x74c   :  { %v5052_v43 = vpop.f32.mrf.mxu0 }
 0x74d   :  { %v3117_v43 = vmul.f32 %v6067_v17, %v6037_v60 }
 0x74e   :  { %v2083_v44 = vpop.f32.mrf.mxu0 }
 0x74f   :  { %v2089_v53 = vadd.f32 %v2083_v44, %v1990_v42  ;;  %v3120_v51 = vsel %vm328_vm0, %v3117_v43, 0.0  ;;  %v3119_v42 = vmul.f32 %v6096_v46, %v6037_v60 }
 0x750   :  { %v5055_v49 = vpop.f32.mrf.mxu0 }
 0x751   :  { %5057 = vmatpush3.msk.msra.mxu1 %vm608_vm7, %v2089_v53  ;;  %v3126_v44 = vsel %vm490_vm1, %v3119_v42, 0.0  ;;  %v3131_v53 = vsel %vm328_vm0, %v3129_v55, 0.0 }
 0x752   :  { %5058 = vmatprep.subr.mxu1 %v5449_v38  ;;  %v6175_v33 = vpop.f32.mrf.mxu0 }
 0x753   :  { %v2371_v48 = vadd.f32 %v6175_v33, %v2369_v1  ;;  %5059 = vmatpush3.msra.mxu1 %v2088_v32  ;;  %v3130_v1 = vmul.f32 %v6021_v6, %v6111_v23  ;;  %v3123_v32 = vsel %vm328_vm0, %v3118_v28, 0.0 }
 0x754   :  { %5060 = vmatprep.subr.mxu1 %v5449_v38  ;;  %v6184_v30 = vpop.f32.mrf.mxu0 }
 0x755   :  { %v6190_v3 = vadd.f32 %v6177_v52, %v2371_v48  ;;  %v2370_v12 = vadd.f32 %v2368_v58, %v6184_v30  ;;  %5061 = vmatpush3.msra.mxu1 %v2087_v59  ;;  %v3134_v49 = vsel %vm490_vm1, %v3130_v1, 0.0  ;;  %v288_v58 = vmul.u32 10, %v5563_v24 }
 0x756   :  { %5074 = vmatprep.subr.msk.mxu1 %vm608_vm7, %v6096_v46  ;;  %v290_v59 = vmul.u32 10, %v5947_v4  ;;  %vm246_vm1 = vcmp.ge.s32.totalorder %v5565_v26, 6 }
 0x757   :  { %v4577_v19 = vclamps-f32 %v6190_v3, 15.0  ;;  %v6199_v34 = vadd.f32 %v6177_v52, %v2370_v12  ;;  %vm289_vm5 = vcmp.ge.s32.totalorder %v5565_v26, %v288_v58  ;;  %vm248_vm12 = vmand %vm193_vm8, %vm246_vm1  ;;  %vm2602_vm8 = vcmask 97280  }
 0x758   :  { %vm291_vm3 = vcmp.lt.s32.totalorder %v5565_v26, %v290_v59  ;;  %vm252_vm2 = vmand %vm248_vm12, %vm250_vm13 }
 0x759   :  { %v4576_v8 = vclamps-f32 %v6199_v34, 15.0  ;;  %v2380_v10 = vmul.f32 %v4577_v19, %v2291_v18  ;;  %vm292_vm9 = vmand %vm289_vm5, %vm291_vm3 }
 0x75a   :  { %v4508_v6 = vsel %vm292_vm9, 1.0, %v5449_v38  ;;  %vm255_vm5 = vmor %vm244_vm15, %vm252_vm2  ;;  %vm6846_vm9 = vmmov 0   ;;  %vm300_vm15 = vcmask 123904   ;;  %vm312_vm2 = vcmask 156672  }
 0x75b   :  { %v2385_v11 = vsel %vm2384_vm4, %v2380_v10, -inf  ;;  %v2379_v39 = vmul.f32 %v4576_v8, %v2290_v20  ;;  %v6245_v48 = vmul.f32 %v4508_v6, %v5583_v35  ;;  %v4504_v25 = vsel %vm255_vm5, 1.0, %v5449_v38 }
 0x75c   :  { %2386 = vmax.xlane.f32.xlu0 %v2385_v11 }
 0x75d   :  { %v2381_v29 = vsel %vm543_vm6, %v2379_v39, -inf  ;;  %5063 = vmatmul.mubr.msk.f32.vlgmr.msra.gmra.mxu1 %vm543_vm6, %v6245_v48 }
 0x75e   :  { %5075 = vmatpush3.msk.msra.mxu1 %vm608_vm7, %v6096_v46 }
 0x75f   :  { %5076 = vmatprep.subr.mxu1 %v6081_v9 }
 0x760   :  { %2382 = vmax.xlane.f32.xlu0 %v2381_v29  ;;  %5077 = vmatpush3.msra.mxu1 %v6081_v9 }
 0x761   :  { %5078 = vmatprep.subr.mxu1 %v6067_v17 }
 0x762   :  { %5079 = vmatpush3.msra.mxu1 %v6067_v17 }
 0x763   :  { %5090 = vmatprep.subr.msk.mxu1 %vm608_vm7, %v6111_v23 }
 0x78d   :  { %78 = vxpose.xlu0.b32.start.end [1/1] (short) (narrow) %v6213_v13, 16 }
 0x7e5   :  { %v2387_v31 = vpop.xlane.xlu0 %2386 }
 0x7e6   :  { %v2389_v5 = vsub.f32 %v2380_v10, %v2387_v31 }
 0x7e8   :  { %v2392_v54 = vmul.f32 1.442695, %v2389_v5 }
 0x7e9   :  { %v2383_v0 = vpop.xlane.xlu0 %2382 }
 0x7ea   :  { %5382 = vpow2.f32 %v2392_v54  ;;  %v2388_v36 = vsub.f32 %v2379_v39, %v2383_v0 }
 0x7ec   :  { %v2390_v56 = vmul.f32 1.442695, %v2388_v36 }
 0x7ee   :  { %5384 = vpow2.f32 %v2390_v56 }
 0x7f7   :  { %v5383_v45 = vpop.eup %5382 }
 0x7f8   :  { %v6216_v57 = vmul.f32 %v5383_v45, %v2291_v18 }
 0x7fa   :  { %v2399_v21 = vsel %vm2384_vm4, %v6216_v57, 0.0 }
 0x7fb   :  { %v5385_v47 = vpop.eup %5384 }
 0x7fc   :  { %v6225_v7 = vmul.f32 %v5385_v47, %v2290_v20 }
 0x7fe   :  { %v2396_v16 = vsel %vm543_vm6, %v6225_v7, 0.0 }
 0x809   :  { %v94_v2 = vpop.trf.xlu0 }
 0x80a   :  { %2294 = vperm.xlu0 %5346, %v94_v2  }
 0x80d   :  { %v95_v63 = vpop.trf.xlu0 }
 0x80e   :  { %2299 = vperm.xlu1 %5347, %v95_v63  }
 0x829   :  { %2400 = vadd.xlane.f32.xlu0 %v2399_v21 }
 0x82d   :  { %3121 = vadd.xlane.f32.xlu0 %v3120_v51 }
 0x831   :  { %3127 = vadd.xlane.f32.xlu0 %v3126_v44 }
 0x832   :  { %2397 = vadd.xlane.f32.xlu1 %v2396_v16 }
 0x836   :  { %3132 = vadd.xlane.f32.xlu1 %v3131_v53 }
 0x83a   :  { %3135 = vadd.xlane.f32.xlu1 %v3134_v49 }
 0x83e   :  { %3124 = vadd.xlane.f32.xlu1 %v3123_v32 }
 0x85e   :  { %2258 = vxpose.xlu0.b32.start [1/2] (short) (narrow) %v6184_v30, 24 }
 0x862   :  { %2259 = vxpose.xlu0.b32.end [2/2] (short) (narrow) %v6175_v33, 24 }
 0x885   :  { %v2295_v35 = vpop.permute.xlu0 %2294 }
 0x886   :  { %v2302_v60 = vmul.f32 %v6187_v62, %v2295_v35 }
 0x888   :  { %v2408_v18 = vmul.f32 %v4576_v8, %v2302_v60 }
 0x889   :  { %v2300_v12 = vpop.permute.xlu1 %2299 }
 0x88a   :  { %v2303_v20 = vmul.f32 %v6180_v61, %v2300_v12  ;;  %v2410_v11 = vsel %vm543_vm6, %v2408_v18, -inf }
 0x88c   :  { %v2409_v10 = vmul.f32 %v4577_v19, %v2303_v20 }
 0x88e   :  { %v2411_v39 = vsel %vm2384_vm4, %v2409_v10, -inf }
 0x88f   :  { %v2412_v29 = vmax.f32 %v2410_v11, %v2411_v39  ;;  %v6309_v39 = vld [vmem:[%s6827_s4 + $0xf0] sm:$0xff] }
 0x891   :  { %v2413_v30 = vrot.slane %v2412_v29, 4 }
 0x893   :  { %v2414_v31 = vmax.f32 %v2412_v29, %v2413_v30  ;;  %v6316_v29 = vld [vmem:[%s6827_s4 + $0x128] sm:$0xff] }
 0x894   :  { %v6322_v30 = vld [vmem:[%s6827_s4 + $0xe8] sm:$0xff] }
 0x895   :  { %v2415_v33 = vrot.slane %v2414_v31, 2 }
 0x897   :  { %v2416_v0 = vmax.f32 %v2414_v31, %v2415_v33 }
 0x899   :  { %v2417_v2 = vrot.slane %v2416_v0, 1 }
 0x89b   :  { %v2418_v62 = vmax.f32 %v2416_v0, %v2417_v2 }
 0x89d   :  { %v2419_v5 = vsub.f32 %v2408_v18, %v2418_v62  ;;  %v2420_v63 = vsub.f32 %v2409_v10, %v2418_v62  ;;  %v6291_v18 = vld [vmem:[%s6827_s4 + $0x100] sm:$0xff]  ;;  %v6304_v10 = vpop.f32.mrf.mxu1 }
 0x89f   :  { %v2421_v34 = vmul.f32 1.442695, %v2419_v5  ;;  %v2423_v8 = vmul.f32 1.442695, %v2420_v63  ;;  %v5064_v11 = vpop.f32.mrf.mxu1 }
 0x8a1   :  { %5386 = vpow2.f32 %v2421_v34 }
 0x8a2   :  { %5388 = vpow2.f32 %v2423_v8  ;;  %v6339_v8 = vrot.slane %v6213_v13, %v5568_v27 }
 0x8ae   :  { %v5387_v61 = vpop.eup %5386 }
 0x8af   :  { %v5389_v3 = vpop.eup %5388  ;;  %v2425_v19 = vmul.f32 %v5387_v61, %v2302_v60 }
 0x8b0   :  { %v2426_v54 = vmul.f32 %v5389_v3, %v2303_v20  ;;  %v6298_v20 = vld [vmem:[%s6827_s4 + $0xf8] sm:$0xff] }
 0x8b1   :  { %v2427_v36 = vsel %vm543_vm6, %v2425_v19, 0.0 }
 0x8b2   :  { %v2428_v56 = vsel %vm2384_vm4, %v2426_v54, 0.0  ;;  %v2401_v21 = vpop.xlane.xlu0 %2400  ;;  %vm249_vm4 = vmand %vm6845_vm14, %vm246_vm1 }
 0x8b3   :  { %v2429_v45 = vadd.f32 %v2428_v56, %v2427_v36  ;;  %v2403_v42 = vadd.f32 1e-06, %v2401_v21  ;;  %vm253_vm3 = vmand %vm249_vm4, %vm250_vm13  ;;  %vm306_vm13 = vcmask 91136  }
 0x8b5   :  { %v2430_v43 = vrot.slane %v2429_v45, 4  ;;  %5390 = vrcp.f32 %v2403_v42  ;;  %v6355_v42 = vmul.f32 %v4504_v25, %v6339_v8 }
 0x8b6   :  { %v3122_v31 = vpop.xlane.xlu0 %3121 }
 0x8b7   :  { %v2431_v47 = vadd.f32 %v2430_v43, %v2429_v45  ;;  %v4505_v45 = vsel %vm253_vm3, 1.0, %v5449_v38 }
 0x8b9   :  { %v2432_v51 = vrot.slane %v2431_v47, 2 }
 0x8ba   :  { %v3128_v33 = vpop.xlane.xlu0 %3127 }
 0x8bb   :  { %v2433_v44 = vadd.f32 %v2432_v51, %v2431_v47  ;;  %v2398_v55 = vpop.xlane.xlu1 %2397  ;;  %v3114_v47 = vmul.f32 %v4503_v22, %v5895_v50  ;;  %v3115_v51 = vmul.f32 %v4504_v25, %v5901_v15 }
 0x8bc   :  { %v2402_v16 = vadd.f32 1e-06, %v2398_v55  ;;  %v3116_v55 = vmul.f32 %v4505_v45, %v5899_v14 }
 0x8bd   :  { %v2434_v53 = vrot.slane %v2433_v44, 1 }
 0x8be   :  { %5392 = vrcp.f32 %v2402_v16 }
 0x8bf   :  { %v2435_v1 = vadd.f32 %v2434_v53, %v2433_v44  ;;  %v3133_v49 = vpop.xlane.xlu1 %3132  ;;  %v6358_v44 = vmul.f32 %v4505_v45, %v6339_v8 }
 0x8c0   :  { %3137 = vxpose.xlu1.b32.start [1/2] (short) (narrow) %v3133_v49, 8 }
 0x8c1   :  { %v2436_v28 = vadd.f32 1e-06, %v2435_v1 }
 0x8c2   :  { %v5391_v58 = vpop.eup %5390 }
 0x8c3   :  { %5394 = vrcp.f32 %v2436_v28  ;;  %v3136_v32 = vpop.xlane.xlu1 %3135  ;;  %v2407_v35 = vmul.f32 %v5391_v58, %v6216_v57  ;;  %v6286_v57 = vld [vmem:[%s6827_s4 + $0x108] sm:$0xff] }
 0x8c4   :  { %3138 = vxpose.xlu1.b32.end [2/2] (short) (narrow) %v3136_v32, 8 }
 0x8c7   :  { %v3125_v2 = vpop.xlane.xlu1 %3124 }
 0x8cb   :  { %v5393_v59 = vpop.eup %5392 }
 0x8cc   :  { %v2406_v6 = vmul.f32 %v5393_v59, %v6225_v7 }
 0x8ce   :  { %5080 = vmatprep.mubr.msk.f32.mxu1 %vm543_vm6, %v2406_v6  ;;  %5087 = vmatprep.mubr.msk.f32.mxu0 %vm543_vm6, %v2406_v6 }
 0x8cf   :  { %5081 = vmatmul.mubr.msk.f32.vlgmr.msra.gmra.mxu1 %vm543_vm6, %v2407_v35 }
 0x8d0   :  { %v5395_v60 = vpop.eup %5394  ;;  %5091 = vmatpush3.msk.msra.mxu1 %vm608_vm7, %v6111_v23 }
 0x8d1   :  { %v2439_v12 = vmul.f32 %v5395_v60, %v2426_v54  ;;  %5092 = vmatprep.subr.mxu1 %v6032_v40  ;;  %v2438_v7 = vmul.f32 %v5395_v60, %v2425_v19 }
 0x8d2   :  { %5093 = vmatpush3.msra.mxu1 %v6032_v40 }
 0x8d3   :  { %5083 = vmatprep.subr.msk.mxu0 %vm543_vm6, %v2439_v12  ;;  %5108 = vmatprep.subr.mxu1 %v6322_v30 }
 0x8d4   :  { %5084 = vmatpush3.xpose.msk.msra.mxu0 %vm543_vm6, %v2439_v12 }
 0x8d5   :  { %5085 = vmatprep.subr.msk.mxu0 %vm543_vm6, %v2438_v7 }
 0x8d8   :  { %5086 = vmatpush3.xpose.msk.msra.mxu0 %vm543_vm6, %v2438_v7 }
 0x8d9   :  { %5097 = vmatprep.subr.mxu0 %v6286_v57 }
 0x8da   :  { %v2274_v0 = vpop.trf.xlu0 }
 0x8db   :  { %5088 = vmatmul.mubr.msk.f32.vlgmr.msra.gmra.mxu0 %vm543_vm6, %v2407_v35 }
 0x8dc   :  { %5098 = vmatpush3.msra.mxu0 %v6286_v57 }
 0x8dd   :  { %5099 = vmatprep.subr.mxu0 %v6291_v18 }
 0x8de   :  { %5100 = vmatpush3.msra.mxu0 %v6291_v18  ;;  %v2275_v62 = vpop.trf.xlu0 }
 0x8df   :  { %5101 = vmatprep.subr.mxu0 %v6298_v20 }
 0x8e0   :  { %5102 = vmatpush3.msra.mxu0 %v6298_v20 }
 0x8e1   :  { %5103 = vmatprep.subr.mxu0 %v6309_v39 }
 0x8e2   :  { %5104 = vmatpush3.msra.mxu0 %v6309_v39  ;;  %v2276_v34 = vpop.trf.xlu0 }
 0x8e3   :  { %5119 = vmatprep.subr.mxu0 %v6316_v29 }
 0x93c   :  { %v3153_v5 = vpop.trf.xlu1 }
 0x93d   :  { %v3172_v63 = vrot.slane %v3153_v5, %v5568_v27  ;;  %v6349_v27 = vmul.f32 %v4503_v22, %v6339_v8 }
 0x93f   :  { %v3173_v61 = vadd.f32 %v3172_v63, %v3122_v31  ;;  %v3174_v3 = vadd.f32 %v3172_v63, %v3125_v2  ;;  %v3175_v19 = vadd.f32 %v3172_v63, %v3128_v33 }
 0x941   :  { %v3177_v54 = vadd.f32 %v3174_v3, %v2275_v62  ;;  %v3178_v36 = vadd.f32 %v3175_v19, %v2276_v34  ;;  %v3176_v56 = vadd.f32 %v3173_v61, %v2274_v0 }
 0x943   :  { %v3180_v43 = vadd.f32 %v3177_v54, %v6177_v52  ;;  %v3181_v21 = vadd.f32 %v3178_v36, %v6177_v52  ;;  %v3179_v13 = vadd.f32 %v3176_v56, %v6177_v52 }
 0x945   :  { %v4599_v16 = vclamps-f32 %v3180_v43, 15.0  ;;  %v4600_v53 = vclamps-f32 %v3181_v21, 15.0  ;;  %v4598_v1 = vclamps-f32 %v3179_v13, 15.0 }
 0x947   :  { %v3232_v49 = vmul.f32 %v4599_v16, %v3115_v51  ;;  %v3233_v28 = vmul.f32 %v4600_v53, %v3116_v55  ;;  %v6362_v52 = vmul.f32 %v4598_v1, %v6349_v27  ;;  %v3231_v50 = vmul.f32 %v4598_v1, %v3114_v47 }
 0x948   :  { %v6365_v15 = vmul.f32 %v4599_v16, %v6355_v42  ;;  %v6368_v32 = vmul.f32 %v4600_v53, %v6358_v44 }
 0x949   :  { %v3235_v58 = vsel %vm2602_vm8, %v3232_v49, -inf  ;;  %v3191_v14 = vsel %vm2602_vm8, %v6362_v52, -inf  ;;  %v3234_v59 = vsel %vm2602_vm8, %v3231_v50, -inf  ;;  %v3236_v60 = vsel %vm3197_vm11, %v3233_v28, -inf }
 0x94a   :  { %3192 = vmax.xlane.f32.xlu0 %v3191_v14  ;;  %v3237_v6 = vmax.f32 %v3234_v59, %v3235_v58  ;;  %v3194_v35 = vsel %vm2602_vm8, %v6365_v15, -inf  ;;  %v3198_v12 = vsel %vm3197_vm11, %v6368_v32, -inf }
 0x94b   :  { %3195 = vmax.xlane.f32.xlu1 %v3194_v35 }
 0x94c   :  { %v3238_v7 = vmax.f32 %v3237_v6, %v3236_v60 }
 0x94e   :  { %v3239_v11 = vrot.slane %v3238_v7, 4 }
 0x94f   :  { %3199 = vmax.xlane.f32.xlu1 %v3198_v12 }
 0x950   :  { %v3240_v31 = vmax.f32 %v3238_v7, %v3239_v11  ;;  %v6393_v7 = vld [vmem:[%s6827_s4 + $0x120] sm:$0xff]  ;;  %v6401_v11 = vld [vmem:[%s6827_s4 + $0x118] sm:$0xff] }
 0x952   :  { %v3241_v33 = vrot.slane %v3240_v31, 2 }
 0x954   :  { %v3242_v0 = vmax.f32 %v3240_v31, %v3241_v33  ;;  %v6408_v31 = vld [vmem:[%s6827_s4 + $0x110] sm:$0xff] }
 0x956   :  { %v3243_v2 = vrot.slane %v3242_v0, 1 }
 0x958   :  { %v3244_v62 = vmax.f32 %v3242_v0, %v3243_v2 }
 0x95a   :  { %v3245_v5 = vsub.f32 %v3231_v50, %v3244_v62  ;;  %v3246_v63 = vsub.f32 %v3232_v49, %v3244_v62  ;;  %v3247_v34 = vsub.f32 %v3233_v28, %v3244_v62  ;;  %v6423_v62 = vld [vmem:[%s6827_s4 + $0xe0] sm:$0xff] }
 0x95c   :  { %v3248_v61 = vmul.f32 1.442695, %v3245_v5  ;;  %v3250_v3 = vmul.f32 1.442695, %v3246_v63  ;;  %v3252_v19 = vmul.f32 1.442695, %v3247_v34 }
 0x95d   :  { %v6430_v5 = vld [vmem:[%s6827_s4 + $0xd8] sm:$0xff]  ;;  %v6439_v63 = vld [vmem:[%s6827_s4 + $0xd0] sm:$0xff] }
 0x95e   :  { %5396 = vpow2.f32 %v3248_v61 }
 0x95f   :  { %5398 = vpow2.f32 %v3250_v3 }
 0x960   :  { %5400 = vpow2.f32 %v3252_v19 }
 0x96b   :  { %v5397_v22 = vpop.eup %5396 }
 0x96c   :  { %v5399_v25 = vpop.eup %5398  ;;  %v3254_v54 = vmul.f32 %v5397_v22, %v3114_v47 }
 0x96d   :  { %v5401_v36 = vpop.eup %5400  ;;  %v3255_v56 = vmul.f32 %v5399_v25, %v3115_v51 }
 0x96e   :  { %v3256_v45 = vmul.f32 %v5401_v36, %v3116_v55  ;;  %v3257_v43 = vsel %vm2602_vm8, %v3254_v54, 0.0 }
 0x96f   :  { %v3258_v21 = vsel %vm2602_vm8, %v3255_v56, 0.0 }
 0x970   :  { %v3259_v13 = vadd.f32 %v3258_v21, %v3257_v43  ;;  %v3260_v16 = vsel %vm3197_vm11, %v3256_v45, 0.0  ;;  %v6455_v21 = vld [vmem:[%s6827_s4 + $0x148] sm:$0xff] }
 0x972   :  { %v3261_v53 = vadd.f32 %v3260_v16, %v3259_v13 }
 0x974   :  { %v3262_v1 = vrot.slane %v3261_v53, 4 }
 0x976   :  { %v3263_v49 = vadd.f32 %v3262_v1, %v3261_v53 }
 0x978   :  { %v3264_v28 = vrot.slane %v3263_v49, 2 }
 0x97a   :  { %v3265_v50 = vadd.f32 %v3264_v28, %v3263_v49 }
 0x97c   :  { %v3266_v58 = vrot.slane %v3265_v50, 1 }
 0x97e   :  { %v3267_v14 = vadd.f32 %v3266_v58, %v3265_v50 }
 0x980   :  { %v3268_v59 = vadd.f32 1e-06, %v3267_v14 }
 0x982   :  { %5402 = vrcp.f32 %v3268_v59 }
 0x98f   :  { %v5403_v47 = vpop.eup %5402  ;;  %v5082_v6 = vpop.f32.mrf.mxu1 }
 0x990   :  { %v6382_v51 = vmul.f32 %v5403_v47, %v3256_v45  ;;  %v6384_v55 = vmul.f32 %v5403_v47, %v3255_v56  ;;  %v6386_v35 = vmul.f32 %v5403_v47, %v3254_v54  ;;  %v2857_v33 = vmul.f32 %v5082_v6, %v6111_v23 }
 0x991   :  { %v2512_v60 = vpop.f32.mrf.mxu1  ;;  %v276_v56 = vmul.u32 6, %v5563_v24  ;;  %v278_v45 = vmul.u32 6, %v5947_v4  ;;  %v6464_v24 = vld [vmem:[%s6827_s4 + $0x140] sm:$0xff]  ;;  %v6471_v4 = vld [vmem:[%s6827_s4 + $0x138] sm:$0xff] }
 0x992   :  { %v2856_v12 = vmul.f32 %v2512_v60, %v6032_v40  ;;  %5105 = vmatprep.mubr.msk.f32.mxu0 %vm328_vm0, %v2512_v60 }
 0x993   :  { %5106 = vmatmul.mubr.msk.f32.vlgmr.msra.gmra.mxu0 %vm328_vm0, %v5082_v6  ;;  %vm277_vm1 = vcmp.ge.s32.totalorder %v5565_v26, %v276_v56  ;;  %vm279_vm10 = vcmp.lt.s32.totalorder %v5565_v26, %v278_v45  ;;  %v6477_v26 = vld [vmem:[%s6827_s4 + $0x130] sm:$0xff] }
 0x994   :  { %5120 = vmatpush3.msra.mxu0 %v6316_v29  ;;  %5127 = vmatprep.mubr.msk.f32.mxu0 %vm328_vm0, %v2856_v12  ;;  %vm280_vm12 = vmand %vm277_vm1, %vm279_vm10 }
 0x995   :  { %5121 = vmatprep.subr.mxu0 %v6393_v7 }
 0x996   :  { %5122 = vmatpush3.msra.mxu0 %v6393_v7 }
 0x997   :  { %5123 = vmatprep.subr.mxu0 %v6401_v11 }
 0x998   :  { %5124 = vmatpush3.msra.mxu0 %v6401_v11 }
 0x999   :  { %5125 = vmatprep.subr.mxu0 %v6408_v31 }
 0x99a   :  { %5126 = vmatpush3.msra.mxu0 %v6408_v31 }
 0x99b   :  { %v5089_v0 = vpop.f32.mrf.mxu0  ;;  %5128 = vmatmul.mubr.msk.f32.vlgmr.msra.gmra.mxu0 %vm328_vm0, %v2857_v33  ;;  %5141 = vmatprep.subr.mxu0 %v5449_v38 }
 0x99c   :  { %5145 = vmatprep.mubr.msk.f32.mxu0 %vm6846_vm9, %v5449_v38 }
 0x99d   :  { %v2593_v2 = vpop.f32.mrf.mxu0 }
 0x99e   :  { %5094 = vmatprep.mubr.msk.f32.mxu1 %vm2602_vm8, %v2593_v2 }
 0x99f   :  { %5095 = vmatmul.mubr.msk.f32.vlgmr.msra.gmra.mxu1 %vm2602_vm8, %v5089_v0 }
 0x9a0   :  { %5109 = vmatpush3.msra.mxu1 %v6322_v30  ;;  %5116 = vmatprep.mubr.msk.f32.mxu1 %vm328_vm0, %v6032_v40 }
 0x9a1   :  { %5110 = vmatprep.subr.mxu1 %v6423_v62 }
 0x9a2   :  { %5111 = vmatpush3.msra.mxu1 %v6423_v62 }
 0x9a3   :  { %5112 = vmatprep.subr.mxu1 %v6430_v5 }
 0x9a4   :  { %5113 = vmatpush3.msra.mxu1 %v6430_v5 }
 0x9a5   :  { %5114 = vmatprep.subr.mxu1 %v6439_v63 }
 0x9a6   :  { %5115 = vmatpush3.msra.mxu1 %v6439_v63 }
 0x9a7   :  { %5117 = vmatmul.mubr.msk.f32.vlgmr.msra.gmra.mxu1 %vm328_vm0, %v6111_v23  ;;  %5130 = vmatprep.subr.mxu1 %v6455_v21 }
 0x9a8   :  { %5131 = vmatpush3.msra.mxu1 %v6455_v21 }
 0x9a9   :  { %5132 = vmatprep.subr.mxu1 %v6464_v24 }
 0x9aa   :  { %5133 = vmatpush3.msra.mxu1 %v6464_v24 }
 0x9ab   :  { %5134 = vmatprep.subr.mxu1 %v6471_v4 }
 0x9ac   :  { %5135 = vmatpush3.msra.mxu1 %v6471_v4 }
 0x9ad   :  { %5136 = vmatprep.subr.mxu1 %v6477_v26 }
 0x9ae   :  { %5137 = vmatpush3.msra.mxu1 %v6477_v26 }
 0x9af   :  { %5148 = vmatprep.subr.mxu1 %v5449_v38 }
 0x9d3   :  { %v3193_v34 = vpop.xlane.xlu0 %3192 }
 0x9d4   :  { %v3196_v61 = vpop.xlane.xlu1 %3195  ;;  %v3201_v3 = vsub.f32 %v6362_v52, %v3193_v34  ;;  %v4507_v52 = vsel %vm280_vm12, 1.0, %v5449_v38 }
 0x9d5   :  { %v3202_v19 = vsub.f32 %v6365_v15, %v3196_v61  ;;  %v6487_v53 = vmul.f32 %v4507_v52, %v6339_v8  ;;  %v301_v8 = vsel %vm300_vm15, %v5955_v37, 0.0 }
 0x9d6   :  { %v3204_v22 = vmul.f32 1.442695, %v3201_v3 }
 0x9d7   :  { %v3206_v25 = vmul.f32 1.442695, %v3202_v19  ;;  %v307_v50 = vsel %vm306_vm13, %v6487_v53, 0.0 }
 0x9d8   :  { %5404 = vpow2.f32 %v3204_v22  ;;  %v3200_v54 = vpop.xlane.xlu1 %3199 }
 0x9d9   :  { %5406 = vpow2.f32 %v3206_v25  ;;  %v3203_v36 = vsub.f32 %v6368_v32, %v3200_v54 }
 0x9db   :  { %v3208_v43 = vmul.f32 1.442695, %v3203_v36 }
 0x9dd   :  { %5408 = vpow2.f32 %v3208_v43 }
 0x9e5   :  { %v5405_v15 = vpop.eup %5404 }
 0x9e6   :  { %v5407_v32 = vpop.eup %5406  ;;  %v3210_v13 = vmul.f32 %v5405_v15, %v6349_v27 }
 0x9e7   :  { %v3211_v16 = vmul.f32 %v5407_v32, %v6355_v42  ;;  %v313_v42 = vsel %vm312_vm2, %v6245_v48, 0.0 }
 0x9e8   :  { %v3213_v1 = vsel %vm2602_vm8, %v3210_v13, 0.0 }
 0x9e9   :  { %v3216_v49 = vsel %vm2602_vm8, %v3211_v16, 0.0  ;;  %3214 = vadd.xlane.f32.xlu1 %v3213_v1 }
 0x9ea   :  { %v5409_v28 = vpop.eup %5408  ;;  %3217 = vadd.xlane.f32.xlu0 %v3216_v49 }
 0x9eb   :  { %v3212_v58 = vmul.f32 %v5409_v28, %v6358_v44 }
 0x9ed   :  { %v3219_v27 = vsel %vm3197_vm11, %v3212_v58, 0.0 }
 0x9ee   :  { %308 = vadd.xlane.f32.xlu0 %v307_v50  ;;  %3220 = vadd.xlane.f32.xlu1 %v3219_v27 }
 0x9f2   :  { %302 = vadd.xlane.f32.xlu0 %v301_v8  ;;  %314 = vadd.xlane.f32.xlu1 %v313_v42 }
 0xa5f   :  { %v5096_v14 = vpop.f32.mrf.mxu1 }
 0xa60   :  { %v2946_v6 = vmul.f32 %v5096_v14, %v6111_v23 }
 0xa61   :  { %v2678_v59 = vpop.f32.mrf.mxu1 }
 0xa62   :  { %v2945_v47 = vmul.f32 %v2678_v59, %v6032_v40 }
 0xa64   :  { %5138 = vmatprep.mubr.msk.f32.mxu1 %vm328_vm0, %v2945_v47 }
 0xa65   :  { %5139 = vmatmul.mubr.msk.f32.vlgmr.msra.gmra.mxu1 %vm328_vm0, %v2946_v6 }
 0xa66   :  { %5149 = vmatpush3.msk.msra.mxu1 %vm608_vm7, %v6111_v23  ;;  %5152 = vmatprep.mubr.msk.f32.mxu1 %vm6846_vm9, %v5449_v38 }
 0xa67   :  { %5150 = vmatprep.subr.mxu1 %v5449_v38  ;;  %v5118_v19 = vpop.f32.mrf.mxu1 }
 0xa68   :  { %5151 = vmatpush3.msra.mxu1 %v6032_v40 }
 0xa69   :  { %5176 = vmatprep.subr.mxu1 %v5449_v38  ;;  %v2847_v22 = vpop.f32.mrf.mxu1 }
 0xa72   :  { %v3215_v37 = vpop.xlane.xlu1 %3214 }
 0xa73   :  { %v3222_v44 = vadd.f32 1e-06, %v3215_v37  ;;  %v3218_v60 = vpop.xlane.xlu0 %3217 }
 0xa74   :  { %v3223_v12 = vadd.f32 1e-06, %v3218_v60 }
 0xa75   :  { %5410 = vrcp.f32 %v3222_v44 }
 0xa76   :  { %5412 = vrcp.f32 %v3223_v12 }
 0xa77   :  { %v3221_v33 = vpop.xlane.xlu1 %3220  ;;  %v309_v47 = vpop.xlane.xlu0 %308 }
 0xa78   :  { %v3224_v0 = vadd.f32 1e-06, %v3221_v33  ;;  %v310_v6 = vadd.f32 1e-06, %v309_v47  ;;  %v3996_v33 = vld [vmem:[%s6827_s4 + $0x188] sm:$0xff] }
 0xa7a   :  { %5414 = vrcp.f32 %v3224_v0 }
 0xa7b   :  { %5416 = vrcp.f32 %v310_v6  ;;  %v315_v37 = vpop.xlane.xlu1 %314  ;;  %v4221_v6 = vld [vmem:[%s6827_s4 + $0x1b0] sm:$0xff] }
 0xa7c   :  { %v316_v60 = vadd.f32 1e-06, %v315_v37 }
 0xa7e   :  { %5418 = vrcp.f32 %v316_v60  ;;  %v4312_v60 = vld [vmem:[%s6827_s4 + $0x200] sm:$0xff] }
 0xa82   :  { %v5411_v2 = vpop.eup %5410 }
 0xa83   :  { %v3228_v23 = vmul.f32 %v5411_v2, %v3210_v13  ;;  %v5413_v34 = vpop.eup %5412  ;;  %v3995_v2 = vld [vmem:[%s6827_s4 + $0x180] sm:$0xff] }
 0xa84   :  { %v3229_v40 = vmul.f32 %v5413_v34, %v3211_v16 }
 0xa85   :  { %5153 = vmatmul.mubr.msk.f32.vlgmr.msra.gmra.mxu1 %vm2602_vm8, %v3228_v23 }
 0xa86   :  { %5155 = vmatprep.mubr.msk.f32.mxu1 %vm6846_vm9, %v5449_v38  ;;  %5177 = vmatpush3.msk.msra.mxu1 %vm608_vm7, %v6096_v46  ;;  %v5107_v46 = vpop.f32.mrf.mxu0 }
 0xa87   :  { %5178 = vmatprep.subr.mxu1 %v5449_v38  ;;  %v5415_v61 = vpop.eup %5414  ;;  %v2853_v25 = vadd.f32 %v5118_v19, %v5107_v46 }
 0xa88   :  { %5179 = vmatpush3.msra.mxu1 %v6081_v9  ;;  %v3230_v3 = vmul.f32 %v5415_v61, %v3212_v58  ;;  %v2767_v9 = vpop.f32.mrf.mxu0 }
 0xa89   :  { %5156 = vmatmul.mubr.msk.f32.gmra.mxu1 %vm2602_vm8, %v3229_v40  ;;  %5180 = vmatprep.subr.mxu1 %v5449_v38  ;;  %v2848_v36 = vadd.f32 %v2847_v22, %v2767_v9  ;;  %v5417_v9 = vpop.eup %5416 }
 0xa8a   :  { %5158 = vmatprep.mubr.msk.f32.mxu1 %vm6846_vm9, %v5449_v38  ;;  %5181 = vmatpush3.msra.mxu1 %v6067_v17  ;;  %v5129_v54 = vpop.f32.mrf.mxu0 }
 0xa8b   :  { %5208 = vmatprep.subr.mxu1 %v5449_v38  ;;  %v2944_v56 = vadd.f32 %v5129_v54, %v2853_v25 }
 0xa8c   :  { %v2934_v45 = vpop.f32.mrf.mxu0 }
 0xa8d   :  { %5159 = vmatmul.mubr.msk.f32.gmra.mxu1 %vm2602_vm8, %v3230_v3  ;;  %v2943_v17 = vadd.f32 %v2934_v45, %v2848_v36  ;;  %v4146_v36 = vld [vmem:[%s6827_s4 + $0x1a8] sm:$0xff]  ;;  %v4145_v45 = vld [vmem:[%s6827_s4 + $0x1a0] sm:$0xff] }
 0xa8e   :  { %5182 = vmatprep.mubr.msk.f32.mxu1 %vm6846_vm9, %v5449_v38 }
 0xb25   :  { %v5140_v43 = vpop.f32.mrf.mxu1 }
 0xb26   :  { %v3033_v52 = vadd.f32 %v5140_v43, %v2944_v56 }
 0xb27   :  { %v3023_v15 = vpop.f32.mrf.mxu1 }
 0xb28   :  { %v3032_v32 = vadd.f32 %v3023_v15, %v2943_v17  ;;  %5142 = vmatpush3.msk.msra.mxu0 %vm608_vm7, %v3033_v52  ;;  %v4144_v52 = vld [vmem:[%s6827_s4 + $0x198] sm:$0xff]  ;;  %v5419_v17 = vpop.eup %5418 }
 0xb29   :  { %5143 = vmatprep.subr.mxu0 %v5449_v38 }
 0xb2a   :  { %5144 = vmatpush3.msra.mxu0 %v3032_v32  ;;  %v4143_v32 = vld [vmem:[%s6827_s4 + $0x190] sm:$0xff] }
 0xb2b   :  { %5146 = vmatmul.mubr.msk.f32.vlgmr.msra.gmra.mxu0 %vm2602_vm8, %v6487_v53  ;;  %5161 = vmatprep.subr.mxu0 %v5449_v38 }
 0xb2c   :  { %5162 = vmatpush3.xpose.msk.msra.mxu0 %vm2602_vm8, %v6382_v51  ;;  %5167 = vmatprep.mubr.msk.f32.mxu0 %vm6846_vm9, %v5449_v38 }
 0xb2d   :  { %5163 = vmatprep.subr.mxu0 %v5449_v38 }
 0xb30   :  { %5164 = vmatpush3.xpose.msk.msra.mxu0 %vm2602_vm8, %v6384_v55  ;;  %v6577_v55 = vld [vmem:[%s6825_s2] sm:$0xff] }
 0xb31   :  { %5165 = vmatprep.subr.mxu0 %v5449_v38 }
 0xb34   :  { %5166 = vmatpush3.xpose.msk.msra.mxu0 %vm2602_vm8, %v6386_v35 }
 0xb35   :  { %5191 = vmatprep.subr.mxu0 %v5449_v38 }
 0xb37   :  { %5168 = vmatmul.mubr.msk.f32.vlgmr.msra.gmra.mxu0 %vm2602_vm8, %v3228_v23 }
 0xb38   :  { %5170 = vmatprep.mubr.msk.f32.mxu0 %vm6846_vm9, %v5449_v38  ;;  %5192 = vmatpush3.msra.mxu0 %v6286_v57 }
 0xb39   :  { %5193 = vmatprep.subr.mxu0 %v5449_v38 }
 0xb3a   :  { %5194 = vmatpush3.msra.mxu0 %v6291_v18 }
 0xb3b   :  { %5171 = vmatmul.mubr.msk.f32.gmra.mxu0 %vm2602_vm8, %v3229_v40  ;;  %5195 = vmatprep.subr.mxu0 %v5449_v38  ;;  %v3994_v40 = vld [vmem:[%s6827_s4 + $0x178] sm:$0xff] }
 0xb3c   :  { %5173 = vmatprep.mubr.msk.f32.mxu0 %vm6846_vm9, %v5449_v38  ;;  %5196 = vmatpush3.msra.mxu0 %v6298_v20 }
 0xb3d   :  { %5197 = vmatprep.subr.mxu0 %v5449_v38 }
 0xb3e   :  { %5198 = vmatpush3.msra.mxu0 %v6309_v39 }
 0xb3f   :  { %5174 = vmatmul.mubr.msk.f32.gmra.mxu0 %vm2602_vm8, %v3230_v3  ;;  %5225 = vmatprep.subr.mxu0 %v5449_v38  ;;  %v3993_v3 = vld [vmem:[%s6827_s4 + $0x170] sm:$0xff] }
 0xb40   :  { %5199 = vmatprep.mubr.msk.f32.mxu0 %vm6846_vm9, %v5449_v38 }
 0xb45   :  { %v3348_v57 = vpop.f32.mrf.mxu1 }
 0xb46   :  { %5200 = vmatmul.mubr.msk.f32.vlgmr.msra.gmra.mxu0 %vm328_vm0, %v3348_v57  ;;  %v3717_v35 = vmul.f32 %v6577_v55, %v3348_v57 }
 0xb47   :  { %v5154_v18 = vpop.f32.mrf.mxu1  ;;  %5202 = vmatprep.mubr.msk.f32.mxu0 %vm6846_vm9, %v5449_v38  ;;  %5226 = vmatpush3.msra.mxu0 %v6316_v29 }
 0xb48   :  { %5227 = vmatprep.subr.mxu0 %v5449_v38  ;;  %v2166_v18 = vmul.f32 %v5419_v17, %v6304_v10 }
 0xb49   :  { %v3353_v20 = vpop.f32.mrf.mxu1  ;;  %5228 = vmatpush3.msra.mxu0 %v6393_v7  ;;  %v6586_v7 = vld [vmem:[%s6825_s2 + $0x8] sm:$0xff] }
 0xb4a   :  { %5203 = vmatmul.mubr.msk.f32.gmra.mxu0 %vm328_vm0, %v3353_v20  ;;  %5229 = vmatprep.subr.mxu0 %v5449_v38 }
 0xb4b   :  { %v5157_v39 = vpop.f32.mrf.mxu1  ;;  %5205 = vmatprep.mubr.msk.f32.mxu0 %vm6846_vm9, %v5449_v38  ;;  %5230 = vmatpush3.msra.mxu0 %v6401_v11  ;;  %v3718_v11 = vmul.f32 %v6586_v7, %v3353_v20 }
 0xb4c   :  { %5231 = vmatprep.subr.mxu0 %v5449_v38 }
 0xb4d   :  { %v3358_v51 = vpop.f32.mrf.mxu1  ;;  %5232 = vmatpush3.msra.mxu0 %v6408_v31  ;;  %v6595_v31 = vld [vmem:[%s6825_s2 + $0x10] sm:$0xf] }
 0xb4e   :  { %5206 = vmatmul.mubr.msk.f32.gmra.mxu0 %vm328_vm0, %v3358_v51  ;;  %5259 = vmatprep.subr.mxu0 %v5449_v38  ;;  %v3719_v13 = vmul.f32 %v6595_v31, %v3358_v51 }
 0xb4f   :  { %v5160_v29 = vpop.f32.mrf.mxu1  ;;  %5233 = vmatprep.mubr.msk.f32.mxu0 %vm6846_vm9, %v5449_v38 }
 0xb52   :  { %5234 = vmatmul.mubr.msk.f32.vlgmr.msra.gmra.mxu0 %vm328_vm0, %v3717_v35 }
 0xb53   :  { %5236 = vmatprep.mubr.msk.f32.mxu0 %vm6846_vm9, %v5449_v38 }
 0xb56   :  { %5237 = vmatmul.mubr.msk.f32.gmra.mxu0 %vm328_vm0, %v3718_v11 }
 0xb57   :  { %5239 = vmatprep.mubr.msk.f32.mxu0 %vm6846_vm9, %v5449_v38 }
 0xb5a   :  { %5240 = vmatmul.mubr.msk.f32.gmra.mxu0 %vm328_vm0, %v3719_v13 }
 0xb5b   :  { %5265 = vmatprep.mubr.msk.f32.mxu0 %vm6846_vm9, %v5449_v38 }
 0xbeb   :  { %v6601_v16 = vpop.f32.mrf.mxu0 }
 0xbec   :  { %v3110_v54 = vmul.f32 %v5417_v9, %v6601_v16 }
 0xbed   :  { %v5147_v53 = vpop.f32.mrf.mxu0 }
 0xbf7   :  { %v3437_v1 = vpop.f32.mrf.mxu0 }
 0xbf8   :  { %5183 = vmatmul.mubr.msk.f32.vlgmr.msra.gmra.mxu1 %vm543_vm6, %v3437_v1 }
 0xbf9   :  { %v5169_v49 = vpop.f32.mrf.mxu0  ;;  %5185 = vmatprep.mubr.msk.f32.mxu1 %vm6846_vm9, %v5449_v38  ;;  %5209 = vmatpush3.msra.mxu1 %v6322_v30 }
 0xbfa   :  { %5210 = vmatprep.subr.mxu1 %v5449_v38 }
 0xbfb   :  { %v3442_v28 = vpop.f32.mrf.mxu0  ;;  %5211 = vmatpush3.msra.mxu1 %v6423_v62 }
 0xbfc   :  { %5186 = vmatmul.mubr.msk.f32.gmra.mxu1 %vm543_vm6, %v3442_v28  ;;  %5212 = vmatprep.subr.mxu1 %v5449_v38 }
 0xbfd   :  { %v5172_v50 = vpop.f32.mrf.mxu0  ;;  %5188 = vmatprep.mubr.msk.f32.mxu1 %vm6846_vm9, %v5449_v38  ;;  %5213 = vmatpush3.msra.mxu1 %v6430_v5 }
 0xbfe   :  { %5214 = vmatprep.subr.mxu1 %v5449_v38 }
 0xbff   :  { %v3447_v58 = vpop.f32.mrf.mxu0  ;;  %5215 = vmatpush3.msra.mxu1 %v6439_v63 }
 0xc00   :  { %5189 = vmatmul.mubr.msk.f32.gmra.mxu1 %vm543_vm6, %v3447_v58  ;;  %5242 = vmatprep.subr.mxu1 %v5449_v38 }
 0xc01   :  { %v5175_v30 = vpop.f32.mrf.mxu0  ;;  %5216 = vmatprep.mubr.msk.f32.mxu1 %vm6846_vm9, %v5449_v38 }
 0xc02   :  { %v3992_v30 = vld [vmem:[%s6827_s4 + $0x168] sm:$0xff] }
 0xc04   :  { %5217 = vmatmul.mubr.msk.f32.vlgmr.msra.gmra.mxu1 %vm328_vm0, %v6577_v55 }
 0xc05   :  { %5219 = vmatprep.mubr.msk.f32.mxu1 %vm6846_vm9, %v5449_v38  ;;  %5243 = vmatpush3.msra.mxu1 %v6455_v21 }
 0xc06   :  { %v6625_v62 = vpop.f32.mrf.mxu0  ;;  %5244 = vmatprep.subr.mxu1 %v5449_v38 }
 0xc07   :  { %5245 = vmatpush3.msra.mxu1 %v6464_v24 }
 0xc08   :  { %5220 = vmatmul.mubr.msk.f32.gmra.mxu1 %vm328_vm0, %v6586_v7  ;;  %v5201_v5 = vpop.f32.mrf.mxu0  ;;  %5246 = vmatprep.subr.mxu1 %v5449_v38 }
 0xc09   :  { %5222 = vmatprep.mubr.msk.f32.mxu1 %vm6846_vm9, %v5449_v38  ;;  %5247 = vmatpush3.msra.mxu1 %v6471_v4  ;;  %v3990_v5 = vld [vmem:[%s6827_s4 + $0x158] sm:$0xff] }
 0xc0a   :  { %v6635_v63 = vpop.f32.mrf.mxu0  ;;  %5248 = vmatprep.subr.mxu1 %v5449_v38 }
 0xc0b   :  { %5249 = vmatpush3.msra.mxu1 %v6477_v26 }
 0xc0c   :  { %5223 = vmatmul.mubr.msk.f32.gmra.mxu1 %vm328_vm0, %v6595_v31  ;;  %v5204_v21 = vpop.f32.mrf.mxu0  ;;  %5268 = vmatprep.subr.mxu1 %v5449_v38 }
 0xc0d   :  { %5250 = vmatprep.mubr.msk.f32.mxu1 %vm6846_vm9, %v5449_v38  ;;  %v3989_v21 = vld [vmem:[%s6827_s4 + $0x150] sm:$0xff] }
 0xc0e   :  { %v6644_v24 = vpop.f32.mrf.mxu0 }
 0xc10   :  { %v5207_v27 = vpop.f32.mrf.mxu0 }
 0xc12   :  { %v6646_v8 = vpop.f32.mrf.mxu0 }
 0xc14   :  { %v5235_v4 = vpop.f32.mrf.mxu0 }
 0xc16   :  { %v6648_v42 = vpop.f32.mrf.mxu0 }
 0xc18   :  { %v5238_v14 = vpop.f32.mrf.mxu0 }
 0xc1a   :  { %v6650_v59 = vpop.f32.mrf.mxu0 }
 0xc1c   :  { %v5241_v26 = vpop.f32.mrf.mxu0 }
 0xc1d   :  { %v4222_v26 = vld [vmem:[%s6827_s4 + $0x1b8] sm:$0xff] }
 0xcb8   :  { %v3526_v44 = vpop.f32.mrf.mxu1 }
 0xcb9   :  { %v3816_v12 = vmul.f32 %v6577_v55, %v3526_v44  ;;  %v4313_v44 = vld [vmem:[%s6827_s4 + $0x208] sm:$0xff] }
 0xcba   :  { %v5184_v0 = vpop.f32.mrf.mxu1 }
 0xcbb   :  { %5251 = vmatmul.mubr.msk.f32.vlgmr.msra.gmra.mxu1 %vm328_vm0, %v3816_v12  ;;  %v4310_v12 = vld [vmem:[%s6827_s4 + $0x1f0] sm:$0xff]  ;;  %v4308_v0 = vld [vmem:[%s6827_s4 + $0x1e0] sm:$0xff] }
 0xcbc   :  { %v3531_v23 = vpop.f32.mrf.mxu1  ;;  %5253 = vmatprep.mubr.msk.f32.mxu1 %vm6846_vm9, %v5449_v38  ;;  %5269 = vmatpush3.msra.mxu1 %v3996_v33  ;;  %v4309_v33 = vld [vmem:[%s6827_s4 + $0x1e8] sm:$0xff] }
 0xcbd   :  { %v3817_v34 = vmul.f32 %v6586_v7, %v3531_v23  ;;  %5270 = vmatprep.subr.mxu1 %v5449_v38  ;;  %v4306_v23 = vld [vmem:[%s6827_s4 + $0x1d0] sm:$0xff] }
 0xcbe   :  { %v5187_v61 = vpop.f32.mrf.mxu1  ;;  %5271 = vmatpush3.msra.mxu1 %v3995_v2  ;;  %v4307_v2 = vld [vmem:[%s6827_s4 + $0x1d8] sm:$0xff] }
 0xcbf   :  { %5254 = vmatmul.mubr.msk.f32.gmra.mxu1 %vm328_vm0, %v3817_v34  ;;  %5272 = vmatprep.subr.mxu1 %v5449_v38 }
 0xcc0   :  { %v3536_v46 = vpop.f32.mrf.mxu1  ;;  %5256 = vmatprep.mubr.msk.f32.mxu1 %vm6846_vm9, %v5449_v38  ;;  %5273 = vmatpush3.msra.mxu1 %v3994_v40 }
 0xcc1   :  { %v3818_v19 = vmul.f32 %v6595_v31, %v3536_v46  ;;  %5274 = vmatprep.subr.mxu1 %v5449_v38 }
 0xcc2   :  { %v5190_v22 = vpop.f32.mrf.mxu1  ;;  %5275 = vmatpush3.msra.mxu1 %v3993_v3 }
 0xcc3   :  { %5257 = vmatmul.mubr.msk.f32.gmra.mxu1 %vm328_vm0, %v3818_v19  ;;  %5290 = vmatprep.subr.mxu1 %v5449_v38  ;;  %v4633_v19 = vld [vmem:[%s6827_s4 + $0x30] ss:$0 sm:$0xff] }
 0xcc4   :  { %v3703_v25 = vpop.f32.mrf.mxu1  ;;  %5276 = vmatprep.mubr.msk.f32.mxu1 %vm6846_vm9, %v5449_v38 }
 0xcc5   :  { %v3704_v11 = vadd.f32 %v3703_v25, %v6625_v62  ;;  %v3991_v62 = vld [vmem:[%s6827_s4 + $0x160] sm:$0xff] }
 0xcc6   :  { %v5218_v56 = vpop.f32.mrf.mxu1 }
 0xcc7   :  { %5277 = vmatmul.mubr.msk.f32.vlgmr.msra.gmra.mxu1 %vm328_vm0, %v3110_v54  ;;  %v3813_v1 = vadd.f32 %v6646_v8, %v3704_v11  ;;  %v4396_v56 = vld [vmem:[%s6827_s4 + $0x220] sm:$0xff] }
 0xcc8   :  { %5291 = vmatpush3.msra.mxu1 %v4146_v36  ;;  %v3708_v43 = vpop.f32.mrf.mxu1  ;;  %5298 = vmatprep.mubr.msk.f32.mxu1 %vm6846_vm9, %v5449_v38  ;;  %v4397_v36 = vld [vmem:[%s6827_s4 + $0x228] sm:$0xff] }
 0xcc9   :  { %5292 = vmatprep.subr.mxu1 %v5449_v38  ;;  %v3709_v35 = vadd.f32 %v3708_v43, %v6635_v63  ;;  %v4394_v43 = vld [vmem:[%s6827_s4 + $0x210] sm:$0xff] }
 0xcca   :  { %5293 = vmatpush3.msra.mxu1 %v4145_v45  ;;  %v5221_v15 = vpop.f32.mrf.mxu1  ;;  %v4395_v45 = vld [vmem:[%s6827_s4 + $0x218] sm:$0xff] }
 0xccb   :  { %5294 = vmatprep.subr.mxu1 %v5449_v38  ;;  %v3814_v13 = vadd.f32 %v6648_v42, %v3709_v35  ;;  %v4224_v42 = vld [vmem:[%s6827_s4 + $0x1c8] sm:$0xff] }
 0xccc   :  { %5295 = vmatpush3.msra.mxu1 %v4144_v52  ;;  %v3713_v57 = vpop.f32.mrf.mxu1  ;;  %v4634_v52 = vld [vmem:[%s6827_s4 + $0x38] ss:$0 sm:$0xff] }
 0xccd   :  { %5296 = vmatprep.subr.mxu1 %v5449_v38  ;;  %v3714_v29 = vadd.f32 %v3713_v57, %v6644_v24  ;;  %v303_v24 = vpop.xlane.xlu0 %302 }
 0xcce   :  { %5297 = vmatpush3.msra.mxu1 %v4143_v32  ;;  %v5224_v20 = vpop.f32.mrf.mxu1  ;;  %v304_v27 = vadd.f32 1e-06, %v303_v24 }
 0xccf   :  { %5299 = vmatmul.mubr.msk.f32.vlgmr.msra.gmra.mxu1 %vm328_vm0, %v2166_v18  ;;  %5312 = vmatprep.subr.mxu1 %v5449_v38  ;;  %v3815_v10 = vadd.f32 %v6650_v59, %v3714_v29  ;;  %v4223_v59 = vld [vmem:[%s6827_s4 + $0x1c0] sm:$0xff] }
 0xcd0   :  { %5328 = vmatprep.mubr.msk.f32.mxu1 %vm6846_vm9, %v5449_v38  ;;  %5420 = vrcp.f32 %v304_v27  ;;  %5313 = vmatpush3.msra.mxu1 %v4313_v44  ;;  %v4636_v18 = vld [vmem:[%s6827_s4 + $0x40] ss:$0 sm:$0xff] }
 0xcd1   :  { %5314 = vmatprep.subr.mxu1 %v5449_v38 }
 0xcd2   :  { %5315 = vmatpush3.msra.mxu1 %v4312_v60 }
 0xcd3   :  { %5316 = vmatprep.subr.mxu1 %v5449_v38 }
 0xcdd   :  { %v5421_v47 = vpop.eup %5420 }
 0xcde   :  { %v1270_v37 = vmul.f32 %v5421_v47, %v6045_v41  ;;  %v4311_v41 = vld [vmem:[%s6827_s4 + $0x1f8] sm:$0xff] }
 0xcdf   :  { %5317 = vmatpush3.msra.mxu1 %v4311_v41 }
 0xce0   :  { %5318 = vmatprep.subr.mxu1 %v5449_v38 }
 0xce1   :  { %5319 = vmatpush3.msra.mxu1 %v4310_v12 }
 0xce2   :  { %5320 = vmatprep.subr.mxu1 %v5449_v38 }
 0xce3   :  { %5321 = vmatpush3.msra.mxu1 %v4309_v33 }
 0xce4   :  { %5322 = vmatprep.subr.mxu1 %v5449_v38 }
 0xce5   :  { %5323 = vmatpush3.msra.mxu1 %v4308_v0 }
 0xce6   :  { %5324 = vmatprep.subr.mxu1 %v5449_v38 }
 0xce7   :  { %5325 = vmatpush3.msra.mxu1 %v4307_v2 }
 0xce8   :  { %5326 = vmatprep.subr.mxu1 %v5449_v38 }
 0xce9   :  { %5327 = vmatpush3.msra.mxu1 %v4306_v23 }
 0xd7b   :  { %v3898_v39 = vpop.f32.mrf.mxu1 }
 0xd7c   :  { %v3912_v50 = vadd.f32 %v3898_v39, %v3813_v1 }
 0xd7d   :  { %v5252_v51 = vpop.f32.mrf.mxu1 }
 0xd7f   :  { %v3903_v55 = vpop.f32.mrf.mxu1 }
 0xd80   :  { %v3913_v49 = vadd.f32 %v3903_v55, %v3814_v13 }
 0xd81   :  { %v5255_v7 = vpop.f32.mrf.mxu1 }
 0xd82   :  { %v4487_v7 = vstv %s4639_s8 }
 0xd83   :  { %v3908_v31 = vpop.f32.mrf.mxu1 }
 0xd84   :  { %v3914_v16 = vadd.f32 %v3908_v31, %v3815_v10 }
 0xd85   :  { %v5258_v53 = vpop.f32.mrf.mxu1 }
 0xd86   :  { %5260 = vmatpush3.msk.msra.mxu0 %vm608_vm7, %v3914_v16 }
 0xd87   :  { %5261 = vmatprep.subr.mxu0 %v5449_v38  ;;  %v6712_v28 = vpop.f32.mrf.mxu1 }
 0xd88   :  { %5262 = vmatpush3.msra.mxu0 %v3913_v49 }
 0xd89   :  { %5263 = vmatprep.subr.mxu0 %v5449_v38  ;;  %v5278_v58 = vpop.f32.mrf.mxu1 }
 0xd8a   :  { %5264 = vmatpush3.msra.mxu0 %v3912_v50 }
 0xd8b   :  { %5266 = vmatmul.mubr.msk.f32.vlgmr.msra.gmra.mxu0 %vm543_vm6, %v6245_v48  ;;  %5279 = vmatprep.subr.mxu0 %v5449_v38  ;;  %vm4319_vm6 = vcmask 523264  }
 0xd8c   :  { %5280 = vmatpush3.msra.mxu0 %v3992_v30  ;;  %5287 = vmatprep.mubr.msk.f32.mxu0 %vm6846_vm9, %v5449_v38 }
 0xd8d   :  { %5281 = vmatprep.subr.mxu0 %v5449_v38 }
 0xd8e   :  { %5282 = vmatpush3.msra.mxu0 %v3991_v62 }
 0xd8f   :  { %v4216_v63 = vpop.f32.mrf.mxu1  ;;  %5283 = vmatprep.subr.mxu0 %v5449_v38 }
 0xd90   :  { %5284 = vmatpush3.msra.mxu0 %v3990_v5 }
 0xd91   :  { %v5300_v48 = vpop.f32.mrf.mxu1  ;;  %5285 = vmatprep.subr.mxu0 %v5449_v38 }
 0xd92   :  { %5286 = vmatpush3.msra.mxu0 %v3989_v21 }
 0xd93   :  { %5301 = vmatprep.subr.mxu0 %v5449_v38 }
 0xe4b   :  { %v3984_v8 = vpop.f32.mrf.mxu0 }
 0xe4c   :  { %v3988_v4 = vmul.f32 %v5419_v17, %v3984_v8 }
 0xe4d   :  { %v5267_v14 = vpop.f32.mrf.mxu0 }
 0xe4e   :  { %5288 = vmatmul.mubr.msk.f32.vlgmr.msra.gmra.mxu0 %vm328_vm0, %v3988_v4 }
 0xe4f   :  { %5302 = vmatpush3.msra.mxu0 %v4224_v42  ;;  %5309 = vmatprep.mubr.msk.f32.mxu0 %vm6846_vm9, %v5449_v38 }
 0xe50   :  { %5303 = vmatprep.subr.mxu0 %v5449_v38 }
 0xe51   :  { %5304 = vmatpush3.msra.mxu0 %v4223_v59 }
 0xe52   :  { %5305 = vmatprep.subr.mxu0 %v5449_v38 }
 0xe53   :  { %5306 = vmatpush3.msra.mxu0 %v4222_v26 }
 0xe54   :  { %5307 = vmatprep.subr.mxu0 %v5449_v38 }
 0xe55   :  { %5308 = vmatpush3.msra.mxu0 %v4221_v6 }
 0xe56   :  { %5310 = vmatmul.mubr.msk.f32.vlgmr.msra.gmra.mxu0 %vm328_vm0, %v1270_v37  ;;  %5331 = vmatprep.subr.mxu0 %v5449_v38 }
 0xe57   :  { %5339 = vmatprep.mubr.msk.f32.mxu0 %vm6846_vm9, %v5449_v38  ;;  %5332 = vmatpush3.msra.mxu0 %v4397_v36 }
 0xe58   :  { %5333 = vmatprep.subr.mxu0 %v5449_v38 }
 0xe59   :  { %5334 = vmatpush3.msra.mxu0 %v4396_v56 }
 0xe5a   :  { %5335 = vmatprep.subr.mxu0 %v5449_v38 }
 0xe5b   :  { %5336 = vmatpush3.msra.mxu0 %v4395_v45 }
 0xe5c   :  { %5337 = vmatprep.subr.mxu0 %v5449_v38  ;;  %v4638_v38 = vld [vmem:[%s6827_s4 + $0x48] ss:$0 sm:$0xff] }
 0xe5d   :  { %5338 = vmatpush3.msra.mxu0 %v4394_v43 }
 0xf0e   :  { %v4139_v34 = vpop.f32.mrf.mxu0 }
 0xf0f   :  { %v4140_v61 = vadd.f32 %v4139_v34, %v6712_v28 }
 0xf10   :  { %v5289_v40 = vpop.f32.mrf.mxu0 }
 0xf11   :  { %v4220_v3 = vadd.f32 %v4216_v63, %v4140_v61 }
 0xf16   :  { %v4294_v46 = vpop.f32.mrf.mxu0 }
 0xf17   :  { %v4298_v9 = vadd.f32 %v4294_v46, %v4220_v3 }
 0xf18   :  { %v5311_v22 = vpop.f32.mrf.mxu0 }
 0xf19   :  { %v4304_v25 = vadd.f32 %v4633_v19, %v4298_v9 }
 0xf1b   :  { %5422 = vtanh.f32 %v4304_v25 }
 0xf28   :  { %v5423_v54 = vpop.eup %5422 }
 0xf29   :  { %5329 = vmatmul.mubr.msk.f32.vlgmr.msra.gmra.mxu1 %vm4319_vm6, %v5423_v54 }
 0xfe9   :  { %v4389_v17 = vpop.f32.mrf.mxu1 }
 0xfea   :  { %v4390_v15 = vadd.f32 %v4634_v52, %v4389_v17 }
 0xfeb   :  { %v5330_v32 = vpop.f32.mrf.mxu1 }
 0xfec   :  { %5424 = vtanh.f32 %v4390_v15 }
 0xff9   :  { %v5425_v57 = vpop.eup %5424 }
 0xffa   :  { %5340 = vmatmul.mubr.msk.f32.vlgmr.msra.gmra.mxu0 %vm328_vm0, %v5425_v57  ;;  %vm4489_vm0 = vcmask 1024  }
0x10ba   :  { %v4472_v20 = vpop.f32.mrf.mxu0 }
0x10bb   :  { %v4473_v39 = vadd.f32 %v4636_v18, %v4472_v20 }
0x10bc   :  { %v5341_v51 = vpop.f32.mrf.mxu0 }
0x10bd   :  { %5426 = vtanh.f32 %v4473_v39 }
0x10ca   :  { %v5427_v29 = vpop.eup %5426 }
0x10cb   :  { %v4482_v55 = vmul.f32 %v5427_v29, %v4638_v38 }
0x10cd   :  { %v4483_v35 = vsel %vm300_vm15, %v4482_v55, 0.0 }
0x10ce   :  { %4484 = vadd.xlane.f32.xlu1 %v4483_v35 }
0x1157   :  { %v4485_v11 = vpop.xlane.xlu1 %4484 }
0x1158   :  { %v4488_v10 = vadd.f32 %v4487_v7, %v4485_v11 }
0x115a   :  { %4490 = vst.msk [vmem:[%s6829_s6] sm:$0x3] %vm4489_vm0, %v4488_v10 }
0x115b   :  { %4495 = vsyncpa [#allocation3], 1 }

</bundles_post_ra>
